<compile_context>
chip_gen: v6e
topology: v6e:2x2x1
jax: 0.10.0
libtpu: 0.0.40
codegen_flags: <defaults>
</compile_context>

<pallas_src>
import functools

import jax
import jax.numpy as jnp
from jax.experimental import pallas as pl
from jax.experimental.pallas import tpu as pltpu

NEG_SLOPE = 0.2  # LeakyReLU slope used by dis_conv


# ------------------------------ Pallas kernel ------------------------------ #
def _conv5x5_kernel(x_ref, w_ref, b_ref, o_ref, *, cout, wo, mg):
    """One (image, row-group) tile of Conv2d(k=5, s=2, p=2) + bias + LeakyReLU.

    x_ref: (1, 1, 10*Cin, WINP) bf16 -- this row-group's band window: 10 bands
           (5 col-shifts x 2 row-parities) of the zero-padded input, flattened
           with lane = band_row * Wo + col (includes a 2-band-row halo).
    w_ref: (3, Cout, 10*Cin) bf16 -- for row-offset k, taps di = 2k+p stacked
           across all 10 bands (the invalid di=5 blocks are zero-filled).
    b_ref: (Cout, 1) f32
    o_ref: (1, Cout, MG) bf16 -- MG output lanes (spatial on the lane axis).
    """
    # Bias folded into the accumulator init (saves one extra f32 pass).
    acc = jnp.broadcast_to(b_ref[...], (cout, mg))
    # 3 wide MXU matmuls (K = 10*Cin) instead of 25 tiny K=Cin ones.
    for k in range(3):
        xt = x_ref[0, 0, :, k * wo: k * wo + mg]          # static offsets only
        acc = acc + jnp.dot(w_ref[k], xt, preferred_element_type=jnp.float32)
    acc = jnp.maximum(acc, NEG_SLOPE * acc)               # LeakyReLU(0.2), f32
    o_ref[0] = acc.astype(o_ref.dtype)


# ------------------------------ conv wrapper -------------------------------- #
def _pick_groups(n, ho, wo):
    """Row-group count G: ~2048-lane tiles, >=4 grid steps, MG % 128 == 0."""
    m = ho * wo
    g = max(1, m // 2048)                 # target ~2048 output lanes per tile
    g = max(g, -(-4 // max(n, 1)))        # >= 4 total grid steps (v7x: 2 TCs)
    g = min(g, ho)
    while g > 1 and (ho % g != 0 or ((ho // g) * wo) % 128 != 0):
        g -= 1
    return g


def dis_conv(x_nchw, w_oihw, b):
    """Conv2d(k=5, s=2, p=2) + bias + LeakyReLU(0.2). Returns (N, Cout, Ho*Wo) bf16."""
    N, Cin, H, W = x_nchw.shape
    Cout = w_oihw.shape[0]
    Ho, Wo = H // 2, W // 2
    M = Ho * Wo

    G = _pick_groups(N, Ho, Wo)
    RG = Ho // G                      # output rows per grid group
    MG = RG * Wo                      # output lanes per grid group
    WIN = (RG + 2) * Wo               # band lanes per group (incl. 2-row halo)
    WINP = ((WIN + 127) // 128) * 128  # pad lane dim to a 128 multiple

    x = x_nchw.astype(jnp.bfloat16)
    xp = jnp.pad(x, ((0, 0), (0, 0), (2, 2), (2, 2)))
    # band[dj*2+p][n, c, r, w] = x_pad[n, c, 2r+p, 2w+dj]   (~2.5x input bytes)
    bands = jnp.stack(
        [xp[:, :, p::2, dj::2][:, :, :Ho + 2, :Wo]
         for dj in range(5) for p in range(2)], axis=1)       # (N,10,Cin,Ho+2,Wo)
    bands = bands.reshape(N, 10 * Cin, Ho + 2, Wo)
    # Per-row-group windows so all in-kernel slice starts are static and each
    # grid step only DMAs ~1/G of the image (halo duplication is tiny).
    wins = jnp.stack([bands[:, :, g * RG: g * RG + RG + 2, :] for g in range(G)],
                     axis=1)                                  # (N,G,10Cin,RG+2,Wo)
    wins = wins.reshape(N, G, 10 * Cin, WIN)
    if WINP != WIN:
        wins = jnp.pad(wins, ((0, 0), (0, 0), (0, 0), (0, WINP - WIN)))

    # PyTorch OIHW weights -> 3 stacked (Cout, 10*Cin) matrices, one per row
    # offset k; contraction index = (dj*2 + p)*Cin + c, taps di = 2k+p (di=5 -> 0).
    w_ext = jnp.concatenate(
        [w_oihw, jnp.zeros((Cout, Cin, 1, 5), w_oihw.dtype)], axis=2)  # di = 0..5
    wk = w_ext.transpose(2, 3, 0, 1)          # (6, 5, Cout, Cin)  [di, dj, o, c]
    wk = wk.reshape(3, 2, 5, Cout, Cin)       # [k, p, dj, o, c]
    wk = wk.transpose(0, 3, 2, 1, 4)          # [k, o, dj, p, c]
    wk = wk.reshape(3, Cout, 10 * Cin).astype(jnp.bfloat16)
    b2 = b.reshape(Cout, 1).astype(jnp.float32)

    kernel = functools.partial(_conv5x5_kernel, cout=Cout, wo=Wo, mg=MG)
    out = pl.pallas_call(
        kernel,
        out_shape=jax.ShapeDtypeStruct((N, Cout, M), jnp.bfloat16),
        grid=(N, G),
        in_specs=[
            pl.BlockSpec((1, 1, 10 * Cin, WINP), lambda n, g: (n, g, 0, 0)),
            pl.BlockSpec((3, Cout, 10 * Cin), lambda n, g: (0, 0, 0)),
            pl.BlockSpec((Cout, 1), lambda n, g: (0, 0)),
        ],
        out_specs=pl.BlockSpec((1, Cout, MG), lambda n, g: (n, 0, g)),
        compiler_params=pltpu.CompilerParams(
            dimension_semantics=("parallel", "parallel"),
            vmem_limit_bytes=32 * 1024 * 1024,
        ),
    )(wins, wk, b2)
    return out  # (N, Cout, Ho*Wo)


# ---------------------------- params / forward ------------------------------ #
def init_params(key, input_dim, cnum):
    """Deterministic, PyTorch-default-style uniform init (synthetic weights)."""
    keys = jax.random.split(key, 6)

    def conv_p(k, cin, cout, ksz=5):
        kw_, kb_ = jax.random.split(k)
        bound = 1.0 / float(jnp.sqrt(cin * ksz * ksz))
        w = jax.random.uniform(kw_, (cout, cin, ksz, ksz), jnp.float32,
                               -bound, bound)
        bb = jax.random.uniform(kb_, (cout,), jnp.float32, -bound, bound)
        return w, bb

    params = {
        "conv1": conv_p(keys[0], input_dim, cnum),
        "conv2": conv_p(keys[1], cnum, cnum * 2),
        "conv3": conv_p(keys[2], cnum * 2, cnum * 4),
        "conv4": conv_p(keys[3], cnum * 4, cnum * 4),
    }
    lin_in = cnum * 4 * 16 * 16
    bound = 1.0 / float(jnp.sqrt(lin_in))
    lw = jax.random.uniform(keys[4], (1, lin_in), jnp.float32, -bound, bound)
    lb = jax.random.uniform(keys[5], (1,), jnp.float32, -bound, bound)
    params["linear"] = (lw, lb)
    return params


def global_dis_forward(params, x_nchw):
    h = x_nchw  # NCHW throughout (no transposes needed)
    for name in ("conv1", "conv2", "conv3", "conv4"):
        w, b = params[name]
        N, _, H, W = h.shape
        out = dis_conv(h, w, b)                       # (N, Cout, (H//2)*(W//2))
        h = out.reshape(N, w.shape[0], H // 2, W // 2)
    # (N, Cout, Ho, Wo) row-major flatten == PyTorch x.view(N, -1).
    flat = h.reshape(h.shape[0], -1).astype(jnp.float32)
    lw, lb = params["linear"]
    # Final Linear is ~16 KFLOP: plain XLA dot (a Pallas launch costs more
    # than the math).
    return flat @ lw.T + lb


if __name__ == "__main__":
    key = jax.random.PRNGKey(0)
    k_params, k_x = jax.random.split(key)

    # Small config: cnum=4, input_dim=3.  Linear(cnum*4*16*16, 1) implies a
    # 256x256 spatial input (four stride-2 convs -> 16x16).
    cnum, input_dim = 4, 3
    params = init_params(k_params, input_dim, cnum)
    x = jax.random.normal(k_x, (2, input_dim, 256, 256), jnp.float32)

    out = jax.jit(global_dis_forward)(params, x)
    out = jax.block_until_ready(out)
    assert out.shape == (2, 1), out.shape
    assert bool(jnp.all(jnp.isfinite(out)))
    print("KERNEL_OK")
</pallas_src>

<mosaic_0001>
module attributes {stable_mosaic.version = 11 : i64} {
  func.func @_conv5x5_kernel(%arg0: i32, %arg1: i32, %arg2: memref<1x1x30x2304xbf16, #tpu.memory_space<vmem>>, %arg3: memref<3x4x30xbf16, #tpu.memory_space<vmem>>, %arg4: memref<4x1xf32, #tpu.memory_space<vmem>>, %arg5: memref<1x4x2048xbf16, #tpu.memory_space<vmem>>) attributes {dimension_semantics = [#tpu.dimension_semantics<parallel>, #tpu.dimension_semantics<parallel>], iteration_bounds = array<i64: 2, 8>, scalar_prefetch = 0 : i64, scratch_operands = 0 : i64, tpu.core_type = #tpu.core_type<tc>, window_params = [{transform_indices = @transform_0, window_bounds = array<i64: 1, 1, 30, 2304>}, {pipeline_mode = #tpu.pipeline_mode<synchronous>, transform_indices = @transform_1, window_bounds = array<i64: 3, 4, 30>}, {pipeline_mode = #tpu.pipeline_mode<synchronous>, transform_indices = @transform_2, window_bounds = array<i64: 4, 1>}, {transform_indices = @transform_3, window_bounds = array<i64: 1, 4, 2048>}]} {
    %c0 = arith.constant 0 : index
    %c0_0 = arith.constant 0 : index
    %0 = vector.load %arg4[%c0, %c0_0] : memref<4x1xf32, #tpu.memory_space<vmem>>, vector<4x1xf32>
    %1 = vector.shape_cast %0 : vector<4x1xf32> to vector<4x1xf32>
    %2 = vector.broadcast %1 : vector<4x1xf32> to vector<4x2048xf32>
    %c0_1 = arith.constant 0 : index
    %c0_2 = arith.constant 0 : index
    %c0_3 = arith.constant 0 : index
    %c0_4 = arith.constant 0 : index
    %3 = vector.load %arg2[%c0_1, %c0_2, %c0_3, %c0_4] : memref<1x1x30x2304xbf16, #tpu.memory_space<vmem>>, vector<1x1x30x2048xbf16>
    %4 = vector.shape_cast %3 : vector<1x1x30x2048xbf16> to vector<30x2048xbf16>
    %c0_5 = arith.constant 0 : index
    %c0_6 = arith.constant 0 : index
    %c0_7 = arith.constant 0 : index
    %5 = vector.load %arg3[%c0_5, %c0_6, %c0_7] : memref<3x4x30xbf16, #tpu.memory_space<vmem>>, vector<1x4x30xbf16>
    %6 = vector.shape_cast %5 : vector<1x4x30xbf16> to vector<4x30xbf16>
    %cst = arith.constant dense<0.000000e+00> : vector<4x2048xf32>
    %7 = tpu.matmul %6, %4, %cst {dimension_numbers = #tpu.dot_dimension_numbers<[1], [0], [0], [1], [0, 0, 1, 1], [], []>} : vector<4x30xbf16>, vector<30x2048xbf16>, vector<4x2048xf32> -> vector<4x2048xf32>
    %8 = arith.addf %2, %7 : vector<4x2048xf32>
    %c0_8 = arith.constant 0 : index
    %c0_9 = arith.constant 0 : index
    %c0_10 = arith.constant 0 : index
    %c128 = arith.constant 128 : index
    %9 = vector.load %arg2[%c0_8, %c0_9, %c0_10, %c128] : memref<1x1x30x2304xbf16, #tpu.memory_space<vmem>>, vector<1x1x30x2048xbf16>
    %10 = vector.shape_cast %9 : vector<1x1x30x2048xbf16> to vector<30x2048xbf16>
    %c1 = arith.constant 1 : index
    %c0_11 = arith.constant 0 : index
    %c0_12 = arith.constant 0 : index
    %11 = vector.load %arg3[%c1, %c0_11, %c0_12] : memref<3x4x30xbf16, #tpu.memory_space<vmem>>, vector<1x4x30xbf16>
    %12 = vector.shape_cast %11 : vector<1x4x30xbf16> to vector<4x30xbf16>
    %cst_13 = arith.constant dense<0.000000e+00> : vector<4x2048xf32>
    %13 = tpu.matmul %12, %10, %cst_13 {dimension_numbers = #tpu.dot_dimension_numbers<[1], [0], [0], [1], [0, 0, 1, 1], [], []>} : vector<4x30xbf16>, vector<30x2048xbf16>, vector<4x2048xf32> -> vector<4x2048xf32>
    %14 = arith.addf %8, %13 : vector<4x2048xf32>
    %c0_14 = arith.constant 0 : index
    %c0_15 = arith.constant 0 : index
    %c0_16 = arith.constant 0 : index
    %c256 = arith.constant 256 : index
    %15 = vector.load %arg2[%c0_14, %c0_15, %c0_16, %c256] : memref<1x1x30x2304xbf16, #tpu.memory_space<vmem>>, vector<1x1x30x2048xbf16>
    %16 = vector.shape_cast %15 : vector<1x1x30x2048xbf16> to vector<30x2048xbf16>
    %c2 = arith.constant 2 : index
    %c0_17 = arith.constant 0 : index
    %c0_18 = arith.constant 0 : index
    %17 = vector.load %arg3[%c2, %c0_17, %c0_18] : memref<3x4x30xbf16, #tpu.memory_space<vmem>>, vector<1x4x30xbf16>
    %18 = vector.shape_cast %17 : vector<1x4x30xbf16> to vector<4x30xbf16>
    %cst_19 = arith.constant dense<0.000000e+00> : vector<4x2048xf32>
    %19 = tpu.matmul %18, %16, %cst_19 {dimension_numbers = #tpu.dot_dimension_numbers<[1], [0], [0], [1], [0, 0, 1, 1], [], []>} : vector<4x30xbf16>, vector<30x2048xbf16>, vector<4x2048xf32> -> vector<4x2048xf32>
    %20 = arith.addf %14, %19 : vector<4x2048xf32>
    %cst_20 = arith.constant 2.000000e-01 : f32
    %21 = vector.broadcast %cst_20 : f32 to vector<4x2048xf32>
    %22 = arith.mulf %21, %20 : vector<4x2048xf32>
    %23 = arith.maximumf %20, %22 : vector<4x2048xf32>
    %24 = arith.truncf %23 : vector<4x2048xf32> to vector<4x2048xbf16>
    %c0_21 = arith.constant 0 : index
    %c0_22 = arith.constant 0 : index
    %c0_23 = arith.constant 0 : index
    %25 = vector.load %arg5[%c0_21, %c0_22, %c0_23] : memref<1x4x2048xbf16, #tpu.memory_space<vmem>>, vector<1x4x2048xbf16>
    %26 = vector.shape_cast %25 : vector<1x4x2048xbf16> to vector<4x2048xbf16>
    %27 = vector.shape_cast %24 : vector<4x2048xbf16> to vector<1x4x2048xbf16>
    tpu.vector_store %arg5[%c0_21, %c0_22, %c0_23], %27 {strides = array<i32>} : memref<1x4x2048xbf16, #tpu.memory_space<vmem>>, vector<1x4x2048xbf16>,
    return
  }
  func.func @transform_0(%arg0: i32, %arg1: i32) -> (i32, i32, i32, i32) {
    %c0_i32 = arith.constant 0 : i32
    %c0_i32_0 = arith.constant 0 : i32
    %c0_i32_1 = arith.constant 0 : i32
    return %arg0, %arg1, %c0_i32, %c0_i32_0 : i32, i32, i32, i32
  }
  func.func @transform_1(%arg0: i32, %arg1: i32) -> (i32, i32, i32) {
    %c0_i32 = arith.constant 0 : i32
    %c0_i32_0 = arith.constant 0 : i32
    %c0_i32_1 = arith.constant 0 : i32
    %c0_i32_2 = arith.constant 0 : i32
    return %c0_i32, %c0_i32_0, %c0_i32_1 : i32, i32, i32
  }
  func.func @transform_2(%arg0: i32, %arg1: i32) -> (i32, i32) {
    %c0_i32 = arith.constant 0 : i32
    %c0_i32_0 = arith.constant 0 : i32
    %c0_i32_1 = arith.constant 0 : i32
    return %c0_i32, %c0_i32_0 : i32, i32
  }
  func.func @transform_3(%arg0: i32, %arg1: i32) -> (i32, i32, i32) {
    %c0_i32 = arith.constant 0 : i32
    %c0_i32_0 = arith.constant 0 : i32
    return %arg0, %c0_i32, %arg1 : i32, i32, i32
  }
}

module attributes {stable_mosaic.version = 11 : i64} {
  func.func @_conv5x5_kernel(%arg0: i32, %arg1: i32, %arg2: memref<1x1x40x2176xbf16, #tpu.memory_space<vmem>>, %arg3: memref<3x8x40xbf16, #tpu.memory_space<vmem>>, %arg4: memref<8x1xf32, #tpu.memory_space<vmem>>, %arg5: memref<1x8x2048xbf16, #tpu.memory_space<vmem>>) attributes {dimension_semantics = [#tpu.dimension_semantics<parallel>, #tpu.dimension_semantics<parallel>], iteration_bounds = array<i64: 2, 2>, scalar_prefetch = 0 : i64, scratch_operands = 0 : i64, tpu.core_type = #tpu.core_type<tc>, window_params = [{transform_indices = @transform_0, window_bounds = array<i64: 1, 1, 40, 2176>}, {pipeline_mode = #tpu.pipeline_mode<synchronous>, transform_indices = @transform_1, window_bounds = array<i64: 3, 8, 40>}, {pipeline_mode = #tpu.pipeline_mode<synchronous>, transform_indices = @transform_2, window_bounds = array<i64: 8, 1>}, {transform_indices = @transform_3, window_bounds = array<i64: 1, 8, 2048>}]} {
    %c0 = arith.constant 0 : index
    %c0_0 = arith.constant 0 : index
    %0 = vector.load %arg4[%c0, %c0_0] : memref<8x1xf32, #tpu.memory_space<vmem>>, vector<8x1xf32>
    %1 = vector.shape_cast %0 : vector<8x1xf32> to vector<8x1xf32>
    %2 = vector.broadcast %1 : vector<8x1xf32> to vector<8x2048xf32>
    %c0_1 = arith.constant 0 : index
    %c0_2 = arith.constant 0 : index
    %c0_3 = arith.constant 0 : index
    %c0_4 = arith.constant 0 : index
    %3 = vector.load %arg2[%c0_1, %c0_2, %c0_3, %c0_4] : memref<1x1x40x2176xbf16, #tpu.memory_space<vmem>>, vector<1x1x40x2048xbf16>
    %4 = vector.shape_cast %3 : vector<1x1x40x2048xbf16> to vector<40x2048xbf16>
    %c0_5 = arith.constant 0 : index
    %c0_6 = arith.constant 0 : index
    %c0_7 = arith.constant 0 : index
    %5 = vector.load %arg3[%c0_5, %c0_6, %c0_7] : memref<3x8x40xbf16, #tpu.memory_space<vmem>>, vector<1x8x40xbf16>
    %6 = vector.shape_cast %5 : vector<1x8x40xbf16> to vector<8x40xbf16>
    %cst = arith.constant dense<0.000000e+00> : vector<8x2048xf32>
    %7 = tpu.matmul %6, %4, %cst {dimension_numbers = #tpu.dot_dimension_numbers<[1], [0], [0], [1], [0, 0, 1, 1], [], []>} : vector<8x40xbf16>, vector<40x2048xbf16>, vector<8x2048xf32> -> vector<8x2048xf32>
    %8 = arith.addf %2, %7 : vector<8x2048xf32>
    %c0_8 = arith.constant 0 : index
    %c0_9 = arith.constant 0 : index
    %c0_10 = arith.constant 0 : index
    %c64 = arith.constant 64 : index
    %9 = vector.load %arg2[%c0_8, %c0_9, %c0_10, %c64] : memref<1x1x40x2176xbf16, #tpu.memory_space<vmem>>, vector<1x1x40x2048xbf16>
    %10 = vector.shape_cast %9 : vector<1x1x40x2048xbf16> to vector<40x2048xbf16>
    %c1 = arith.constant 1 : index
    %c0_11 = arith.constant 0 : index
    %c0_12 = arith.constant 0 : index
    %11 = vector.load %arg3[%c1, %c0_11, %c0_12] : memref<3x8x40xbf16, #tpu.memory_space<vmem>>, vector<1x8x40xbf16>
    %12 = vector.shape_cast %11 : vector<1x8x40xbf16> to vector<8x40xbf16>
    %cst_13 = arith.constant dense<0.000000e+00> : vector<8x2048xf32>
    %13 = tpu.matmul %12, %10, %cst_13 {dimension_numbers = #tpu.dot_dimension_numbers<[1], [0], [0], [1], [0, 0, 1, 1], [], []>} : vector<8x40xbf16>, vector<40x2048xbf16>, vector<8x2048xf32> -> vector<8x2048xf32>
    %14 = arith.addf %8, %13 : vector<8x2048xf32>
    %c0_14 = arith.constant 0 : index
    %c0_15 = arith.constant 0 : index
    %c0_16 = arith.constant 0 : index
    %c128 = arith.constant 128 : index
    %15 = vector.load %arg2[%c0_14, %c0_15, %c0_16, %c128] : memref<1x1x40x2176xbf16, #tpu.memory_space<vmem>>, vector<1x1x40x2048xbf16>
    %16 = vector.shape_cast %15 : vector<1x1x40x2048xbf16> to vector<40x2048xbf16>
    %c2 = arith.constant 2 : index
    %c0_17 = arith.constant 0 : index
    %c0_18 = arith.constant 0 : index
    %17 = vector.load %arg3[%c2, %c0_17, %c0_18] : memref<3x8x40xbf16, #tpu.memory_space<vmem>>, vector<1x8x40xbf16>
    %18 = vector.shape_cast %17 : vector<1x8x40xbf16> to vector<8x40xbf16>
    %cst_19 = arith.constant dense<0.000000e+00> : vector<8x2048xf32>
    %19 = tpu.matmul %18, %16, %cst_19 {dimension_numbers = #tpu.dot_dimension_numbers<[1], [0], [0], [1], [0, 0, 1, 1], [], []>} : vector<8x40xbf16>, vector<40x2048xbf16>, vector<8x2048xf32> -> vector<8x2048xf32>
    %20 = arith.addf %14, %19 : vector<8x2048xf32>
    %cst_20 = arith.constant 2.000000e-01 : f32
    %21 = vector.broadcast %cst_20 : f32 to vector<8x2048xf32>
    %22 = arith.mulf %21, %20 : vector<8x2048xf32>
    %23 = arith.maximumf %20, %22 : vector<8x2048xf32>
    %24 = arith.truncf %23 : vector<8x2048xf32> to vector<8x2048xbf16>
    %c0_21 = arith.constant 0 : index
    %c0_22 = arith.constant 0 : index
    %c0_23 = arith.constant 0 : index
    %25 = vector.load %arg5[%c0_21, %c0_22, %c0_23] : memref<1x8x2048xbf16, #tpu.memory_space<vmem>>, vector<1x8x2048xbf16>
    %26 = vector.shape_cast %25 : vector<1x8x2048xbf16> to vector<8x2048xbf16>
    %27 = vector.shape_cast %24 : vector<8x2048xbf16> to vector<1x8x2048xbf16>
    tpu.vector_store %arg5[%c0_21, %c0_22, %c0_23], %27 {strides = array<i32>} : memref<1x8x2048xbf16, #tpu.memory_space<vmem>>, vector<1x8x2048xbf16>,
    return
  }
  func.func @transform_0(%arg0: i32, %arg1: i32) -> (i32, i32, i32, i32) {
    %c0_i32 = arith.constant 0 : i32
    %c0_i32_0 = arith.constant 0 : i32
    %c0_i32_1 = arith.constant 0 : i32
    return %arg0, %arg1, %c0_i32, %c0_i32_0 : i32, i32, i32, i32
  }
  func.func @transform_1(%arg0: i32, %arg1: i32) -> (i32, i32, i32) {
    %c0_i32 = arith.constant 0 : i32
    %c0_i32_0 = arith.constant 0 : i32
    %c0_i32_1 = arith.constant 0 : i32
    %c0_i32_2 = arith.constant 0 : i32
    return %c0_i32, %c0_i32_0, %c0_i32_1 : i32, i32, i32
  }
  func.func @transform_2(%arg0: i32, %arg1: i32) -> (i32, i32) {
    %c0_i32 = arith.constant 0 : i32
    %c0_i32_0 = arith.constant 0 : i32
    %c0_i32_1 = arith.constant 0 : i32
    return %c0_i32, %c0_i32_0 : i32, i32
  }
  func.func @transform_3(%arg0: i32, %arg1: i32) -> (i32, i32, i32) {
    %c0_i32 = arith.constant 0 : i32
    %c0_i32_0 = arith.constant 0 : i32
    return %arg0, %c0_i32, %arg1 : i32, i32, i32
  }
}

module attributes {stable_mosaic.version = 11 : i64} {
  func.func @_conv5x5_kernel(%arg0: i32, %arg1: i32, %arg2: memref<1x1x80x640xbf16, #tpu.memory_space<vmem>>, %arg3: memref<3x16x80xbf16, #tpu.memory_space<vmem>>, %arg4: memref<16x1xf32, #tpu.memory_space<vmem>>, %arg5: memref<1x16x512xbf16, #tpu.memory_space<vmem>>) attributes {dimension_semantics = [#tpu.dimension_semantics<parallel>, #tpu.dimension_semantics<parallel>], iteration_bounds = array<i64: 2, 2>, scalar_prefetch = 0 : i64, scratch_operands = 0 : i64, tpu.core_type = #tpu.core_type<tc>, window_params = [{transform_indices = @transform_0, window_bounds = array<i64: 1, 1, 80, 640>}, {pipeline_mode = #tpu.pipeline_mode<synchronous>, transform_indices = @transform_1, window_bounds = array<i64: 3, 16, 80>}, {pipeline_mode = #tpu.pipeline_mode<synchronous>, transform_indices = @transform_2, window_bounds = array<i64: 16, 1>}, {transform_indices = @transform_3, window_bounds = array<i64: 1, 16, 512>}]} {
    %c0 = arith.constant 0 : index
    %c0_0 = arith.constant 0 : index
    %0 = vector.load %arg4[%c0, %c0_0] : memref<16x1xf32, #tpu.memory_space<vmem>>, vector<16x1xf32>
    %1 = vector.shape_cast %0 : vector<16x1xf32> to vector<16x1xf32>
    %2 = vector.broadcast %1 : vector<16x1xf32> to vector<16x512xf32>
    %c0_1 = arith.constant 0 : index
    %c0_2 = arith.constant 0 : index
    %c0_3 = arith.constant 0 : index
    %c0_4 = arith.constant 0 : index
    %3 = vector.load %arg2[%c0_1, %c0_2, %c0_3, %c0_4] : memref<1x1x80x640xbf16, #tpu.memory_space<vmem>>, vector<1x1x80x512xbf16>
    %4 = vector.shape_cast %3 : vector<1x1x80x512xbf16> to vector<80x512xbf16>
    %c0_5 = arith.constant 0 : index
    %c0_6 = arith.constant 0 : index
    %c0_7 = arith.constant 0 : index
    %5 = vector.load %arg3[%c0_5, %c0_6, %c0_7] : memref<3x16x80xbf16, #tpu.memory_space<vmem>>, vector<1x16x80xbf16>
    %6 = vector.shape_cast %5 : vector<1x16x80xbf16> to vector<16x80xbf16>
    %cst = arith.constant dense<0.000000e+00> : vector<16x512xf32>
    %7 = tpu.matmul %6, %4, %cst {dimension_numbers = #tpu.dot_dimension_numbers<[1], [0], [0], [1], [0, 0, 1, 1], [], []>} : vector<16x80xbf16>, vector<80x512xbf16>, vector<16x512xf32> -> vector<16x512xf32>
    %8 = arith.addf %2, %7 : vector<16x512xf32>
    %c0_8 = arith.constant 0 : index
    %c0_9 = arith.constant 0 : index
    %c0_10 = arith.constant 0 : index
    %c32 = arith.constant 32 : index
    %9 = vector.load %arg2[%c0_8, %c0_9, %c0_10, %c32] : memref<1x1x80x640xbf16, #tpu.memory_space<vmem>>, vector<1x1x80x512xbf16>
    %10 = vector.shape_cast %9 : vector<1x1x80x512xbf16> to vector<80x512xbf16>
    %c1 = arith.constant 1 : index
    %c0_11 = arith.constant 0 : index
    %c0_12 = arith.constant 0 : index
    %11 = vector.load %arg3[%c1, %c0_11, %c0_12] : memref<3x16x80xbf16, #tpu.memory_space<vmem>>, vector<1x16x80xbf16>
    %12 = vector.shape_cast %11 : vector<1x16x80xbf16> to vector<16x80xbf16>
    %cst_13 = arith.constant dense<0.000000e+00> : vector<16x512xf32>
    %13 = tpu.matmul %12, %10, %cst_13 {dimension_numbers = #tpu.dot_dimension_numbers<[1], [0], [0], [1], [0, 0, 1, 1], [], []>} : vector<16x80xbf16>, vector<80x512xbf16>, vector<16x512xf32> -> vector<16x512xf32>
    %14 = arith.addf %8, %13 : vector<16x512xf32>
    %c0_14 = arith.constant 0 : index
    %c0_15 = arith.constant 0 : index
    %c0_16 = arith.constant 0 : index
    %c64 = arith.constant 64 : index
    %15 = vector.load %arg2[%c0_14, %c0_15, %c0_16, %c64] : memref<1x1x80x640xbf16, #tpu.memory_space<vmem>>, vector<1x1x80x512xbf16>
    %16 = vector.shape_cast %15 : vector<1x1x80x512xbf16> to vector<80x512xbf16>
    %c2 = arith.constant 2 : index
    %c0_17 = arith.constant 0 : index
    %c0_18 = arith.constant 0 : index
    %17 = vector.load %arg3[%c2, %c0_17, %c0_18] : memref<3x16x80xbf16, #tpu.memory_space<vmem>>, vector<1x16x80xbf16>
    %18 = vector.shape_cast %17 : vector<1x16x80xbf16> to vector<16x80xbf16>
    %cst_19 = arith.constant dense<0.000000e+00> : vector<16x512xf32>
    %19 = tpu.matmul %18, %16, %cst_19 {dimension_numbers = #tpu.dot_dimension_numbers<[1], [0], [0], [1], [0, 0, 1, 1], [], []>} : vector<16x80xbf16>, vector<80x512xbf16>, vector<16x512xf32> -> vector<16x512xf32>
    %20 = arith.addf %14, %19 : vector<16x512xf32>
    %cst_20 = arith.constant 2.000000e-01 : f32
    %21 = vector.broadcast %cst_20 : f32 to vector<16x512xf32>
    %22 = arith.mulf %21, %20 : vector<16x512xf32>
    %23 = arith.maximumf %20, %22 : vector<16x512xf32>
    %24 = arith.truncf %23 : vector<16x512xf32> to vector<16x512xbf16>
    %c0_21 = arith.constant 0 : index
    %c0_22 = arith.constant 0 : index
    %c0_23 = arith.constant 0 : index
    %25 = vector.load %arg5[%c0_21, %c0_22, %c0_23] : memref<1x16x512xbf16, #tpu.memory_space<vmem>>, vector<1x16x512xbf16>
    %26 = vector.shape_cast %25 : vector<1x16x512xbf16> to vector<16x512xbf16>
    %27 = vector.shape_cast %24 : vector<16x512xbf16> to vector<1x16x512xbf16>
    tpu.vector_store %arg5[%c0_21, %c0_22, %c0_23], %27 {strides = array<i32>} : memref<1x16x512xbf16, #tpu.memory_space<vmem>>, vector<1x16x512xbf16>,
    return
  }
  func.func @transform_0(%arg0: i32, %arg1: i32) -> (i32, i32, i32, i32) {
    %c0_i32 = arith.constant 0 : i32
    %c0_i32_0 = arith.constant 0 : i32
    %c0_i32_1 = arith.constant 0 : i32
    return %arg0, %arg1, %c0_i32, %c0_i32_0 : i32, i32, i32, i32
  }
  func.func @transform_1(%arg0: i32, %arg1: i32) -> (i32, i32, i32) {
    %c0_i32 = arith.constant 0 : i32
    %c0_i32_0 = arith.constant 0 : i32
    %c0_i32_1 = arith.constant 0 : i32
    %c0_i32_2 = arith.constant 0 : i32
    return %c0_i32, %c0_i32_0, %c0_i32_1 : i32, i32, i32
  }
  func.func @transform_2(%arg0: i32, %arg1: i32) -> (i32, i32) {
    %c0_i32 = arith.constant 0 : i32
    %c0_i32_0 = arith.constant 0 : i32
    %c0_i32_1 = arith.constant 0 : i32
    return %c0_i32, %c0_i32_0 : i32, i32
  }
  func.func @transform_3(%arg0: i32, %arg1: i32) -> (i32, i32, i32) {
    %c0_i32 = arith.constant 0 : i32
    %c0_i32_0 = arith.constant 0 : i32
    return %arg0, %c0_i32, %arg1 : i32, i32, i32
  }
}

module attributes {stable_mosaic.version = 11 : i64} {
  func.func @_conv5x5_kernel(%arg0: i32, %arg1: i32, %arg2: memref<1x1x160x256xbf16, #tpu.memory_space<vmem>>, %arg3: memref<3x16x160xbf16, #tpu.memory_space<vmem>>, %arg4: memref<16x1xf32, #tpu.memory_space<vmem>>, %arg5: memref<1x16x128xbf16, #tpu.memory_space<vmem>>) attributes {dimension_semantics = [#tpu.dimension_semantics<parallel>, #tpu.dimension_semantics<parallel>], iteration_bounds = array<i64: 2, 2>, scalar_prefetch = 0 : i64, scratch_operands = 0 : i64, tpu.core_type = #tpu.core_type<tc>, window_params = [{transform_indices = @transform_0, window_bounds = array<i64: 1, 1, 160, 256>}, {pipeline_mode = #tpu.pipeline_mode<synchronous>, transform_indices = @transform_1, window_bounds = array<i64: 3, 16, 160>}, {pipeline_mode = #tpu.pipeline_mode<synchronous>, transform_indices = @transform_2, window_bounds = array<i64: 16, 1>}, {transform_indices = @transform_3, window_bounds = array<i64: 1, 16, 128>}]} {
    %c0 = arith.constant 0 : index
    %c0_0 = arith.constant 0 : index
    %0 = vector.load %arg4[%c0, %c0_0] : memref<16x1xf32, #tpu.memory_space<vmem>>, vector<16x1xf32>
    %1 = vector.shape_cast %0 : vector<16x1xf32> to vector<16x1xf32>
    %2 = vector.broadcast %1 : vector<16x1xf32> to vector<16x128xf32>
    %c0_1 = arith.constant 0 : index
    %c0_2 = arith.constant 0 : index
    %c0_3 = arith.constant 0 : index
    %c0_4 = arith.constant 0 : index
    %3 = vector.load %arg2[%c0_1, %c0_2, %c0_3, %c0_4] : memref<1x1x160x256xbf16, #tpu.memory_space<vmem>>, vector<1x1x160x128xbf16>
    %4 = vector.shape_cast %3 : vector<1x1x160x128xbf16> to vector<160x128xbf16>
    %c0_5 = arith.constant 0 : index
    %c0_6 = arith.constant 0 : index
    %c0_7 = arith.constant 0 : index
    %5 = vector.load %arg3[%c0_5, %c0_6, %c0_7] : memref<3x16x160xbf16, #tpu.memory_space<vmem>>, vector<1x16x160xbf16>
    %6 = vector.shape_cast %5 : vector<1x16x160xbf16> to vector<16x160xbf16>
    %cst = arith.constant dense<0.000000e+00> : vector<16x128xf32>
    %7 = tpu.matmul %6, %4, %cst {dimension_numbers = #tpu.dot_dimension_numbers<[1], [0], [0], [1], [0, 0, 1, 1], [], []>} : vector<16x160xbf16>, vector<160x128xbf16>, vector<16x128xf32> -> vector<16x128xf32>
    %8 = arith.addf %2, %7 : vector<16x128xf32>
    %c0_8 = arith.constant 0 : index
    %c0_9 = arith.constant 0 : index
    %c0_10 = arith.constant 0 : index
    %c16 = arith.constant 16 : index
    %9 = vector.load %arg2[%c0_8, %c0_9, %c0_10, %c16] : memref<1x1x160x256xbf16, #tpu.memory_space<vmem>>, vector<1x1x160x128xbf16>
    %10 = vector.shape_cast %9 : vector<1x1x160x128xbf16> to vector<160x128xbf16>
    %c1 = arith.constant 1 : index
    %c0_11 = arith.constant 0 : index
    %c0_12 = arith.constant 0 : index
    %11 = vector.load %arg3[%c1, %c0_11, %c0_12] : memref<3x16x160xbf16, #tpu.memory_space<vmem>>, vector<1x16x160xbf16>
    %12 = vector.shape_cast %11 : vector<1x16x160xbf16> to vector<16x160xbf16>
    %cst_13 = arith.constant dense<0.000000e+00> : vector<16x128xf32>
    %13 = tpu.matmul %12, %10, %cst_13 {dimension_numbers = #tpu.dot_dimension_numbers<[1], [0], [0], [1], [0, 0, 1, 1], [], []>} : vector<16x160xbf16>, vector<160x128xbf16>, vector<16x128xf32> -> vector<16x128xf32>
    %14 = arith.addf %8, %13 : vector<16x128xf32>
    %c0_14 = arith.constant 0 : index
    %c0_15 = arith.constant 0 : index
    %c0_16 = arith.constant 0 : index
    %c32 = arith.constant 32 : index
    %15 = vector.load %arg2[%c0_14, %c0_15, %c0_16, %c32] : memref<1x1x160x256xbf16, #tpu.memory_space<vmem>>, vector<1x1x160x128xbf16>
    %16 = vector.shape_cast %15 : vector<1x1x160x128xbf16> to vector<160x128xbf16>
    %c2 = arith.constant 2 : index
    %c0_17 = arith.constant 0 : index
    %c0_18 = arith.constant 0 : index
    %17 = vector.load %arg3[%c2, %c0_17, %c0_18] : memref<3x16x160xbf16, #tpu.memory_space<vmem>>, vector<1x16x160xbf16>
    %18 = vector.shape_cast %17 : vector<1x16x160xbf16> to vector<16x160xbf16>
    %cst_19 = arith.constant dense<0.000000e+00> : vector<16x128xf32>
    %19 = tpu.matmul %18, %16, %cst_19 {dimension_numbers = #tpu.dot_dimension_numbers<[1], [0], [0], [1], [0, 0, 1, 1], [], []>} : vector<16x160xbf16>, vector<160x128xbf16>, vector<16x128xf32> -> vector<16x128xf32>
    %20 = arith.addf %14, %19 : vector<16x128xf32>
    %cst_20 = arith.constant 2.000000e-01 : f32
    %21 = vector.broadcast %cst_20 : f32 to vector<16x128xf32>
    %22 = arith.mulf %21, %20 : vector<16x128xf32>
    %23 = arith.maximumf %20, %22 : vector<16x128xf32>
    %24 = arith.truncf %23 : vector<16x128xf32> to vector<16x128xbf16>
    %c0_21 = arith.constant 0 : index
    %c0_22 = arith.constant 0 : index
    %c0_23 = arith.constant 0 : index
    %25 = vector.load %arg5[%c0_21, %c0_22, %c0_23] : memref<1x16x128xbf16, #tpu.memory_space<vmem>>, vector<1x16x128xbf16>
    %26 = vector.shape_cast %25 : vector<1x16x128xbf16> to vector<16x128xbf16>
    %27 = vector.shape_cast %24 : vector<16x128xbf16> to vector<1x16x128xbf16>
    tpu.vector_store %arg5[%c0_21, %c0_22, %c0_23], %27 {strides = array<i32>} : memref<1x16x128xbf16, #tpu.memory_space<vmem>>, vector<1x16x128xbf16>,
    return
  }
  func.func @transform_0(%arg0: i32, %arg1: i32) -> (i32, i32, i32, i32) {
    %c0_i32 = arith.constant 0 : i32
    %c0_i32_0 = arith.constant 0 : i32
    %c0_i32_1 = arith.constant 0 : i32
    return %arg0, %arg1, %c0_i32, %c0_i32_0 : i32, i32, i32, i32
  }
  func.func @transform_1(%arg0: i32, %arg1: i32) -> (i32, i32, i32) {
    %c0_i32 = arith.constant 0 : i32
    %c0_i32_0 = arith.constant 0 : i32
    %c0_i32_1 = arith.constant 0 : i32
    %c0_i32_2 = arith.constant 0 : i32
    return %c0_i32, %c0_i32_0, %c0_i32_1 : i32, i32, i32
  }
  func.func @transform_2(%arg0: i32, %arg1: i32) -> (i32, i32) {
    %c0_i32 = arith.constant 0 : i32
    %c0_i32_0 = arith.constant 0 : i32
    %c0_i32_1 = arith.constant 0 : i32
    return %c0_i32, %c0_i32_0 : i32, i32
  }
  func.func @transform_3(%arg0: i32, %arg1: i32) -> (i32, i32, i32) {
    %c0_i32 = arith.constant 0 : i32
    %c0_i32_0 = arith.constant 0 : i32
    return %arg0, %c0_i32, %arg1 : i32, i32, i32
  }
}

</mosaic_0001>

<bundles_post_ra>
// kernel: global_dis_forward.4
= control target key start
LH: loop header
LB: loop body
LE: loop exit
PB: predicated region body
PF: predicated region fallthrough
CT: control target
= control target key end

     0   :  { %s2549_s12 = smov 0   ;;  %s2551_s13 = smov 0   ;;  %s3055_s0 = inlined_call_operand.vmem [shape: bf16[2,8,30,2304], index: 0, kind: input, shape index: {}]   ;;  %s3056_s1 = inlined_call_operand.vmem [shape: bf16[3,4,30], index: 1, kind: input, shape index: {}]   ;;  %s3057_s2 = inlined_call_operand.vmem [shape: f32[4,1], index: 2, kind: input, shape index: {}]   ;;  %s3058_s3 = inlined_call_operand.vmem [shape: bf16[2,4,16384], index: 3, kind: output, shape index: {}]  }
   0x1   :  { %s2553_s14 = smov 0   ;;  %s2555_s15 = smov 0  }
   0x2   :  { %s2557_s16 = smov 0  }
   0x3 LB: > { %s22_s17 = sadd.s32 1, %s2517_s14  ;;  %s25_s18 = sadd.s32 1, %s2521_s15  ;;  %s2525_s16 = sphi %s2557_s16, %s13_s16   ;;  %s2521_s15 = sphi %s2555_s15, %s3063_s15   ;;  %s2517_s14 = sphi %s2553_s14, %s3062_s14   ;;  %s2513_s13 = sphi %s2551_s13, %s3061_s13   ;;  %s2509_s12 = sphi %s2549_s12, %s3060_s12  }
   0x4   : > { %p23_p0 = scmp.ge.s32.totalorder %s22_s17, 8  ;;  %p2172_p1 = scmp.ge.s32.totalorder %s2525_s16, 1 }
   0x5   : > { %p157_p2 = scmp.lt.s32.totalorder %s2525_s16, 17 }
   0x6   : > { %s3065_s17 = smov (%p23_p0, %s22_s17), 0  ;;  %s3067_s18 = smov (!%p23_p0, %s25_s18), %s2521_s15 }
   0x7   : > { %p158_p3 = pnand %p2172_p1, %p157_p2  ;;  %p27_p4 = scmp.ge.s32.totalorder %s3067_s18, 2 }
   0x8   : > { %p189_p5 = scmp.lt.s32.totalorder (!%p158_p3), %s2513_s13, 1  ;;  %p191_p6 = scmp.lt.s32.totalorder (!%p158_p3), %s2509_s12, 7 }
   0x9   : > { %s3069_s18 = smov (%p27_p4, %s3067_s18), 0  ;;  %161 = sbr.rel (%p158_p3) target bundleno = 330 (0x14a), region = 32 }
   0xa   : > { %s2174_s8 = sshll.u32 (!%p158_p3), %s2509_s12, 4 }
   0xb   : > { %p2977_p7 = scmp.lt.s32.totalorder (!%p158_p3), %s2174_s8, 127 }
   0xe   : > { %v2527_v0 = vmov 0   ;;  %s3071_s13 = smov (!%p189_p5, %s2513_s13), 1  ;;  %v209_v1 = vld [vmem:[%s3057_s2] sm:$0xf]  ;;  %vm396_vm0 = vcmask 1046528   ;;  %vm392_vm1 = vcmask 244736  }
   0xf   : > { %477 = vmatprep.mubr.bf16.mxu0 %v2527_v0  ;;  %518 = vmatprep.mubr.bf16.mxu1 %v2527_v0  ;;  %s192_s21 = scalar_select %p191_p6, %s2509_s12, 7  ;;  %v2633_v22 = vld [vmem:[%s3056_s1] sm:$0x3] }
  0x10   : > { %2377 = vset.pattern.permute.xlu0 %v2527_v0  ;;  %s2334_s22 = smul.u32 576, %s3071_s13  ;;  %s3073_s8 = smov (!%p2977_p7, %s2174_s8), 127 }
  0x11   : > { %212 = vperm.xlu0 %2377, %v209_v1   ;;  %s2333_s23 = smul.u32 72, %s192_s21  ;;  %s2175_s10 = sshll.u32 %s3071_s13, 7 }
  0x12   : > { %s204_s11 = sadd.s32 %s2175_s10, %s3073_s8 }
  0x13   : > { %s195_s24 = sadd.s32 %s2334_s22, %s2333_s23  ;;  %s2176_s12 = sshll.u32 %s204_s11, 1 }
  0x14   : > { %s2173_s25 = sshll.u32 %s195_s24, 2  ;;  %s3006_s20 = scalar_lea.vmem %s3058_s3, %s2176_s12 }
  0x15   : > { %s2595_s28 = scalar_lea.vmem %s3055_s0, %s2173_s25 }
  0x16   : > { %v2378_v2 = vld [vmem:[%s2595_s28 + $0x94] ss:$72 sps:$4 sm:$0x7f]   ;;  %v240_v4 = vld [vmem:[%s2595_s28 + $0xe0] sm:$0x77]  ;;  %v2622_v16 = vld [vmem:[%s2595_s28 + $0xa8] sm:$0xff] }
  0x17   : > { %v2599_v3 = vld [vmem:[%s2595_s28 + $0x98] sm:$0xff]  ;;  %2209 = vmatprep.subr.msk.bf16.mxu0 %vm396_vm0, %v2378_v2  ;;  %v2383_v8 = vld [vmem:[%s2595_s28 + $0x4] ss:$72 sps:$4 sm:$0xff]   ;;  %v2387_v12 = vld [vmem:[%s2595_s28] ss:$72 sps:$4 sm:$0xff]  }
  0x18   : > { %v2381_v5 = vld [vmem:[%s2595_s28 + $0x90] ss:$72 sps:$4 sm:$0x7f]   ;;  %v2196_v6 = vcombine.high %v2599_v3, %v240_v4  ;;  %v2195_v7 = vcombine.low %v2599_v3, %v240_v4  ;;  %v2609_v10 = vld [vmem:[%s2595_s28 + $0xc] ss:$72 sps:$4 sm:$0xff]   ;;  %v2618_v14 = vld [vmem:[%s2595_s28 + $0xa0] sm:$0xff] }
  0x19   : > { %v398_v9 = vsel %vm396_vm0, %v2381_v5, 0  ;;  %v2615_v13 = vld [vmem:[%s2595_s28 + $0x8] ss:$72 sps:$4 sm:$0xff]   ;;  %v2639_v24 = vld [vmem:[%s2595_s28 + $0x14] ss:$72 sps:$4 sm:$0xff]   ;;  %v2680_v39 = vld [vmem:[%s2595_s28 + $0xc0] sm:$0xff] }
  0x1a   : > { %2211 = vmatprep.subr.msk.bf16.mxu1 %vm396_vm0, %v2196_v6  ;;  %458 = vmatpush1.bf16.msra.mxu0 %v398_v9  ;;  %v404_v11 = vsel %vm396_vm0, %v2195_v7, 0  ;;  %v241_v15 = vld [vmem:[%s2595_s28 + $0xe8] sm:$0x77]  ;;  %v242_v17 = vld [vmem:[%s2595_s28 + $0xf0] sm:$0x77]  ;;  %v2653_v29 = vld [vmem:[%s2595_s28 + $0xb8] sm:$0xff] }
  0x1b   : > { %499 = vmatpush1.bf16.msra.mxu1 %v404_v11  ;;  %459 = vmatprep.subr.bf16.mxu0 %v2383_v8  ;;  %v2198_v18 = vcombine.high %v2618_v14, %v241_v15  ;;  %v2200_v19 = vcombine.high %v2622_v16, %v242_v17  ;;  %v2197_v20 = vcombine.low %v2618_v14, %v241_v15  ;;  %v2642_v25 = vld [vmem:[%s2595_s28 + $0x1c] ss:$72 sps:$4 sm:$0xff]   ;;  %v2645_v26 = vld [vmem:[%s2595_s28 + $0xb0] sm:$0xff]  ;;  %v2663_v32 = vld [vmem:[%s2595_s28 + $0x18] ss:$72 sps:$4 sm:$0xff]  }
  0x1c   : > { %500 = vmatprep.subr.bf16.mxu1 %v2609_v10  ;;  %v2199_v21 = vcombine.low %v2622_v16, %v242_v17  ;;  %v243_v28 = vld [vmem:[%s2595_s28 + $0xf8] sm:$0x77]  ;;  %v244_v30 = vld [vmem:[%s2595_s28 + $0x100] sm:$0x77]  ;;  %v2677_v38 = vld [vmem:[%s2595_s28 + $0x2c] ss:$72 sps:$4 sm:$0xff]  }
  0x1d   : > { %v410_v23 = vsel %vm396_vm0, %v2197_v20, 0  ;;  %v2659_v31 = vld [vmem:[%s2595_s28 + $0x10] ss:$72 sps:$4 sm:$0xff]   ;;  %v2202_v33 = vcombine.high %v2645_v26, %v243_v28  ;;  %v2201_v34 = vcombine.low %v2645_v26, %v243_v28  ;;  %v2204_v35 = vcombine.high %v2653_v29, %v244_v30  ;;  %v2673_v37 = vld [vmem:[%s2595_s28 + $0x24] ss:$72 sps:$4 sm:$0xff]  }
  0x1e   : > { %460 = vmatpush1.bf16.msra.mxu0 %v2387_v12  ;;  %v416_v27 = vsel %vm396_vm0, %v2199_v21, 0  ;;  %v2203_v36 = vcombine.low %v2653_v29, %v244_v30  ;;  %v245_v42 = vld [vmem:[%s2595_s28 + $0x108] sm:$0x77]  ;;  %v246_v44 = vld [vmem:[%s2595_s28 + $0x110] sm:$0x77] }
  0x1f   : > { %501 = vmatpush1.bf16.msra.mxu1 %v2615_v13  ;;  %2213 = vmatprep.subr.msk.bf16.mxu0 %vm396_vm0, %v2198_v18  ;;  %v422_v40 = vsel %vm396_vm0, %v2201_v34, 0  ;;  %v2691_v43 = vld [vmem:[%s2595_s28 + $0xc8] sm:$0xff]  ;;  %v2206_v47 = vcombine.high %v2680_v39, %v245_v42  ;;  %v2205_v48 = vcombine.low %v2680_v39, %v245_v42  ;;  %v2715_v52 = vld [vmem:[%s2595_s28 + $0x34] ss:$72 sps:$4 sm:$0xff]   ;;  %v2720_v54 = vld [vmem:[%s2595_s28 + $0x30] ss:$72 sps:$4 sm:$0xff]  }
  0x20   : > { %2215 = vmatprep.subr.msk.bf16.mxu1 %vm396_vm0, %v2200_v19  ;;  %v428_v41 = vsel %vm396_vm0, %v2203_v36, 0  ;;  %v2697_v45 = vld [vmem:[%s2595_s28 + $0x20] ss:$72 sps:$4 sm:$0xff]   ;;  %v2208_v49 = vcombine.high %v2691_v43, %v246_v44  ;;  %v2207_v50 = vcombine.low %v2691_v43, %v246_v44  ;;  %v2723_v55 = vld [vmem:[%s2595_s28 + $0x3c] ss:$72 sps:$4 sm:$0xff]  }
  0x21   : > { %2210 = vmatmul.mubr.msk.bf16.vlgmr.msra.gmra.mxu0 %vm392_vm1, %v2633_v22  ;;  %v2701_v46 = vld [vmem:[%s2595_s28 + $0x28] ss:$72 sps:$4 sm:$0xff]   ;;  %v434_v51 = vsel %vm396_vm0, %v2205_v48, 0  ;;  %v2728_v56 = vld [vmem:[%s2595_s28 + $0x38] ss:$72 sps:$4 sm:$0xff]  }
  0x22   : > { %2212 = vmatmul.mubr.msk.bf16.vlgmr.msra.gmra.mxu1 %vm392_vm1, %v2633_v22  ;;  %540 = vmatpush1.bf16.msra.mxu0 %v410_v23  ;;  %v440_v53 = vsel %vm396_vm0, %v2207_v50, 0  ;;  %v2419_v57 = vld [vmem:[%s2595_s28 + $0x98] ss:$72 sps:$4 sm:$0x7f]   ;;  %v2427_v62 = vld [vmem:[%s2595_s28 + $0x8] ss:$72 sps:$4 sm:$0xff]  }
  0x23   : > { %581 = vmatpush1.bf16.msra.mxu1 %v416_v27  ;;  %541 = vmatprep.subr.bf16.mxu0 %v2639_v24  ;;  %v2423_v58 = vld [vmem:[%s2595_s28 + $0x94] ss:$72 sps:$4 sm:$0x7f]   ;;  %v2421_v59 = vld [vmem:[%s2595_s28 + $0xa0] ss:$72 sps:$4 sm:$0x7f]  }
  0x24   : > { %582 = vmatprep.subr.bf16.mxu1 %v2642_v25  ;;  %559 = vmatprep.mubr.bf16.mxu0 %v2527_v0  ;;  %v2424_v60 = vld [vmem:[%s2595_s28 + $0x9c] ss:$72 sps:$4 sm:$0x7f]   ;;  %v971_v61 = vsel %vm396_vm0, %v2423_v58, 0  ;;  %v2430_v2 = vld [vmem:[%s2595_s28 + $0x10] ss:$72 sps:$4 sm:$0xff]  }
  0x25   : > { %600 = vmatprep.mubr.bf16.mxu1 %v2527_v0  ;;  %v977_v63 = vsel %vm396_vm0, %v2424_v60, 0  ;;  %v2425_v1 = vld [vmem:[%s2595_s28 + $0x4] ss:$72 sps:$4 sm:$0xff]   ;;  %v2431_v5 = vld [vmem:[%s2595_s28 + $0xa8] ss:$72 sps:$4 sm:$0x7f]  }
  0x26   : > { %542 = vmatpush1.bf16.msra.mxu0 %v2659_v31  ;;  %v2428_v4 = vld [vmem:[%s2595_s28 + $0xc] ss:$72 sps:$4 sm:$0xff]   ;;  %v2433_v7 = vld [vmem:[%s2595_s28 + $0xb0] ss:$72 sps:$4 sm:$0x7f]  }
  0x27   : > { %583 = vmatpush1.bf16.msra.mxu1 %v2663_v32  ;;  %2217 = vmatprep.subr.msk.bf16.mxu0 %vm396_vm0, %v2202_v33  ;;  %v2435_v6 = vld [vmem:[%s2595_s28 + $0xa4] ss:$72 sps:$4 sm:$0x7f]   ;;  %v2763_v9 = vld [vmem:[%s3056_s1 + $0x2] sm:$0x3] }
  0x28   : > { %2219 = vmatprep.subr.msk.bf16.mxu1 %vm396_vm0, %v2204_v35  ;;  %v2436_v8 = vld [vmem:[%s2595_s28 + $0xac] ss:$72 sps:$4 sm:$0x7f]   ;;  %v983_v11 = vsel %vm396_vm0, %v2435_v6, 0  ;;  %v2439_v12 = vld [vmem:[%s2595_s28 + $0x18] ss:$72 sps:$4 sm:$0xff]  }
  0x29   : > { %2214 = vmatmul.mubr.msk.bf16.vlgmr.msra.gmra.mxu0 %vm392_vm1, %v2633_v22  ;;  %v2768_v15 = vld [vmem:[%s2595_s28 + $0xf0] sm:$0x77]  ;;  %v2442_v17 = vld [vmem:[%s2595_s28 + $0x20] ss:$72 sps:$4 sm:$0xff]   ;;  %v989_v20 = vsel %vm396_vm0, %v2436_v8, 0 }
  0x2a   : > { %2216 = vmatmul.mubr.msk.bf16.vlgmr.msra.gmra.mxu1 %vm392_vm1, %v2633_v22  ;;  %622 = vmatpush1.bf16.msra.mxu0 %v422_v40  ;;  %v2773_v18 = vld [vmem:[%s2595_s28 + $0x100] sm:$0x77]  ;;  %v2776_v19 = vld [vmem:[%s2595_s28 + $0x110] sm:$0x77]  ;;  %v2295_v21 = vcombine.low %v2622_v16, %v2768_v15 }
  0x2b   : > { %663 = vmatpush1.bf16.msra.mxu1 %v428_v41  ;;  %623 = vmatprep.subr.bf16.mxu0 %v2673_v37  ;;  %v2437_v23 = vld [vmem:[%s2595_s28 + $0x14] ss:$72 sps:$4 sm:$0xff]   ;;  %v2443_v28 = vld [vmem:[%s2595_s28 + $0xb8] ss:$72 sps:$4 sm:$0x7f]   ;;  %v2303_v33 = vcombine.low %v2691_v43, %v2776_v19 }
  0x2c   : > { %664 = vmatprep.subr.bf16.mxu1 %v2677_v38  ;;  %641 = vmatprep.mubr.bf16.mxu0 %v2527_v0  ;;  %v2440_v27 = vld [vmem:[%s2595_s28 + $0x1c] ss:$72 sps:$4 sm:$0xff]   ;;  %v2445_v34 = vld [vmem:[%s2595_s28 + $0xc0] ss:$72 sps:$4 sm:$0x7f]  }
  0x2d   : > { %682 = vmatprep.mubr.bf16.mxu1 %v2527_v0  ;;  %v2447_v30 = vld [vmem:[%s2595_s28 + $0xb4] ss:$72 sps:$4 sm:$0x7f]   ;;  %v2451_v40 = vld [vmem:[%s2595_s28 + $0x28] ss:$72 sps:$4 sm:$0xff]  }
  0x2e   : > { %624 = vmatpush1.bf16.msra.mxu0 %v2697_v45  ;;  %v2448_v35 = vld [vmem:[%s2595_s28 + $0xbc] ss:$72 sps:$4 sm:$0x7f]   ;;  %v995_v36 = vsel %vm396_vm0, %v2447_v30, 0  ;;  %v2454_v42 = vld [vmem:[%s2595_s28 + $0x30] ss:$72 sps:$4 sm:$0xff]  }
  0x2f   : > { %665 = vmatpush1.bf16.msra.mxu1 %v2701_v46  ;;  %2221 = vmatprep.subr.msk.bf16.mxu0 %vm396_vm0, %v2206_v47  ;;  %v1001_v41 = vsel %vm396_vm0, %v2448_v35, 0  ;;  %v2449_v44 = vld [vmem:[%s2595_s28 + $0x24] ss:$72 sps:$4 sm:$0xff]   ;;  %v2455_v48 = vld [vmem:[%s2595_s28 + $0xc8] ss:$72 sps:$4 sm:$0x7f]  }
  0x30   : > { %2223 = vmatprep.subr.msk.bf16.mxu1 %vm396_vm0, %v2208_v49  ;;  %v2452_v47 = vld [vmem:[%s2595_s28 + $0x2c] ss:$72 sps:$4 sm:$0xff]   ;;  %v2457_v50 = vld [vmem:[%s2595_s28 + $0xd0] ss:$72 sps:$4 sm:$0x7f]  }
  0x31   : > { %2218 = vmatmul.mubr.msk.bf16.vlgmr.msra.gmra.mxu0 %vm392_vm1, %v2633_v22  ;;  %v2459_v49 = vld [vmem:[%s2595_s28 + $0xc4] ss:$72 sps:$4 sm:$0x7f]  }
  0x32   : > { %2220 = vmatmul.mubr.msk.bf16.vlgmr.msra.gmra.mxu1 %vm392_vm1, %v2633_v22  ;;  %704 = vmatpush1.bf16.msra.mxu0 %v434_v51  ;;  %v2460_v51 = vld [vmem:[%s2595_s28 + $0xcc] ss:$72 sps:$4 sm:$0x7f]   ;;  %v1386_v60 = vld [vmem:[%s2595_s28 + $0xe0] sm:$0x77] }
  0x33   : > { %745 = vmatpush1.bf16.msra.mxu1 %v440_v53  ;;  %705 = vmatprep.subr.bf16.mxu0 %v2715_v52  ;;  %v1007_v53 = vsel %vm396_vm0, %v2459_v49, 0  ;;  %v1013_v58 = vsel %vm396_vm0, %v2460_v51, 0 }
  0x34   : > { %746 = vmatprep.subr.bf16.mxu1 %v2723_v55  ;;  %723 = vmatprep.mubr.bf16.mxu0 %v2527_v0 }
  0x35   : > { %764 = vmatprep.mubr.bf16.mxu1 %v2527_v0 }
  0x36   : > { %706 = vmatpush1.bf16.msra.mxu0 %v2720_v54 }
  0x37   : > { %747 = vmatpush1.bf16.msra.mxu1 %v2728_v56  ;;  %2258 = vmatprep.subr.msk.bf16.mxu0 %vm396_vm0, %v2419_v57  ;;  %v2463_v57 = vld [vmem:[%s2595_s28 + $0x38] ss:$72 sps:$4 sm:$0xff]  }
  0x38   : > { %2260 = vmatprep.subr.msk.bf16.mxu1 %vm396_vm0, %v2421_v59  ;;  %v2466_v59 = vld [vmem:[%s2595_s28 + $0x40] ss:$72 sps:$4 sm:$0xff]  }
  0x39   : > { %2222 = vmatmul.mubr.msk.bf16.vlgmr.msra.gmra.mxu0 %vm392_vm1, %v2633_v22 }
  0x3a   : > { %2224 = vmatmul.mubr.msk.bf16.vlgmr.msra.gmra.mxu1 %vm392_vm1, %v2633_v22  ;;  %1031 = vmatpush1.bf16.msra.mxu0 %v971_v61  ;;  %v2299_v22 = vcombine.low %v2653_v29, %v2773_v18  ;;  %v1387_v61 = vld [vmem:[%s2595_s28 + $0xe8] sm:$0x77] }
  0x3b   : > { %1072 = vmatpush1.bf16.msra.mxu1 %v977_v63  ;;  %1032 = vmatprep.subr.bf16.mxu0 %v2427_v62  ;;  %v2461_v62 = vld [vmem:[%s2595_s28 + $0x34] ss:$72 sps:$4 sm:$0xff]  }
  0x3c   : > { %1073 = vmatprep.subr.bf16.mxu1 %v2430_v2  ;;  %1050 = vmatprep.mubr.bf16.mxu0 %v2527_v0  ;;  %v2464_v63 = vld [vmem:[%s2595_s28 + $0x3c] ss:$72 sps:$4 sm:$0xff]   ;;  %v2291_v2 = vcombine.low %v2599_v3, %v1386_v60 }
  0x3d   : > { %1091 = vmatprep.mubr.bf16.mxu1 %v2527_v0 }
  0x3e   : > { %1033 = vmatpush1.bf16.msra.mxu0 %v2425_v1  ;;  %v2292_v1 = vcombine.high %v2599_v3, %v1386_v60  ;;  %v1544_v6 = vsel %vm396_vm0, %v2291_v2, 0  ;;  %v1389_v3 = vld [vmem:[%s2595_s28 + $0xf8] sm:$0x77] }
  0x3f   : > { %1074 = vmatpush1.bf16.msra.mxu1 %v2428_v4  ;;  %2262 = vmatprep.subr.msk.bf16.mxu0 %vm396_vm0, %v2431_v5  ;;  %v2294_v4 = vcombine.high %v2618_v14, %v1387_v61  ;;  %v2293_v5 = vcombine.low %v2618_v14, %v1387_v61  ;;  %v2296_v14 = vcombine.high %v2622_v16, %v2768_v15 }
  0x40   : > { %2264 = vmatprep.subr.msk.bf16.mxu1 %vm396_vm0, %v2433_v7  ;;  %v2298_v8 = vcombine.high %v2645_v26, %v1389_v3 }
  0x41   : > { %2259 = vmatmul.mubr.msk.bf16.vlgmr.msra.gmra.mxu0 %vm392_vm1, %v2763_v9  ;;  %v1550_v7 = vsel %vm396_vm0, %v2293_v5, 0 }
  0x42   : > { %2261 = vmatmul.mubr.msk.bf16.vlgmr.msra.gmra.mxu1 %vm392_vm1, %v2763_v9  ;;  %1113 = vmatpush1.bf16.msra.mxu0 %v983_v11  ;;  %v2297_v11 = vcombine.low %v2645_v26, %v1389_v3  ;;  %v2300_v26 = vcombine.high %v2653_v29, %v2773_v18  ;;  %v2480_v29 = vld [vmem:[%s2595_s28 + $0xd4] ss:$72 sps:$4 sm:$0x7f]  }
  0x43   : > { %1154 = vmatpush1.bf16.msra.mxu1 %v989_v20  ;;  %1114 = vmatprep.subr.bf16.mxu0 %v2439_v12 }
  0x44   : > { %1155 = vmatprep.subr.bf16.mxu1 %v2442_v17  ;;  %1132 = vmatprep.mubr.bf16.mxu0 %v2527_v0 }
  0x45   : > { %1173 = vmatprep.mubr.bf16.mxu1 %v2527_v0 }
  0x46   : > { %1115 = vmatpush1.bf16.msra.mxu0 %v2437_v23 }
  0x47   : > { %1156 = vmatpush1.bf16.msra.mxu1 %v2440_v27  ;;  %2266 = vmatprep.subr.msk.bf16.mxu0 %vm396_vm0, %v2443_v28 }
  0x48   : > { %2268 = vmatprep.subr.msk.bf16.mxu1 %vm396_vm0, %v2445_v34 }
  0x49   : > { %2263 = vmatmul.mubr.msk.bf16.vlgmr.msra.gmra.mxu0 %vm392_vm1, %v2763_v9 }
  0x4a   : > { %2265 = vmatmul.mubr.msk.bf16.vlgmr.msra.gmra.mxu1 %vm392_vm1, %v2763_v9  ;;  %1195 = vmatpush1.bf16.msra.mxu0 %v995_v36 }
  0x4b   : > { %1236 = vmatpush1.bf16.msra.mxu1 %v1001_v41  ;;  %1196 = vmatprep.subr.bf16.mxu0 %v2451_v40 }
  0x4c   : > { %1237 = vmatprep.subr.bf16.mxu1 %v2454_v42  ;;  %1214 = vmatprep.mubr.bf16.mxu0 %v2527_v0 }
  0x4d   : > { %1255 = vmatprep.mubr.bf16.mxu1 %v2527_v0 }
  0x4e   : > { %1197 = vmatpush1.bf16.msra.mxu0 %v2449_v44 }
  0x4f   : > { %1238 = vmatpush1.bf16.msra.mxu1 %v2452_v47  ;;  %2270 = vmatprep.subr.msk.bf16.mxu0 %vm396_vm0, %v2455_v48 }
  0x50   : > { %2272 = vmatprep.subr.msk.bf16.mxu1 %vm396_vm0, %v2457_v50 }
  0x51   : > { %2267 = vmatmul.mubr.msk.bf16.vlgmr.msra.gmra.mxu0 %vm392_vm1, %v2763_v9 }
  0x52   : > { %2269 = vmatmul.mubr.msk.bf16.vlgmr.msra.gmra.mxu1 %vm392_vm1, %v2763_v9  ;;  %1277 = vmatpush1.bf16.msra.mxu0 %v1007_v53 }
  0x53   : > { %1318 = vmatpush1.bf16.msra.mxu1 %v1013_v58  ;;  %1278 = vmatprep.subr.bf16.mxu0 %v2463_v57 }
  0x54   : > { %1319 = vmatprep.subr.bf16.mxu1 %v2466_v59  ;;  %1296 = vmatprep.mubr.bf16.mxu0 %v2527_v0 }
  0x55   : > { %1337 = vmatprep.mubr.bf16.mxu1 %v2527_v0 }
  0x56   : > { %1279 = vmatpush1.bf16.msra.mxu0 %v2461_v62 }
  0x57   : > { %1320 = vmatpush1.bf16.msra.mxu1 %v2464_v63  ;;  %2307 = vmatprep.subr.msk.bf16.mxu0 %vm396_vm0, %v2292_v1 }
  0x58   : > { %2309 = vmatprep.subr.msk.bf16.mxu1 %vm396_vm0, %v2294_v4 }
  0x59   : > { %2271 = vmatmul.mubr.msk.bf16.vlgmr.msra.gmra.mxu0 %vm392_vm1, %v2763_v9 }
  0x5a   : > { %2273 = vmatmul.mubr.msk.bf16.vlgmr.msra.gmra.mxu1 %vm392_vm1, %v2763_v9  ;;  %1604 = vmatpush1.bf16.msra.mxu0 %v1544_v6  ;;  %v2274_v9 = vld [vmem:[%s3056_s1 + $0x4] sm:$0x3] }
  0x5b   : > { %1645 = vmatpush1.bf16.msra.mxu1 %v1550_v7  ;;  %1605 = vmatprep.subr.bf16.mxu0 %v2609_v10  ;;  %v1556_v10 = vsel %vm396_vm0, %v2295_v21, 0 }
  0x5c   : > { %1646 = vmatprep.subr.bf16.mxu1 %v2639_v24  ;;  %1623 = vmatprep.mubr.bf16.mxu0 %v2527_v0  ;;  %v1562_v24 = vsel %vm396_vm0, %v2297_v11, 0 }
  0x5d   : > { %1664 = vmatprep.mubr.bf16.mxu1 %v2527_v0 }
  0x5e   : > { %1606 = vmatpush1.bf16.msra.mxu0 %v2615_v13  ;;  %v1391_v13 = vld [vmem:[%s2595_s28 + $0x108] sm:$0x77] }
  0x5f   : > { %1647 = vmatpush1.bf16.msra.mxu1 %v2659_v31  ;;  %2311 = vmatprep.subr.msk.bf16.mxu0 %vm396_vm0, %v2296_v14  ;;  %v2302_v16 = vcombine.high %v2680_v39, %v1391_v13  ;;  %v2301_v31 = vcombine.low %v2680_v39, %v1391_v13  ;;  %v2483_v39 = vld [vmem:[%s2595_s28 + $0xd0] ss:$72 sps:$4 sm:$0x7f]  }
  0x60   : > { %2313 = vmatprep.subr.msk.bf16.mxu1 %vm396_vm0, %v2298_v8 }
  0x61   : > { %2308 = vmatmul.mubr.msk.bf16.vlgmr.msra.gmra.mxu0 %vm392_vm1, %v2274_v9 }
  0x62   : > { %2310 = vmatmul.mubr.msk.bf16.vlgmr.msra.gmra.mxu1 %vm392_vm1, %v2274_v9  ;;  %1686 = vmatpush1.bf16.msra.mxu0 %v1556_v10 }
  0x63   : > { %1727 = vmatpush1.bf16.msra.mxu1 %v1562_v24  ;;  %1687 = vmatprep.subr.bf16.mxu0 %v2642_v25  ;;  %v1568_v25 = vsel %vm396_vm0, %v2299_v22, 0 }
  0x64   : > { %1728 = vmatprep.subr.bf16.mxu1 %v2673_v37  ;;  %1705 = vmatprep.mubr.bf16.mxu0 %v2527_v0  ;;  %v1574_v37 = vsel %vm396_vm0, %v2301_v31, 0 }
  0x65   : > { %1746 = vmatprep.mubr.bf16.mxu1 %v2527_v0 }
  0x66   : > { %1688 = vmatpush1.bf16.msra.mxu0 %v2663_v32  ;;  %v2304_v32 = vcombine.high %v2691_v43, %v2776_v19 }
  0x67   : > { %1729 = vmatpush1.bf16.msra.mxu1 %v2697_v45  ;;  %2315 = vmatprep.subr.msk.bf16.mxu0 %vm396_vm0, %v2300_v26  ;;  %v1586_v45 = vsel %vm396_vm0, %v2483_v39, 0 }
  0x68   : > { %2317 = vmatprep.subr.msk.bf16.mxu1 %vm396_vm0, %v2302_v16 }
  0x69   : > { %2312 = vmatmul.mubr.msk.bf16.vlgmr.msra.gmra.mxu0 %vm392_vm1, %v2274_v9 }
  0x6a   : > { %2314 = vmatmul.mubr.msk.bf16.vlgmr.msra.gmra.mxu1 %vm392_vm1, %v2274_v9  ;;  %1768 = vmatpush1.bf16.msra.mxu0 %v1568_v25 }
  0x6b   : > { %1809 = vmatpush1.bf16.msra.mxu1 %v1574_v37  ;;  %1769 = vmatprep.subr.bf16.mxu0 %v2677_v38  ;;  %v1580_v38 = vsel %vm396_vm0, %v2303_v33, 0 }
  0x6c   : > { %1810 = vmatprep.subr.bf16.mxu1 %v2715_v52  ;;  %1787 = vmatprep.mubr.bf16.mxu0 %v2527_v0  ;;  %v2486_v52 = vld [vmem:[%s2595_s28 + $0x44] ss:$72 sps:$4 sm:$0xff]  }
  0x6d   : > { %1828 = vmatprep.mubr.bf16.mxu1 %v2527_v0 }
  0x6e   : > { %1770 = vmatpush1.bf16.msra.mxu0 %v2701_v46  ;;  %v2484_v46 = vld [vmem:[%s2595_s28 + $0x40] ss:$72 sps:$4 sm:$0xff]  }
  0x6f   : > { %1811 = vmatpush1.bf16.msra.mxu1 %v2720_v54  ;;  %2319 = vmatprep.subr.msk.bf16.mxu0 %vm396_vm0, %v2304_v32 }
  0x70   : > { %2321 = vmatprep.subr.msk.bf16.mxu1 %vm396_vm0, %v2480_v29 }
  0x71   : > { %2316 = vmatmul.mubr.msk.bf16.vlgmr.msra.gmra.mxu0 %vm392_vm1, %v2274_v9 }
  0x72   : > { %2318 = vmatmul.mubr.msk.bf16.vlgmr.msra.gmra.mxu1 %vm392_vm1, %v2274_v9  ;;  %1850 = vmatpush1.bf16.msra.mxu0 %v1580_v38 }
  0x73   : > { %1891 = vmatpush1.bf16.msra.mxu1 %v1586_v45  ;;  %1851 = vmatprep.subr.bf16.mxu0 %v2723_v55 }
  0x74   : > { %1892 = vmatprep.subr.bf16.mxu1 %v2486_v52  ;;  %1869 = vmatprep.mubr.bf16.mxu0 %v2527_v0 }
  0x75   : > { %1910 = vmatprep.mubr.bf16.mxu1 %v2527_v0 }
  0x76   : > { %1852 = vmatpush1.bf16.msra.mxu0 %v2728_v56 }
  0x77   : > { %1893 = vmatpush1.bf16.msra.mxu1 %v2484_v46 }
  0x79   : > { %2320 = vmatmul.mubr.msk.bf16.vlgmr.msra.gmra.mxu0 %vm392_vm1, %v2274_v9 }
  0x7a   : > { %2322 = vmatmul.mubr.msk.bf16.vlgmr.msra.gmra.mxu1 %vm392_vm1, %v2274_v9 }
  0x8c   : > { %v2964_v29 = vpop.permute.xlu0 %212 }
  0xe1   : > { %v2914_v43 = vpop.f32.mrf.mxu0 }
  0xe2   : > { %v2916_v54 = vpop.f32.mrf.mxu1  ;;  %v773_v52 = vadd.f32 %v2914_v43, %v2964_v29 }
  0xe3   : > { %v2918_v12 = vpop.f32.mrf.mxu0 }
  0xe4   : > { %v2920_v55 = vpop.f32.mrf.mxu1 }
  0xe5   : > { %v483_v15 = vpop.f32.mrf.mxu0  ;;  %v776_v43 = vadd.f32 %v2920_v55, %v2964_v29 }
  0xe6   : > { %v524_v17 = vpop.f32.mrf.mxu1  ;;  %v775_v15 = vadd.f32 %v2916_v54, %v2964_v29 }
  0xe7   : > { %v484_v18 = vpop.f32.mrf.mxu0 }
  0xe8   : > { %v525_v19 = vpop.f32.mrf.mxu1  ;;  %v2528_v18 = vmov 1983009808  }
  0xe9   : > { %v2922_v0 = vpop.f32.mrf.mxu0  ;;  %v2002_v19 = vunpack.c.l.s4 %v2528_v18 }
  0xea   : > { %v2924_v56 = vpop.f32.mrf.mxu1 }
  0xeb   : > { %v2926_v20 = vpop.f32.mrf.mxu0 }
  0xec   : > { %v2928_v21 = vpop.f32.mrf.mxu1 }
  0xed   : > { %v565_v22 = vpop.f32.mrf.mxu0 }
  0xee   : > { %v606_v23 = vpop.f32.mrf.mxu1  ;;  %v2004_v22 = vlaneseq }
  0xef   : > { %v566_v27 = vpop.f32.mrf.mxu0  ;;  %v774_v23 = vadd.f32 %v2918_v12, %v2964_v29  ;;  %v2003_v12 = vunpack.c.0.s8 %v2002_v19 }
  0xf0   : > { %v607_v28 = vpop.f32.mrf.mxu1 }
  0xf1   : > { %v2930_v30 = vpop.f32.mrf.mxu0 }
  0xf2   : > { %v2932_v33 = vpop.f32.mrf.mxu1 }
  0xf3   : > { %v2934_v34 = vpop.f32.mrf.mxu0 }
  0xf4   : > { %v2936_v35 = vpop.f32.mrf.mxu1 }
  0xf5   : > { %v647_v36 = vpop.f32.mrf.mxu0 }
  0xf6   : > { %v688_v40 = vpop.f32.mrf.mxu1 }
  0xf7   : > { %v648_v41 = vpop.f32.mrf.mxu0 }
  0xf8   : > { %v689_v42 = vpop.f32.mrf.mxu1 }
  0xf9   : > { %v2938_v44 = vpop.f32.mrf.mxu0 }
  0xfa   : > { %v2940_v47 = vpop.f32.mrf.mxu1 }
  0xfb   : > { %v2942_v48 = vpop.f32.mrf.mxu0 }
  0xfc   : > { %v2944_v49 = vpop.f32.mrf.mxu1 }
  0xfd   : > { %v729_v50 = vpop.f32.mrf.mxu0 }
  0xfe   : > { %v770_v51 = vpop.f32.mrf.mxu1 }
  0xff   : > { %v730_v53 = vpop.f32.mrf.mxu0 }
 0x100   : > { %v771_v57 = vpop.f32.mrf.mxu1 }
 0x101   : > { %v1052_v58 = vpop.f32.mrf.mxu0  ;;  %v2005_v57 = vshrl.u32 %v2004_v22, 7 }
 0x102   : > { %v1093_v59 = vpop.f32.mrf.mxu1  ;;  %v1346_v27 = vadd.f32 %v1052_v58, %v773_v52 }
 0x103   : > { %v1054_v60 = vpop.f32.mrf.mxu0  ;;  %v1348_v36 = vadd.f32 %v1093_v59, %v775_v15  ;;  %v777_v59 = vadd.f32 %v2922_v0, %v2964_v29  ;;  %v780_v0 = vadd.f32 %v2928_v21, %v2964_v29 }
 0x104   : > { %v1095_v61 = vpop.f32.mrf.mxu1  ;;  %v1347_v40 = vadd.f32 %v1054_v60, %v774_v23 }
 0x105   : > { %v1056_v62 = vpop.f32.mrf.mxu0  ;;  %v1349_v50 = vadd.f32 %v1095_v61, %v776_v43  ;;  %v779_v61 = vadd.f32 %v2924_v56, %v2964_v29 }
 0x106   : > { %v1097_v63 = vpop.f32.mrf.mxu1 }
 0x107   : > { %v1057_v1 = vpop.f32.mrf.mxu0 }
 0x108   : > { %v1098_v2 = vpop.f32.mrf.mxu1 }
 0x109   : > { %v1134_v4 = vpop.f32.mrf.mxu0 }
 0x10a   : > { %v2946_v5 = vpop.f32.mrf.mxu1 }
 0x10b   : > { %v2948_v6 = vpop.f32.mrf.mxu0  ;;  %v1352_v52 = vadd.f32 %v2946_v5, %v779_v61 }
 0x10c   : > { %v2950_v7 = vpop.f32.mrf.mxu1 }
 0x10d   : > { %v1138_v3 = vpop.f32.mrf.mxu0 }
 0x10e   : > { %v1179_v14 = vpop.f32.mrf.mxu1 }
 0x10f   : > { %v1139_v8 = vpop.f32.mrf.mxu0  ;;  %v2990_v14 = vsub.s32 %v2003_v12, %v2005_v57  ;;  %v782_v57 = vadd.f32 %v2934_v34, %v2964_v29 }
 0x110   : > { %v1180_v11 = vpop.f32.mrf.mxu1 }
 0x111   : > { %v2952_v9 = vpop.f32.mrf.mxu0 }
 0x112   : > { %v2954_v10 = vpop.f32.mrf.mxu1 }
 0x113   : > { %v2956_v24 = vpop.f32.mrf.mxu0 }
 0x114   : > { %v2958_v13 = vpop.f32.mrf.mxu1 }
 0x115   : > { %v1220_v26 = vpop.f32.mrf.mxu0 }
 0x116   : > { %v1261_v16 = vpop.f32.mrf.mxu1  ;;  %v778_v26 = vadd.f32 %v2926_v20, %v2964_v29  ;;  %v1353_v20 = vadd.f32 %v2950_v7, %v780_v0 }
 0x117   : > { %v1221_v31 = vpop.f32.mrf.mxu0  ;;  %v1350_v16 = vadd.f32 %v1134_v4, %v777_v59 }
 0x118   : > { %v1262_v25 = vpop.f32.mrf.mxu1 }
 0x119   : > { %v2960_v37 = vpop.f32.mrf.mxu0 }
 0x11a   : > { %v2962_v32 = vpop.f32.mrf.mxu1 }
 0x11b   : > { %v2966_v39 = vpop.f32.mrf.mxu0 }
 0x11c   : > { %v2968_v38 = vpop.f32.mrf.mxu1 }
 0x11d   : > { %v1302_v45 = vpop.f32.mrf.mxu0 }
 0x11e   : > { %v1343_v46 = vpop.f32.mrf.mxu1 }
 0x11f   : > { %v1303_v17 = vpop.f32.mrf.mxu0 }
 0x120   : > { %v1344_v28 = vpop.f32.mrf.mxu1  ;;  %v1351_v17 = vadd.f32 %v2948_v6, %v778_v26  ;;  %v781_v6 = vadd.f32 %v2930_v30, %v2964_v29 }
 0x121   : > { %v1625_v54 = vpop.f32.mrf.mxu0 }
 0x122   : > { %v1919_v41 = vadd.f32 %v1625_v54, %v1346_v27  ;;  %v1666_v42 = vpop.f32.mrf.mxu1 }
 0x123   : > { %v1921_v51 = vadd.f32 %v1666_v42, %v1348_v36  ;;  %v1627_v53 = vpop.f32.mrf.mxu0 }
 0x124   : > { %v1935_v58 = vmul.f32 0.2, %v1919_v41  ;;  %v1920_v62 = vadd.f32 %v1627_v53, %v1347_v40  ;;  %v1668_v63 = vpop.f32.mrf.mxu1 }
 0x125   : > { %v1937_v1 = vmul.f32 0.2, %v1921_v51  ;;  %v1922_v2 = vadd.f32 %v1668_v63, %v1349_v50  ;;  %v1629_v55 = vpop.f32.mrf.mxu0  ;;  %v783_v50 = vadd.f32 %v2932_v33, %v2964_v29 }
 0x126   : > { %v1936_v60 = vmul.f32 0.2, %v1920_v62  ;;  %v1670_v3 = vpop.f32.mrf.mxu1  ;;  %v1951_v31 = vmax.f32 %v1919_v41, %v1935_v58  ;;  %v1354_v58 = vadd.f32 %v2952_v9, %v781_v6 }
 0x127   : > { %v1938_v8 = vmul.f32 0.2, %v1922_v2  ;;  %v1630_v11 = vpop.f32.mrf.mxu0  ;;  %v1953_v46 = vmax.f32 %v1921_v51, %v1937_v1  ;;  %v784_v1 = vadd.f32 %v2936_v35, %v2964_v29 }
 0x128   : > { %v1952_v25 = vmax.f32 %v1920_v62, %v1936_v60  ;;  %v1671_v45 = vpop.f32.mrf.mxu1  ;;  %v1355_v60 = vadd.f32 %v2956_v24, %v782_v57  ;;  %v785_v24 = vadd.f32 %v2938_v44, %v2964_v29 }
 0x129   : > { %v1954_v15 = vmax.f32 %v1922_v2, %v1938_v8  ;;  %v1707_v56 = vpop.f32.mrf.mxu0  ;;  %v1356_v2 = vadd.f32 %v2954_v10, %v783_v50  ;;  %v1357_v34 = vadd.f32 %v2958_v13, %v784_v1  ;;  %v787_v13 = vadd.f32 %v2940_v47, %v2964_v29 }
 0x12a   : > { %v2323_v18 = vpack.c.bf16 %v1952_v25, %v1951_v31  ;;  %v1923_v19 = vadd.f32 %v1707_v56, %v1350_v16  ;;  %v1748_v22 = vpop.f32.mrf.mxu1 }
 0x12b   : > { %v2324_v4 = vpack.c.bf16 %v1954_v15, %v1953_v46  ;;  %v1925_v23 = vadd.f32 %v1748_v22, %v1352_v52  ;;  %v1709_v27 = vpop.f32.mrf.mxu0  ;;  %v1358_v22 = vadd.f32 %v2960_v37, %v785_v24  ;;  %v1360_v44 = vadd.f32 %v2962_v32, %v787_v13 }
 0x12c   : > { %v2007_v28 = vrot.slane %v2323_v18, %v2990_v14  ;;  %v1939_v43 = vmul.f32 0.2, %v1923_v19  ;;  %v1924_v21 = vadd.f32 %v1709_v27, %v1351_v17  ;;  %v1750_v36 = vpop.f32.mrf.mxu1  ;;  %v788_v27 = vadd.f32 %v2944_v49, %v2964_v29 }
 0x12d   : > { %v2014_v5 = vrot.slane %v2324_v4, %v2990_v14  ;;  %v1941_v54 = vmul.f32 0.2, %v1925_v23  ;;  %v1926_v40 = vadd.f32 %v1750_v36, %v1353_v20  ;;  %v1711_v41 = vpop.f32.mrf.mxu0 }
 0x12e   : > { %v1940_v7 = vmul.f32 0.2, %v1924_v21  ;;  %v1752_v42 = vpop.f32.mrf.mxu1  ;;  %v1955_v30 = vmax.f32 %v1923_v19, %v1939_v43  ;;  %v786_v19 = vadd.f32 %v2942_v48, %v2964_v29  ;;  %v1361_v48 = vadd.f32 %v2968_v38, %v788_v27 }
 0x12f   : > { %v2015_v51 = vcombine.low %v2007_v28, %v2014_v5  ;;  %v1942_v53 = vmul.f32 0.2, %v1926_v40  ;;  %v1712_v12 = vpop.f32.mrf.mxu0  ;;  %v1957_v55 = vmax.f32 %v1925_v23, %v1941_v54 }
 0x130   : > { %v1956_v62 = vmax.f32 %v1924_v21, %v1940_v7  ;;  %v1753_v63 = vpop.f32.mrf.mxu1  ;;  %v1359_v21 = vadd.f32 %v2966_v39, %v786_v19 }
 0x131   : > { %2071 = vst [vmem:[%s3006_s20] sm:$0xff] %v2015_v51  ;;  %v1958_v59 = vmax.f32 %v1926_v40, %v1942_v53  ;;  %v1789_v33 = vpop.f32.mrf.mxu0 }
 0x132   : > { %v2325_v3 = vpack.c.bf16 %v1956_v62, %v1955_v30  ;;  %v1927_v61 = vadd.f32 %v1789_v33, %v1354_v58  ;;  %v1830_v8 = vpop.f32.mrf.mxu1 }
 0x133   : > { %v2326_v9 = vpack.c.bf16 %v1958_v59, %v1957_v55  ;;  %v1929_v11 = vadd.f32 %v1830_v8, %v1356_v2  ;;  %v1791_v26 = vpop.f32.mrf.mxu0 }
 0x134   : > { %v2024_v16 = vrot.slane %v2325_v3, %v2990_v14  ;;  %v1943_v31 = vmul.f32 0.2, %v1927_v61  ;;  %v1928_v35 = vadd.f32 %v1791_v26, %v1355_v60  ;;  %v1832_v25 = vpop.f32.mrf.mxu1 }
 0x135   : > { %v2031_v10 = vrot.slane %v2326_v9, %v2990_v14  ;;  %v1945_v45 = vmul.f32 0.2, %v1929_v11  ;;  %v1930_v0 = vadd.f32 %v1832_v25, %v1357_v34  ;;  %v1793_v52 = vpop.f32.mrf.mxu0 }
 0x136   : > { %v1944_v46 = vmul.f32 0.2, %v1928_v35  ;;  %v1834_v15 = vpop.f32.mrf.mxu1  ;;  %v1959_v20 = vmax.f32 %v1927_v61, %v1943_v31 }
 0x137   : > { %v2032_v56 = vcombine.low %v2024_v16, %v2031_v10  ;;  %v1946_v17 = vmul.f32 0.2, %v1930_v0  ;;  %v1794_v18 = vpop.f32.mrf.mxu0  ;;  %v1961_v28 = vmax.f32 %v1929_v11, %v1945_v45 }
 0x138   : > { %v1960_v4 = vmax.f32 %v1928_v35, %v1944_v46  ;;  %v1835_v23 = vpop.f32.mrf.mxu1 }
 0x139   : > { %2072 = vst [vmem:[%s3006_s20 + $0x8] sm:$0xff] %v2032_v56  ;;  %v1962_v43 = vmax.f32 %v1930_v0, %v1946_v17  ;;  %v1871_v47 = vpop.f32.mrf.mxu0 }
 0x13a   : > { %v2327_v36 = vpack.c.bf16 %v1960_v4, %v1959_v20  ;;  %v1931_v5 = vadd.f32 %v1871_v47, %v1358_v22  ;;  %v1912_v54 = vpop.f32.mrf.mxu1 }
 0x13b   : > { %v2328_v37 = vpack.c.bf16 %v1962_v43, %v1961_v28  ;;  %v1933_v40 = vadd.f32 %v1912_v54, %v1360_v44  ;;  %v1873_v41 = vpop.f32.mrf.mxu0 }
 0x13c   : > { %v2041_v6 = vrot.slane %v2327_v36, %v2990_v14  ;;  %v1947_v49 = vmul.f32 0.2, %v1931_v5  ;;  %v1932_v29 = vadd.f32 %v1873_v41, %v1359_v21  ;;  %v1914_v32 = vpop.f32.mrf.mxu1 }
 0x13d   : > { %v2048_v7 = vrot.slane %v2328_v37, %v2990_v14  ;;  %v1949_v42 = vmul.f32 0.2, %v1933_v40  ;;  %v1934_v50 = vadd.f32 %v1914_v32, %v1361_v48  ;;  %v1875_v51 = vpop.f32.mrf.mxu0 }
 0x13e   : > { %v1948_v39 = vmul.f32 0.2, %v1932_v29  ;;  %v1916_v53 = vpop.f32.mrf.mxu1  ;;  %v1963_v58 = vmax.f32 %v1931_v5, %v1947_v49 }
 0x13f   : > { %v2049_v12 = vcombine.low %v2041_v6, %v2048_v7  ;;  %v1950_v57 = vmul.f32 0.2, %v1934_v50  ;;  %v1876_v38 = vpop.f32.mrf.mxu0  ;;  %v1965_v63 = vmax.f32 %v1933_v40, %v1949_v42 }
 0x140   : > { %v1964_v30 = vmax.f32 %v1932_v29, %v1948_v39  ;;  %v1917_v62 = vpop.f32.mrf.mxu1 }
 0x141   : > { %2073 = vst [vmem:[%s3006_s20 + $0x10] sm:$0xff] %v2049_v12  ;;  %v1966_v1 = vmax.f32 %v1934_v50, %v1950_v57 }
 0x142   : > { %v2329_v2 = vpack.c.bf16 %v1964_v30, %v1963_v58 }
 0x143   : > { %v2330_v55 = vpack.c.bf16 %v1966_v1, %v1965_v63 }
 0x144   : > { %v2058_v59 = vrot.slane %v2329_v2, %v2990_v14 }
 0x145   : > { %v2065_v33 = vrot.slane %v2330_v55, %v2990_v14 }
 0x147   : > { %v2066_v60 = vcombine.low %v2058_v59, %v2065_v33 }
 0x149   : > { %2074 = vst [vmem:[%s3006_s20 + $0x18] sm:$0xff] %v2066_v60 }
 0x14a PF: > { %s13_s16 = sadd.s32 1, %s2525_s16   ;;  %s3060_s12 = smov %s2517_s14 }
 0x14b   : > { %p10_p8 = scmp.ge.s32.totalorder %s13_s16, 18   ;;  %s3061_s13 = smov %s2521_s15 }
 0x14c   : > { %s3062_s14 = smov %s3065_s17  ;;  %s3063_s15 = smov %s3069_s18 }
 0x14d   :  { %12 = sbr.rel (!%p10_p8) target bundleno = 3 (0x3), region = 64 }

// kernel: global_dis_forward.5
= control target key start
LH: loop header
LB: loop body
LE: loop exit
PB: predicated region body
PF: predicated region fallthrough
CT: control target
= control target key end

     0   :  { %s2956_s12 = smov 0   ;;  %s2958_s13 = smov 0   ;;  %s3515_s0 = inlined_call_operand.vmem [shape: bf16[2,2,40,2176], index: 0, kind: input, shape index: {}]   ;;  %s3516_s1 = inlined_call_operand.vmem [shape: bf16[3,8,40], index: 1, kind: input, shape index: {}]   ;;  %s3517_s2 = inlined_call_operand.vmem [shape: f32[8,1], index: 2, kind: input, shape index: {}]   ;;  %s3518_s3 = inlined_call_operand.vmem [shape: bf16[2,8,4096], index: 3, kind: output, shape index: {}]  }
   0x1   :  { %s2960_s14 = smov 0   ;;  %s2962_s15 = smov 0  }
   0x2   :  { %s2964_s16 = smov 0  }
   0x3 LB: > { %s22_s17 = sadd.s32 1, %s2924_s14  ;;  %s25_s18 = sadd.s32 1, %s2928_s15  ;;  %s2932_s16 = sphi %s2964_s16, %s13_s16   ;;  %s2928_s15 = sphi %s2962_s15, %s3522_s15   ;;  %s2924_s14 = sphi %s2960_s14, %s3521_s14   ;;  %s2920_s13 = sphi %s2958_s13, %s3520_s13   ;;  %s2916_s12 = sphi %s2956_s12, %s3519_s12  }
   0x4   : > { %p23_p0 = scmp.ge.s32.totalorder %s22_s17, 2  ;;  %p2497_p1 = scmp.ge.s32.totalorder %s2932_s16, 1 }
   0x5   : > { %p157_p2 = scmp.lt.s32.totalorder %s2932_s16, 5 }
   0x6   : > { %s3524_s17 = smov (%p23_p0, %s22_s17), 0  ;;  %s3526_s18 = smov (!%p23_p0, %s25_s18), %s2928_s15 }
   0x7   : > { %p158_p3 = pnand %p2497_p1, %p157_p2  ;;  %p27_p4 = scmp.ge.s32.totalorder %s3526_s18, 2 }
   0x8   : > { %p189_p5 = scmp.lt.s32.totalorder (!%p158_p3), %s2920_s13, 1  ;;  %p191_p6 = scmp.lt.s32.totalorder (!%p158_p3), %s2916_s12, 1 }
   0x9   : > { %s3528_s18 = smov (%p27_p4, %s3526_s18), 0  ;;  %161 = sbr.rel (%p158_p3) target bundleno = 497 (0x1f1), region = 32 }
   0xa   : > { %s2935_s27 = smov (!%p158_p3), 64   ;;  %s2499_s9 = sshll.u32 (!%p158_p3), %s2916_s12, 4 }
   0xb   : > { %p201_p7 = scmp.lt.s32.totalorder (!%p158_p3), %s2499_s9, 31 }
   0xe   : > { %v2934_v0 = vmov 0   ;;  %s3530_s13 = smov (!%p189_p5, %s2920_s13), 1  ;;  %vm460_vm0 = vcmask 1043456   ;;  %v3036_v23 = vld [vmem:[%s3516_s1] sm:$0xf]  ;;  %vm456_vm1 = vcmask 326656  }
   0xf   : > { %541 = vmatprep.mubr.bf16.mxu0 %v2934_v0  ;;  %582 = vmatprep.mubr.bf16.mxu1 %v2934_v0  ;;  %s192_s19 = scalar_select %p191_p6, %s2916_s12, 1  ;;  %vm1183_vm2 = vcmask 523264  }
  0x10   : > { %2761 = vset.pattern.permute.xlu1 %v2934_v0  ;;  %2762 = vset.pattern.permute.xlu0 %v2934_v0  ;;  %s2718_s20 = smul.u32 170, %s3530_s13  ;;  %s3532_s9 = smov (!%p201_p7, %s2499_s9), 31 }
  0x11   : > { %s2717_s21 = smul.u32 85, %s192_s19  ;;  %s2500_s10 = sshll.u32 %s3530_s13, 5 }
  0x12   : > { %s204_s11 = sadd.s32 %s2500_s10, %s3532_s9 }
  0x13   : > { %s195_s22 = sadd.s32 %s2718_s20, %s2717_s21  ;;  %s2501_s12 = sshll.u32 %s204_s11, 2 }
  0x14   : > { %s2498_s23 = sshll.u32 %s195_s22, 2  ;;  %s3465_s13 = scalar_lea.vmem %s3518_s3, %s2501_s12 }
  0x15   : > { %s3000_s26 = scalar_lea.vmem %s3515_s0, %s2498_s23 }
  0x16   : > { %v890_v1 = vld [vmem:[%s3000_s26 + $0x118] sm:$0xff]  ;;  %v889_v2 = vld [vmem:[%s3000_s26 + $0x110] sm:$0xff]  ;;  %v891_v7 = vld [vmem:[%s3000_s26 + $0x120] sm:$0xff] }
  0x17   : > { %v2603_v3 = vcombine.low %v890_v1, %v890_v1  ;;  %v2601_v4 = vcombine.low %v889_v2, %v889_v2  ;;  %v2604_v5 = vcombine.high %v890_v1, %v890_v1  ;;  %v2602_v6 = vcombine.high %v889_v2, %v889_v2  ;;  %v2768_v10 = vld [vmem:[%s3000_s26 + $0x8c] ss:$68 sps:$4 sm:$0xff]   ;;  %v2772_v11 = vld [vmem:[%s3000_s26 + $0x94] ss:$68 sps:$4 sm:$0xff]   ;;  %v2778_v15 = vld [vmem:[%s3000_s26 + $0x4] ss:$68 sps:$4 sm:$0xff]  }
  0x18   : > { %v2770_v12 = vld [vmem:[%s3000_s26 + $0x90] ss:$68 sps:$4 sm:$0xff]   ;;  %v2775_v13 = vld [vmem:[%s3000_s26 + $0x88] ss:$68 sps:$4 sm:$0xff]   ;;  %v2605_v14 = vcombine.low %v891_v7, %v891_v7  ;;  %v3024_v19 = vld [vmem:[%s3000_s26] ss:$68 sps:$4 sm:$0xff]   ;;  %v3026_v20 = vcombine.high %v891_v7, %v891_v7 }
  0x19   : > { %1153 = vrot.lane.b32.xlu1 %v2603_v3, %s2935_s27  ;;  %1149 = vrot.lane.b32.xlu0 %v2601_v4, %s2935_s27  ;;  %v462_v8 = vsel %vm460_vm0, %v2601_v4, 0  ;;  %v468_v9 = vsel %vm460_vm0, %v2603_v3, 0  ;;  %v892_v16 = vld [vmem:[%s3000_s26 + $0x128] sm:$0xff]  ;;  %v2773_v26 = vld [vmem:[%s3000_s26 + $0x98] ss:$68 sps:$4 sm:$0xff]  }
  0x1a   : > { %2550 = vmatprep.subr.msk.bf16.mxu0 %vm460_vm0, %v2602_v6  ;;  %2552 = vmatprep.subr.msk.bf16.mxu1 %vm460_vm0, %v2604_v5  ;;  %v2782_v17 = vld [vmem:[%s3000_s26 + $0xc] ss:$68 sps:$4 sm:$0xff]   ;;  %v3028_v21 = vcombine.high %v892_v16, %v892_v16  ;;  %v3030_v22 = vcombine.low %v892_v16, %v892_v16  ;;  %v474_v24 = vsel %vm460_vm0, %v2605_v14, 0  ;;  %v3049_v27 = vld [vmem:[%s3000_s26 + $0x9c] ss:$68 sps:$4 sm:$0xff]  }
  0x1b   : > { %520 = vmatpush1.bf16.msra.mxu0 %v462_v8  ;;  %561 = vmatpush1.bf16.msra.mxu1 %v468_v9  ;;  %v2776_v18 = vld [vmem:[%s3000_s26 + $0x8] ss:$68 sps:$4 sm:$0xff]   ;;  %v893_v29 = vld [vmem:[%s3000_s26 + $0x130] sm:$0xff]  ;;  %v3064_v30 = vld [vmem:[%s3000_s26 + $0xa0] ss:$68 sps:$4 sm:$0xff]  }
  0x1c   : > { %521 = vmatprep.subr.bf16.mxu0 %v2768_v10  ;;  %562 = vmatprep.subr.bf16.mxu1 %v2772_v11  ;;  %v480_v25 = vsel %vm460_vm0, %v3030_v22, 0  ;;  %v3052_v28 = vld [vmem:[%s3000_s26 + $0xa4] ss:$68 sps:$4 sm:$0xff]   ;;  %v3067_v31 = vld [vmem:[%s3000_s26 + $0x14] ss:$68 sps:$4 sm:$0xff]   ;;  %v2609_v36 = vcombine.low %v893_v29, %v893_v29  ;;  %v3084_v37 = vcombine.high %v893_v29, %v893_v29 }
  0x1d   : > { %1155 = vrot.lane.b32.xlu1 %v2604_v5, %s2935_s27  ;;  %1151 = vrot.lane.b32.xlu0 %v2602_v6, %s2935_s27  ;;  %v3070_v32 = vld [vmem:[%s3000_s26 + $0x1c] ss:$68 sps:$4 sm:$0xff]   ;;  %v2780_v34 = vld [vmem:[%s3000_s26 + $0x10] ss:$68 sps:$4 sm:$0xff]  }
  0x1e   : > { %v894_v33 = vld [vmem:[%s3000_s26 + $0x138] sm:$0xff]  ;;  %v486_v40 = vsel %vm460_vm0, %v2609_v36, 0  ;;  %v3101_v42 = vld [vmem:[%s3000_s26 + $0xac] ss:$68 sps:$4 sm:$0xff]   ;;  %v3115_v46 = vld [vmem:[%s3000_s26 + $0x24] ss:$68 sps:$4 sm:$0xff]  }
  0x1f   : > { %522 = vmatpush1.bf16.msra.mxu0 %v2775_v13  ;;  %563 = vmatpush1.bf16.msra.mxu1 %v2770_v12  ;;  %v3082_v35 = vld [vmem:[%s3000_s26 + $0x18] ss:$68 sps:$4 sm:$0xff]   ;;  %v3086_v38 = vcombine.high %v894_v33, %v894_v33  ;;  %v3088_v39 = vcombine.low %v894_v33, %v894_v33  ;;  %v2793_v44 = vld [vmem:[%s3000_s26 + $0xa8] ss:$68 sps:$4 sm:$0xff]   ;;  %v3112_v45 = vld [vmem:[%s3000_s26 + $0xb0] ss:$68 sps:$4 sm:$0xff]  }
  0x20   : > { %523 = vmatprep.subr.bf16.mxu0 %v2778_v15  ;;  %564 = vmatprep.subr.bf16.mxu1 %v2782_v17  ;;  %v3104_v43 = vld [vmem:[%s3000_s26 + $0xb4] ss:$68 sps:$4 sm:$0xff]   ;;  %v3118_v47 = vld [vmem:[%s3000_s26 + $0x2c] ss:$68 sps:$4 sm:$0xff]   ;;  %v895_v48 = vld [vmem:[%s3000_s26 + $0x140] sm:$0xff] }
  0x21   : > { %1157 = vrot.lane.b32.xlu0 %v2605_v14, %s2935_s27  ;;  %1117 = vrot.lane.b32.xlu1 %v2768_v10, %s2935_s27  ;;  %v492_v41 = vsel %vm460_vm0, %v3088_v39, 0  ;;  %v896_v49 = vld [vmem:[%s3000_s26 + $0x148] sm:$0xff]  ;;  %v2799_v50 = vld [vmem:[%s3000_s26 + $0x20] ss:$68 sps:$4 sm:$0xff]   ;;  %v2613_v52 = vcombine.low %v895_v48, %v895_v48  ;;  %v2614_v53 = vcombine.high %v895_v48, %v895_v48 }
  0x22   : > { %v2813_v51 = vld [vmem:[%s3000_s26 + $0x28] ss:$68 sps:$4 sm:$0xff]   ;;  %v2616_v54 = vcombine.high %v896_v49, %v896_v49  ;;  %v2615_v55 = vcombine.low %v896_v49, %v896_v49  ;;  %v2819_v56 = vld [vmem:[%s3000_s26 + $0xbc] ss:$68 sps:$4 sm:$0xff]   ;;  %v2824_v62 = vld [vmem:[%s3000_s26 + $0x34] ss:$68 sps:$4 sm:$0xff]  }
  0x23   : > { %524 = vmatpush1.bf16.msra.mxu0 %v3024_v19  ;;  %565 = vmatpush1.bf16.msra.mxu1 %v2776_v18  ;;  %v2821_v57 = vld [vmem:[%s3000_s26 + $0xc4] ss:$68 sps:$4 sm:$0xff]   ;;  %v498_v58 = vsel %vm460_vm0, %v2613_v52, 0  ;;  %v2809_v60 = vld [vmem:[%s3000_s26 + $0xb8] ss:$68 sps:$4 sm:$0xff]  }
  0x24   : > { %2554 = vmatprep.subr.msk.bf16.mxu0 %vm460_vm0, %v3026_v20  ;;  %2556 = vmatprep.subr.msk.bf16.mxu1 %vm460_vm0, %v3028_v21  ;;  %v504_v59 = vsel %vm460_vm0, %v2615_v55, 0  ;;  %v2823_v61 = vld [vmem:[%s3000_s26 + $0xc0] ss:$68 sps:$4 sm:$0xff]   ;;  %v2815_v1 = vld [vmem:[%s3000_s26 + $0x30] ss:$68 sps:$4 sm:$0xff]  }
  0x25   : > { %1119 = vrot.lane.b32.xlu0 %v2770_v12, %s2935_s27  ;;  %1121 = vrot.lane.b32.xlu1 %v2772_v11, %s2935_s27  ;;  %v2826_v63 = vld [vmem:[%s3000_s26 + $0x3c] ss:$68 sps:$4 sm:$0xff]   ;;  %v2820_v3 = vld [vmem:[%s3000_s26 + $0x150] ss:$0 sps:$4 sm:$0xff]  }
  0x26   : > { %2551 = vmatmul.mubr.msk.bf16.vlgmr.msra.gmra.mxu0 %vm456_vm1, %v3036_v23  ;;  %2553 = vmatmul.mubr.msk.bf16.vlgmr.msra.gmra.mxu1 %vm456_vm1, %v3036_v23  ;;  %v2828_v2 = vld [vmem:[%s3000_s26 + $0x38] ss:$68 sps:$4 sm:$0xff]   ;;  %v2825_v4 = vld [vmem:[%s3000_s26 + $0xc8] ss:$68 sps:$4 sm:$0xff]   ;;  %v2829_v5 = vld [vmem:[%s3000_s26 + $0x40] ss:$68 sps:$4 sm:$0xff]  }
  0x27   : > { %602 = vmatpush1.bf16.msra.mxu0 %v474_v24  ;;  %643 = vmatpush1.bf16.msra.mxu1 %v480_v25  ;;  %v209_v6 = vld [vmem:[%s3517_s2] sm:$0xff] }
  0x28   : > { %603 = vmatprep.subr.bf16.mxu0 %v3049_v27  ;;  %644 = vmatprep.subr.bf16.mxu1 %v3052_v28 }
  0x29   : > { %1123 = vrot.lane.b32.xlu0 %v2773_v26, %s2935_s27  ;;  %1115 = vrot.lane.b32.xlu1 %v2775_v13, %s2935_s27 }
  0x2a   : > { %623 = vmatprep.mubr.bf16.mxu0 %v2934_v0  ;;  %664 = vmatprep.mubr.bf16.mxu1 %v2934_v0 }
  0x2b   : > { %604 = vmatpush1.bf16.msra.mxu0 %v2773_v26  ;;  %645 = vmatpush1.bf16.msra.mxu1 %v3064_v30 }
  0x2c   : > { %605 = vmatprep.subr.bf16.mxu0 %v3067_v31  ;;  %646 = vmatprep.subr.bf16.mxu1 %v3070_v32 }
  0x2d   : > { %1085 = vrot.lane.b32.xlu1 %v2776_v18, %s2935_s27  ;;  %1083 = vrot.lane.b32.xlu0 %v2778_v15, %s2935_s27 }
  0x2f   : > { %606 = vmatpush1.bf16.msra.mxu0 %v2780_v34  ;;  %647 = vmatpush1.bf16.msra.mxu1 %v3082_v35 }
  0x30   : > { %2558 = vmatprep.subr.msk.bf16.mxu0 %vm460_vm0, %v3084_v37  ;;  %2560 = vmatprep.subr.msk.bf16.mxu1 %vm460_vm0, %v3086_v38 }
  0x31   : > { %1089 = vrot.lane.b32.xlu1 %v2780_v34, %s2935_s27  ;;  %1087 = vrot.lane.b32.xlu0 %v2782_v17, %s2935_s27  ;;  %v3234_v34 = vld [vmem:[%s3516_s1 + $0x4] sm:$0xf] }
  0x32   : > { %2555 = vmatmul.mubr.msk.bf16.vlgmr.msra.gmra.mxu0 %vm456_vm1, %v3036_v23  ;;  %2557 = vmatmul.mubr.msk.bf16.vlgmr.msra.gmra.mxu1 %vm456_vm1, %v3036_v23 }
  0x33   : > { %684 = vmatpush1.bf16.msra.mxu0 %v486_v40  ;;  %725 = vmatpush1.bf16.msra.mxu1 %v492_v41 }
  0x34   : > { %685 = vmatprep.subr.bf16.mxu0 %v3101_v42  ;;  %726 = vmatprep.subr.bf16.mxu1 %v3104_v43 }
  0x35   : > { %1159 = vrot.lane.b32.xlu1 %v3026_v20, %s2935_s27  ;;  %1081 = vrot.lane.b32.xlu0 %v3024_v19, %s2935_s27 }
  0x36   : > { %705 = vmatprep.mubr.bf16.mxu0 %v2934_v0  ;;  %746 = vmatprep.mubr.bf16.mxu1 %v2934_v0 }
  0x37   : > { %686 = vmatpush1.bf16.msra.mxu0 %v2793_v44  ;;  %727 = vmatpush1.bf16.msra.mxu1 %v3112_v45 }
  0x38   : > { %687 = vmatprep.subr.bf16.mxu0 %v3115_v46  ;;  %728 = vmatprep.subr.bf16.mxu1 %v3118_v47 }
  0x39   : > { %1163 = vrot.lane.b32.xlu1 %v3028_v21, %s2935_s27  ;;  %1161 = vrot.lane.b32.xlu0 %v3030_v22, %s2935_s27 }
  0x3b   : > { %688 = vmatpush1.bf16.msra.mxu0 %v2799_v50  ;;  %729 = vmatpush1.bf16.msra.mxu1 %v2813_v51 }
  0x3c   : > { %2562 = vmatprep.subr.msk.bf16.mxu0 %vm460_vm0, %v2614_v53  ;;  %2564 = vmatprep.subr.msk.bf16.mxu1 %vm460_vm0, %v2616_v54 }
  0x3d   : > { %1125 = vrot.lane.b32.xlu1 %v3049_v27, %s2935_s27  ;;  %1165 = vrot.lane.b32.xlu0 %v2609_v36, %s2935_s27 }
  0x3e   : > { %2559 = vmatmul.mubr.msk.bf16.vlgmr.msra.gmra.mxu0 %vm456_vm1, %v3036_v23  ;;  %2561 = vmatmul.mubr.msk.bf16.vlgmr.msra.gmra.mxu1 %vm456_vm1, %v3036_v23 }
  0x3f   : > { %766 = vmatpush1.bf16.msra.mxu0 %v498_v58  ;;  %807 = vmatpush1.bf16.msra.mxu1 %v504_v59 }
  0x40   : > { %767 = vmatprep.subr.bf16.mxu0 %v2819_v56  ;;  %808 = vmatprep.subr.bf16.mxu1 %v2821_v57 }
  0x41   : > { %1129 = vrot.lane.b32.xlu1 %v3052_v28, %s2935_s27  ;;  %1127 = vrot.lane.b32.xlu0 %v3064_v30, %s2935_s27 }
  0x42   : > { %787 = vmatprep.mubr.bf16.mxu0 %v2934_v0  ;;  %828 = vmatprep.mubr.bf16.mxu1 %v2934_v0 }
  0x43   : > { %768 = vmatpush1.bf16.msra.mxu0 %v2809_v60  ;;  %809 = vmatpush1.bf16.msra.mxu1 %v2823_v61 }
  0x44   : > { %769 = vmatprep.subr.bf16.mxu0 %v2824_v62  ;;  %810 = vmatprep.subr.bf16.mxu1 %v2826_v63 }
  0x45   : > { %1091 = vrot.lane.b32.xlu1 %v3067_v31, %s2935_s27  ;;  %1131 = vrot.lane.b32.xlu0 %v2793_v44, %s2935_s27 }
  0x47   : > { %770 = vmatpush1.bf16.msra.mxu0 %v2815_v1  ;;  %811 = vmatpush1.bf16.msra.mxu1 %v2828_v2 }
  0x49   : > { %1095 = vrot.lane.b32.xlu1 %v3070_v32, %s2935_s27  ;;  %1093 = vrot.lane.b32.xlu0 %v3082_v35, %s2935_s27 }
  0x4a   : > { %2563 = vmatmul.mubr.msk.bf16.vlgmr.msra.gmra.mxu0 %vm456_vm1, %v3036_v23  ;;  %2565 = vmatmul.mubr.msk.bf16.vlgmr.msra.gmra.mxu1 %vm456_vm1, %v3036_v23 }
  0x4b   : > { %1388 = vmatprep.mubr.bf16.mxu1 %v2934_v0  ;;  %1347 = vmatprep.mubr.bf16.mxu0 %v2934_v0 }
  0x4d   : > { %1167 = vrot.lane.b32.xlu1 %v3084_v37, %s2935_s27  ;;  %1097 = vrot.lane.b32.xlu0 %v2799_v50, %s2935_s27 }
  0x51   : > { %1171 = vrot.lane.b32.xlu1 %v3086_v38, %s2935_s27  ;;  %1169 = vrot.lane.b32.xlu0 %v3088_v39, %s2935_s27 }
  0x55   : > { %1133 = vrot.lane.b32.xlu1 %v3101_v42, %s2935_s27  ;;  %1173 = vrot.lane.b32.xlu0 %v2613_v52, %s2935_s27 }
  0x59   : > { %1137 = vrot.lane.b32.xlu1 %v3104_v43, %s2935_s27  ;;  %1135 = vrot.lane.b32.xlu0 %v3112_v45, %s2935_s27 }
  0x5d   : > { %1099 = vrot.lane.b32.xlu1 %v3115_v46, %s2935_s27  ;;  %1139 = vrot.lane.b32.xlu0 %v2809_v60, %s2935_s27 }
  0x61   : > { %1103 = vrot.lane.b32.xlu1 %v3118_v47, %s2935_s27  ;;  %1101 = vrot.lane.b32.xlu0 %v2813_v51, %s2935_s27 }
  0x65   : > { %1175 = vrot.lane.b32.xlu1 %v2614_v53, %s2935_s27  ;;  %1105 = vrot.lane.b32.xlu0 %v2815_v1, %s2935_s27 }
  0x69   : > { %1179 = vrot.lane.b32.xlu1 %v2616_v54, %s2935_s27  ;;  %1177 = vrot.lane.b32.xlu0 %v2615_v55, %s2935_s27 }
  0x6d   : > { %1141 = vrot.lane.b32.xlu1 %v2819_v56, %s2935_s27  ;;  %1181 = vrot.lane.b32.xlu0 %v2820_v3, %s2935_s27 }
  0x71   : > { %1145 = vrot.lane.b32.xlu1 %v2821_v57, %s2935_s27  ;;  %1143 = vrot.lane.b32.xlu0 %v2823_v61, %s2935_s27 }
  0x75   : > { %1107 = vrot.lane.b32.xlu1 %v2824_v62, %s2935_s27  ;;  %1147 = vrot.lane.b32.xlu0 %v2825_v4, %s2935_s27 }
  0x79   : > { %1111 = vrot.lane.b32.xlu1 %v2826_v63, %s2935_s27  ;;  %1109 = vrot.lane.b32.xlu0 %v2828_v2, %s2935_s27 }
  0x7d   : > { %1113 = vrot.lane.b32.xlu0 %v2829_v5, %s2935_s27  ;;  %212 = vperm.xlu1 %2761, %v209_v6  }
  0x8b   : > { %v1154_v7 = vpop.permute.xlu1 %1153  ;;  %v1150_v8 = vpop.permute.xlu0 %1149 }
  0x8f   : > { %v1156_v9 = vpop.permute.xlu1 %1155  ;;  %v1152_v10 = vpop.permute.xlu0 %1151 }
  0x90   : > { %v1216_v11 = vsel %vm1183_vm2, %v1150_v8, %v1152_v10  ;;  %v1217_v12 = vsel %vm1183_vm2, %v1152_v10, %v1154_v7  ;;  %v1218_v14 = vsel %vm1183_vm2, %v1154_v7, %v1156_v9 }
  0x91   : > { %v1268_v13 = vsel %vm460_vm0, %v1216_v11, 0  ;;  %2618 = vmatprep.subr.msk.bf16.mxu0 %vm460_vm0, %v1217_v12  ;;  %v1274_v18 = vsel %vm460_vm0, %v1218_v14, 0 }
  0x92   : > { %1326 = vmatpush1.bf16.msra.mxu0 %v1268_v13 }
  0x93   : > { %v1158_v15 = vpop.permute.xlu0 %1157  ;;  %v1118_v16 = vpop.permute.xlu1 %1117 }
  0x94   : > { %v1219_v17 = vsel %vm1183_vm2, %v1156_v9, %v1158_v15 }
  0x95   : > { %2620 = vmatprep.subr.msk.bf16.mxu1 %vm460_vm0, %v1219_v17 }
  0x96   : > { %1367 = vmatpush1.bf16.msra.mxu1 %v1274_v18 }
  0x97   : > { %v1120_v19 = vpop.permute.xlu0 %1119  ;;  %v1122_v20 = vpop.permute.xlu1 %1121 }
  0x98   : > { %v1201_v21 = vsel %vm1183_vm2, %v1118_v16, %v1120_v19  ;;  %v1202_v26 = vsel %vm1183_vm2, %v1120_v19, %v1122_v20 }
  0x99   : > { %1327 = vmatprep.subr.bf16.mxu0 %v1201_v21 }
  0x9b   : > { %v1124_v22 = vpop.permute.xlu0 %1123  ;;  %v1116_v23 = vpop.permute.xlu1 %1115 }
  0x9c   : > { %v1200_v24 = vsel %vm1183_vm2, %v1116_v23, %v1118_v16  ;;  %v1203_v25 = vsel %vm1183_vm2, %v1122_v20, %v1124_v22 }
  0x9d   : > { %1328 = vmatpush1.bf16.msra.mxu0 %v1200_v24  ;;  %1368 = vmatprep.subr.bf16.mxu1 %v1203_v25 }
  0x9e   : > { %1369 = vmatpush1.bf16.msra.mxu1 %v1202_v26 }
  0x9f   : > { %v1086_v27 = vpop.permute.xlu1 %1085  ;;  %v1084_v28 = vpop.permute.xlu0 %1083 }
  0xa0   : > { %v1185_v29 = vsel %vm1183_vm2, %v1084_v28, %v1086_v27 }
  0xa1   : > { %1329 = vmatprep.subr.bf16.mxu0 %v1185_v29 }
  0xa3   : > { %v1090_v30 = vpop.permute.xlu1 %1089  ;;  %v1088_v31 = vpop.permute.xlu0 %1087 }
  0xa4   : > { %v1186_v32 = vsel %vm1183_vm2, %v1086_v27, %v1088_v31  ;;  %v1187_v33 = vsel %vm1183_vm2, %v1088_v31, %v1090_v30 }
  0xa5   : > { %1370 = vmatprep.subr.bf16.mxu1 %v1187_v33 }
  0xa6   : > { %1371 = vmatpush1.bf16.msra.mxu1 %v1186_v32 }
  0xa7   : > { %v1160_v35 = vpop.permute.xlu1 %1159  ;;  %v1082_v36 = vpop.permute.xlu0 %1081 }
  0xa8   : > { %v1184_v37 = vsel %vm1183_vm2, %v1082_v36, %v1084_v28  ;;  %v1220_v38 = vsel %vm1183_vm2, %v1158_v15, %v1160_v35 }
  0xa9   : > { %1330 = vmatpush1.bf16.msra.mxu0 %v1184_v37  ;;  %2621 = vmatmul.mubr.msk.bf16.vlgmr.msra.gmra.mxu1 %vm456_vm1, %v3234_v34  ;;  %v1280_v42 = vsel %vm460_vm0, %v1220_v38, 0 }
  0xaa   : > { %1470 = vmatprep.mubr.bf16.mxu1 %v2934_v0 }
  0xab   : > { %v1164_v39 = vpop.permute.xlu1 %1163  ;;  %v1162_v40 = vpop.permute.xlu0 %1161 }
  0xac   : > { %v1221_v41 = vsel %vm1183_vm2, %v1160_v35, %v1162_v40  ;;  %2619 = vmatmul.mubr.msk.bf16.vlgmr.msra.gmra.mxu0 %vm456_vm1, %v3234_v34  ;;  %v1222_v43 = vsel %vm1183_vm2, %v1162_v40, %v1164_v39 }
  0xad   : > { %2622 = vmatprep.subr.msk.bf16.mxu0 %vm460_vm0, %v1221_v41  ;;  %1429 = vmatprep.mubr.bf16.mxu0 %v2934_v0  ;;  %v1286_v47 = vsel %vm460_vm0, %v1222_v43, 0 }
  0xae   : > { %1408 = vmatpush1.bf16.msra.mxu0 %v1280_v42 }
  0xaf   : > { %v1126_v44 = vpop.permute.xlu1 %1125  ;;  %v1166_v45 = vpop.permute.xlu0 %1165 }
  0xb0   : > { %v1223_v46 = vsel %vm1183_vm2, %v1164_v39, %v1166_v45  ;;  %v1204_v51 = vsel %vm1183_vm2, %v1124_v22, %v1126_v44 }
  0xb1   : > { %2624 = vmatprep.subr.msk.bf16.mxu1 %vm460_vm0, %v1223_v46 }
  0xb2   : > { %1449 = vmatpush1.bf16.msra.mxu1 %v1286_v47  ;;  %v1691_v47 = vld [vmem:[%s3000_s26 + $0x114] sm:$0xff] }
  0xb3   : > { %v1130_v48 = vpop.permute.xlu1 %1129  ;;  %v1128_v49 = vpop.permute.xlu0 %1127 }
  0xb4   : > { %v1205_v50 = vsel %vm1183_vm2, %v1126_v44, %v1128_v49  ;;  %v1206_v55 = vsel %vm1183_vm2, %v1128_v49, %v1130_v48 }
  0xb5   : > { %1409 = vmatprep.subr.bf16.mxu0 %v1205_v50 }
  0xb6   : > { %1410 = vmatpush1.bf16.msra.mxu0 %v1204_v51 }
  0xb7   : > { %v1092_v52 = vpop.permute.xlu1 %1091  ;;  %v1132_v53 = vpop.permute.xlu0 %1131 }
  0xb8   : > { %v1207_v54 = vsel %vm1183_vm2, %v1130_v48, %v1132_v53  ;;  %v1188_v59 = vsel %vm1183_vm2, %v1090_v30, %v1092_v52 }
  0xb9   : > { %1450 = vmatprep.subr.bf16.mxu1 %v1207_v54  ;;  %v2668_v54 = vcombine.high %v1691_v47, %v1691_v47 }
  0xba   : > { %1451 = vmatpush1.bf16.msra.mxu1 %v1206_v55  ;;  %v2667_v55 = vcombine.low %v1691_v47, %v1691_v47 }
  0xbb   : > { %v1096_v56 = vpop.permute.xlu1 %1095  ;;  %v1094_v57 = vpop.permute.xlu0 %1093 }
  0xbc   : > { %v1189_v58 = vsel %vm1183_vm2, %v1092_v52, %v1094_v57  ;;  %v1190_v63 = vsel %vm1183_vm2, %v1094_v57, %v1096_v56  ;;  %v1692_v57 = vld [vmem:[%s3000_s26 + $0x11c] sm:$0xff] }
  0xbd   : > { %1411 = vmatprep.subr.bf16.mxu0 %v1189_v58 }
  0xbe   : > { %1412 = vmatpush1.bf16.msra.mxu0 %v1188_v59 }
  0xbf   : > { %v1168_v60 = vpop.permute.xlu1 %1167  ;;  %v1098_v61 = vpop.permute.xlu0 %1097 }
  0xc0   : > { %v1191_v62 = vsel %vm1183_vm2, %v1096_v56, %v1098_v61  ;;  %v1224_v1 = vsel %vm1183_vm2, %v1166_v45, %v1168_v60 }
  0xc1   : > { %2623 = vmatmul.mubr.msk.bf16.vlgmr.msra.gmra.mxu0 %vm456_vm1, %v3234_v34  ;;  %1452 = vmatprep.subr.bf16.mxu1 %v1191_v62  ;;  %v1292_v5 = vsel %vm460_vm0, %v1224_v1, 0  ;;  %v2834_v1 = vld [vmem:[%s3000_s26 + $0x90] ss:$68 sps:$4 sm:$0xff]  }
  0xc2   : > { %1453 = vmatpush1.bf16.msra.mxu1 %v1190_v63  ;;  %1511 = vmatprep.mubr.bf16.mxu0 %v2934_v0  ;;  %v1905_v63 = vsel %vm460_vm0, %v2667_v55, 0 }
  0xc3   : > { %v1172_v2 = vpop.permute.xlu1 %1171  ;;  %v1170_v3 = vpop.permute.xlu0 %1169 }
  0xc4   : > { %v1225_v4 = vsel %vm1183_vm2, %v1168_v60, %v1170_v3  ;;  %v1226_v6 = vsel %vm1183_vm2, %v1170_v3, %v1172_v2  ;;  %v2669_v3 = vcombine.low %v1692_v57, %v1692_v57 }
  0xc5   : > { %2625 = vmatmul.mubr.msk.bf16.vlgmr.msra.gmra.mxu1 %vm456_vm1, %v3234_v34  ;;  %2626 = vmatprep.subr.msk.bf16.mxu0 %vm460_vm0, %v1225_v4  ;;  %v1298_v10 = vsel %vm460_vm0, %v1226_v6, 0  ;;  %v2832_v6 = vld [vmem:[%s3000_s26 + $0x8c] ss:$68 sps:$4 sm:$0xff]  }
  0xc6   : > { %1490 = vmatpush1.bf16.msra.mxu0 %v1292_v5  ;;  %1552 = vmatprep.mubr.bf16.mxu1 %v2934_v0 }
  0xc7   : > { %v1134_v7 = vpop.permute.xlu1 %1133  ;;  %v1174_v8 = vpop.permute.xlu0 %1173 }
  0xc8   : > { %v1227_v9 = vsel %vm1183_vm2, %v1172_v2, %v1174_v8  ;;  %v1208_v14 = vsel %vm1183_vm2, %v1132_v53, %v1134_v7  ;;  %v2670_v2 = vcombine.high %v1692_v57, %v1692_v57 }
  0xc9   : > { %2628 = vmatprep.subr.msk.bf16.mxu1 %vm460_vm0, %v1227_v9  ;;  %v1911_v9 = vsel %vm460_vm0, %v2669_v3, 0 }
  0xca   : > { %1531 = vmatpush1.bf16.msra.mxu1 %v1298_v10  ;;  %v2839_v10 = vld [vmem:[%s3000_s26 + $0x8] ss:$68 sps:$4 sm:$0xff]  }
  0xcb   : > { %v1138_v11 = vpop.permute.xlu1 %1137  ;;  %v1136_v12 = vpop.permute.xlu0 %1135 }
  0xcc   : > { %v1209_v13 = vsel %vm1183_vm2, %v1134_v7, %v1136_v12  ;;  %v1210_v18 = vsel %vm1183_vm2, %v1136_v12, %v1138_v11  ;;  %v1693_v12 = vld [vmem:[%s3000_s26 + $0x124] sm:$0xff] }
  0xcd   : > { %1491 = vmatprep.subr.bf16.mxu0 %v1209_v13 }
  0xce   : > { %1492 = vmatpush1.bf16.msra.mxu0 %v1208_v14 }
  0xcf   : > { %v1100_v15 = vpop.permute.xlu1 %1099  ;;  %v1140_v16 = vpop.permute.xlu0 %1139 }
  0xd0   : > { %v1211_v17 = vsel %vm1183_vm2, %v1138_v11, %v1140_v16  ;;  %v1192_v22 = vsel %vm1183_vm2, %v1098_v61, %v1100_v15  ;;  %v2842_v11 = vld [vmem:[%s3000_s26 + $0x98] ss:$68 sps:$4 sm:$0xff]  }
  0xd1   : > { %1532 = vmatprep.subr.bf16.mxu1 %v1211_v17 }
  0xd2   : > { %1533 = vmatpush1.bf16.msra.mxu1 %v1210_v18 }
  0xd3   : > { %v1104_v19 = vpop.permute.xlu1 %1103  ;;  %v1102_v20 = vpop.permute.xlu0 %1101 }
  0xd4   : > { %v1193_v21 = vsel %vm1183_vm2, %v1100_v15, %v1102_v20  ;;  %v1194_v26 = vsel %vm1183_vm2, %v1102_v20, %v1104_v19  ;;  %v2837_v15 = vld [vmem:[%s3000_s26 + $0x4] ss:$68 sps:$4 sm:$0xff]   ;;  %v2672_v20 = vcombine.high %v1693_v12, %v1693_v12 }
  0xd5   : > { %1493 = vmatprep.subr.bf16.mxu0 %v1193_v21  ;;  %v2671_v21 = vcombine.low %v1693_v12, %v1693_v12 }
  0xd6   : > { %1494 = vmatpush1.bf16.msra.mxu0 %v1192_v22  ;;  %v1694_v22 = vld [vmem:[%s3000_s26 + $0x12c] sm:$0xff] }
  0xd7   : > { %v1176_v23 = vpop.permute.xlu1 %1175  ;;  %v1106_v24 = vpop.permute.xlu0 %1105 }
  0xd8   : > { %v1195_v25 = vsel %vm1183_vm2, %v1104_v19, %v1106_v24  ;;  %v1228_v27 = vsel %vm1183_vm2, %v1174_v8, %v1176_v23  ;;  %v2845_v19 = vld [vmem:[%s3000_s26 + $0x10] ss:$68 sps:$4 sm:$0xff]  }
  0xd9   : > { %2627 = vmatmul.mubr.msk.bf16.vlgmr.msra.gmra.mxu0 %vm456_vm1, %v3234_v34  ;;  %1534 = vmatprep.subr.bf16.mxu1 %v1195_v25  ;;  %v1304_v31 = vsel %vm460_vm0, %v1228_v27, 0  ;;  %v2843_v25 = vld [vmem:[%s3000_s26 + $0xc] ss:$68 sps:$4 sm:$0xff]   ;;  %v2850_v27 = vld [vmem:[%s3000_s26 + $0xa0] ss:$68 sps:$4 sm:$0xff]  }
  0xda   : > { %1535 = vmatpush1.bf16.msra.mxu1 %v1194_v26  ;;  %1593 = vmatprep.mubr.bf16.mxu0 %v2934_v0  ;;  %v1917_v26 = vsel %vm460_vm0, %v2671_v21, 0  ;;  %v2882_v21 = vld [vmem:[%s3000_s26 + $0xc0] ss:$68 sps:$4 sm:$0xff]  }
  0xdb   : > { %v1180_v28 = vpop.permute.xlu1 %1179  ;;  %v1178_v29 = vpop.permute.xlu0 %1177 }
  0xdc   : > { %v1229_v30 = vsel %vm1183_vm2, %v1176_v23, %v1178_v29  ;;  %v1230_v32 = vsel %vm1183_vm2, %v1178_v29, %v1180_v28  ;;  %v2673_v29 = vcombine.low %v1694_v22, %v1694_v22 }
  0xdd   : > { %2629 = vmatmul.mubr.msk.bf16.vlgmr.msra.gmra.mxu1 %vm456_vm1, %v3234_v34  ;;  %2630 = vmatprep.subr.msk.bf16.mxu0 %vm460_vm0, %v1229_v30  ;;  %v1310_v37 = vsel %vm460_vm0, %v1230_v32, 0  ;;  %v2848_v30 = vld [vmem:[%s3000_s26 + $0x9c] ss:$68 sps:$4 sm:$0xff]  }
  0xde   : > { %1572 = vmatpush1.bf16.msra.mxu0 %v1304_v31  ;;  %1634 = vmatprep.mubr.bf16.mxu1 %v2934_v0 }
  0xdf   : > { %v1142_v33 = vpop.permute.xlu1 %1141  ;;  %v1182_v35 = vpop.permute.xlu0 %1181 }
  0xe0   : > { %v1231_v36 = vsel %vm1183_vm2, %v1180_v28, %v1182_v35  ;;  %v1212_v41 = vsel %vm1183_vm2, %v1140_v16, %v1142_v33  ;;  %v2840_v16 = vld [vmem:[%s3000_s26 + $0x94] ss:$68 sps:$4 sm:$0xff]   ;;  %v2674_v28 = vcombine.high %v1694_v22, %v1694_v22 }
  0xe1   : > { %2632 = vmatprep.subr.msk.bf16.mxu1 %vm460_vm0, %v1231_v36  ;;  %v2855_v35 = vld [vmem:[%s3000_s26 + $0x18] ss:$68 sps:$4 sm:$0xff]   ;;  %v2858_v36 = vld [vmem:[%s3000_s26 + $0xa8] ss:$68 sps:$4 sm:$0xff]  }
  0xe2   : > { %1613 = vmatpush1.bf16.msra.mxu1 %v1310_v37  ;;  %v1695_v37 = vld [vmem:[%s3000_s26 + $0x134] sm:$0xff] }
  0xe3   : > { %v1146_v38 = vpop.permute.xlu1 %1145  ;;  %v1144_v39 = vpop.permute.xlu0 %1143  ;;  %v2676_v47 = vcombine.high %v1695_v37, %v1695_v37 }
  0xe4   : > { %v1213_v40 = vsel %vm1183_vm2, %v1142_v33, %v1144_v39  ;;  %v1214_v50 = vsel %vm1183_vm2, %v1144_v39, %v1146_v38  ;;  %v1923_v33 = vsel %vm460_vm0, %v2673_v29, 0  ;;  %v2888_v29 = vld [vmem:[%s3000_s26 + $0xc4] ss:$68 sps:$4 sm:$0xff]  }
  0xe5   : > { %1573 = vmatprep.subr.bf16.mxu0 %v1213_v40  ;;  %v2853_v40 = vld [vmem:[%s3000_s26 + $0x14] ss:$68 sps:$4 sm:$0xff]  }
  0xe6   : > { %1574 = vmatpush1.bf16.msra.mxu0 %v1212_v41  ;;  %v3297_v42 = vpop.f32.mrf.mxu1  ;;  %v3299_v43 = vpop.f32.mrf.mxu0  ;;  %v2856_v41 = vld [vmem:[%s3000_s26 + $0xa4] ss:$68 sps:$4 sm:$0xff]  }
  0xe7   : > { %v1108_v44 = vpop.permute.xlu1 %1107  ;;  %v1148_v45 = vpop.permute.xlu0 %1147 }
  0xe8   : > { %v1215_v46 = vsel %vm1183_vm2, %v1146_v38, %v1148_v45  ;;  %v3303_v48 = vpop.f32.mrf.mxu1  ;;  %v3305_v49 = vpop.f32.mrf.mxu0  ;;  %v1196_v60 = vsel %vm1183_vm2, %v1106_v24, %v1108_v44 }
  0xe9   : > { %1614 = vmatprep.subr.bf16.mxu1 %v1215_v46  ;;  %v2861_v46 = vld [vmem:[%s3000_s26 + $0x20] ss:$68 sps:$4 sm:$0xff]  }
  0xea   : > { %1615 = vmatpush1.bf16.msra.mxu1 %v1214_v50  ;;  %v588_v51 = vpop.f32.mrf.mxu1  ;;  %v547_v52 = vpop.f32.mrf.mxu0  ;;  %v2675_v50 = vcombine.low %v1695_v37, %v1695_v37 }
  0xeb   : > { %v1110_v53 = vpop.permute.xlu0 %1109  ;;  %v1112_v61 = vpop.permute.xlu1 %1111  ;;  %v1696_v51 = vld [vmem:[%s3000_s26 + $0x13c] sm:$0xff] }
  0xec   : > { %v1197_v56 = vsel %vm1183_vm2, %v1108_v44, %v1110_v53  ;;  %v589_v58 = vpop.f32.mrf.mxu1  ;;  %v548_v59 = vpop.f32.mrf.mxu0  ;;  %v1198_v5 = vsel %vm1183_vm2, %v1110_v53, %v1112_v61  ;;  %v1929_v55 = vsel %vm460_vm0, %v2675_v50, 0  ;;  %v2678_v57 = vcombine.high %v1696_v51, %v1696_v51 }
  0xed   : > { %1575 = vmatprep.subr.bf16.mxu0 %v1197_v56  ;;  %v2866_v56 = vld [vmem:[%s3000_s26 + $0xb0] ss:$68 sps:$4 sm:$0xff]   ;;  %v2677_v58 = vcombine.low %v1696_v51, %v1696_v51 }
  0xee   : > { %1576 = vmatpush1.bf16.msra.mxu0 %v1196_v60  ;;  %v2864_v59 = vld [vmem:[%s3000_s26 + $0xac] ss:$68 sps:$4 sm:$0xff]  }
  0xef   : > { %v1114_v62 = vpop.permute.xlu0 %1113  ;;  %2683 = vmatprep.subr.msk.bf16.mxu0 %vm460_vm0, %v2668_v54  ;;  %v2859_v54 = vld [vmem:[%s3000_s26 + $0x1c] ss:$68 sps:$4 sm:$0xff]  }
  0xf0   : > { %v1199_v4 = vsel %vm1183_vm2, %v1112_v61, %v1114_v62  ;;  %v1935_v62 = vsel %vm460_vm0, %v2677_v58, 0 }
  0xf1   : > { %2631 = vmatmul.mubr.msk.bf16.vlgmr.msra.gmra.mxu0 %vm456_vm1, %v3234_v34  ;;  %1616 = vmatprep.subr.bf16.mxu1 %v1199_v4 }
  0xf2   : > { %1617 = vmatpush1.bf16.msra.mxu1 %v1198_v5  ;;  %1963 = vmatpush1.bf16.msra.mxu0 %v1905_v63  ;;  %v3319_v7 = vpop.f32.mrf.mxu1  ;;  %v3321_v8 = vpop.f32.mrf.mxu0  ;;  %v2871_v63 = vld [vmem:[%s3000_s26 + $0x28] ss:$68 sps:$4 sm:$0xff]  }
  0xf3   : > { %1964 = vmatprep.subr.bf16.mxu0 %v2834_v1  ;;  %2685 = vmatprep.subr.msk.bf16.mxu1 %vm460_vm0, %v2670_v2  ;;  %v2874_v1 = vld [vmem:[%s3000_s26 + $0xb8] ss:$68 sps:$4 sm:$0xff]   ;;  %v1697_v2 = vld [vmem:[%s3000_s26 + $0x144] sm:$0xff] }
  0xf4   : > { %1984 = vmatprep.mubr.bf16.mxu0 %v2934_v0  ;;  %v3329_v13 = vpop.f32.mrf.mxu1  ;;  %v3331_v14 = vpop.f32.mrf.mxu0  ;;  %v2869_v5 = vld [vmem:[%s3000_s26 + $0x24] ss:$68 sps:$4 sm:$0xff]   ;;  %v2680_v12 = vcombine.high %v1697_v2, %v1697_v2 }
  0xf5   : > { %2633 = vmatmul.mubr.msk.bf16.vlgmr.msra.gmra.mxu1 %vm456_vm1, %v3234_v34  ;;  %v3343_v34 = vld [vmem:[%s3516_s1 + $0x8] sm:$0xf] }
  0xf6   : > { %1965 = vmatpush1.bf16.msra.mxu0 %v2832_v6  ;;  %2004 = vmatpush1.bf16.msra.mxu1 %v1911_v9  ;;  %v670_v17 = vpop.f32.mrf.mxu1  ;;  %v629_v18 = vpop.f32.mrf.mxu0  ;;  %v2872_v6 = vld [vmem:[%s3000_s26 + $0xb4] ss:$68 sps:$4 sm:$0xff]  }
  0xf7   : > { %1966 = vmatprep.subr.bf16.mxu0 %v2839_v10  ;;  %2005 = vmatprep.subr.bf16.mxu1 %v2842_v11  ;;  %v2877_v11 = vld [vmem:[%s3000_s26 + $0x30] ss:$68 sps:$4 sm:$0xff]  }
  0xf8   : > { %2025 = vmatprep.mubr.bf16.mxu1 %v2934_v0  ;;  %v671_v23 = vpop.f32.mrf.mxu1  ;;  %v630_v24 = vpop.f32.mrf.mxu0 }
  0xf9   : > { %v2880_v24 = vld [vmem:[%s3000_s26 + $0xbc] ss:$68 sps:$4 sm:$0xff]  }
  0xfa   : > { %1967 = vmatpush1.bf16.msra.mxu0 %v2837_v15  ;;  %2006 = vmatpush1.bf16.msra.mxu1 %v2840_v16  ;;  %v2679_v15 = vcombine.low %v1697_v2, %v1697_v2  ;;  %v1698_v16 = vld [vmem:[%s3000_s26 + $0x14c] sm:$0xff] }
  0xfb   : > { %2007 = vmatprep.subr.bf16.mxu1 %v2845_v19  ;;  %2687 = vmatprep.subr.msk.bf16.mxu0 %vm460_vm0, %v2672_v20  ;;  %v2875_v19 = vld [vmem:[%s3000_s26 + $0x2c] ss:$68 sps:$4 sm:$0xff]   ;;  %v2682_v22 = vcombine.high %v1698_v16, %v1698_v16  ;;  %v2681_v23 = vcombine.low %v1698_v16, %v1698_v16 }
  0xfc   : > { %v1941_v20 = vsel %vm460_vm0, %v2679_v15, 0 }
  0xfd   : > { %2684 = vmatmul.mubr.msk.bf16.vlgmr.msra.gmra.mxu0 %vm456_vm1, %v3343_v34 }
  0xfe   : > { %2008 = vmatpush1.bf16.msra.mxu1 %v2843_v25  ;;  %2045 = vmatpush1.bf16.msra.mxu0 %v1917_v26  ;;  %v3352_v31 = vpop.f32.mrf.mxu1  ;;  %v3354_v32 = vpop.f32.mrf.mxu0  ;;  %v1947_v25 = vsel %vm460_vm0, %v2681_v23, 0  ;;  %v2887_v26 = vld [vmem:[%s3000_s26 + $0x38] ss:$68 sps:$4 sm:$0xff]  }
  0xff   : > { %2046 = vmatprep.subr.bf16.mxu0 %v2850_v27  ;;  %2689 = vmatprep.subr.msk.bf16.mxu1 %vm460_vm0, %v2674_v28  ;;  %v2890_v27 = vld [vmem:[%s3000_s26 + $0xc8] ss:$68 sps:$4 sm:$0xff]   ;;  %v2885_v28 = vld [vmem:[%s3000_s26 + $0x34] ss:$68 sps:$4 sm:$0xff]  }
 0x100   : > { %2066 = vmatprep.mubr.bf16.mxu0 %v2934_v0  ;;  %v3362_v38 = vpop.f32.mrf.mxu1  ;;  %v3364_v39 = vpop.f32.mrf.mxu0 }
 0x101   : > { %2686 = vmatmul.mubr.msk.bf16.vlgmr.msra.gmra.mxu1 %vm456_vm1, %v3343_v34 }
 0x102   : > { %2047 = vmatpush1.bf16.msra.mxu0 %v2848_v30  ;;  %2086 = vmatpush1.bf16.msra.mxu1 %v1923_v33  ;;  %v752_v44 = vpop.f32.mrf.mxu1  ;;  %v711_v45 = vpop.f32.mrf.mxu0  ;;  %v2893_v30 = vld [vmem:[%s3000_s26 + $0x40] ss:$68 sps:$4 sm:$0xff]  }
 0x103   : > { %2048 = vmatprep.subr.bf16.mxu0 %v2855_v35  ;;  %2087 = vmatprep.subr.bf16.mxu1 %v2858_v36  ;;  %v2891_v33 = vld [vmem:[%s3000_s26 + $0x3c] ss:$68 sps:$4 sm:$0xff]   ;;  %v3424_v35 = vpop.permute.xlu1 %212 }
 0x104   : > { %2107 = vmatprep.mubr.bf16.mxu1 %v2934_v0  ;;  %v753_v52 = vpop.f32.mrf.mxu1  ;;  %v712_v53 = vpop.f32.mrf.mxu0  ;;  %v839_v36 = vadd.f32 %v3297_v42, %v3424_v35  ;;  %v837_v44 = vadd.f32 %v3299_v43, %v3424_v35  ;;  %v842_v43 = vadd.f32 %v3331_v14, %v3424_v35 }
 0x106   : > { %2049 = vmatpush1.bf16.msra.mxu0 %v2853_v40  ;;  %2088 = vmatpush1.bf16.msra.mxu1 %v2856_v41 }
 0x107   : > { %2089 = vmatprep.subr.bf16.mxu1 %v2861_v46  ;;  %2691 = vmatprep.subr.msk.bf16.mxu0 %vm460_vm0, %v2676_v47 }
 0x109   : > { %2688 = vmatmul.mubr.msk.bf16.vlgmr.msra.gmra.mxu0 %vm456_vm1, %v3343_v34 }
 0x10a   : > { %2090 = vmatpush1.bf16.msra.mxu1 %v2859_v54  ;;  %2127 = vmatpush1.bf16.msra.mxu0 %v1929_v55  ;;  %v3380_v60 = vpop.f32.mrf.mxu1  ;;  %v3382_v61 = vpop.f32.mrf.mxu0  ;;  %v841_v55 = vadd.f32 %v3321_v8, %v3424_v35 }
 0x10b   : > { %2128 = vmatprep.subr.bf16.mxu0 %v2866_v56  ;;  %2693 = vmatprep.subr.msk.bf16.mxu1 %vm460_vm0, %v2678_v57 }
 0x10c   : > { %2148 = vmatprep.mubr.bf16.mxu0 %v2934_v0  ;;  %v3390_v3 = vpop.f32.mrf.mxu1  ;;  %v3392_v4 = vpop.f32.mrf.mxu0 }
 0x10d   : > { %2690 = vmatmul.mubr.msk.bf16.vlgmr.msra.gmra.mxu1 %vm456_vm1, %v3343_v34 }
 0x10e   : > { %2129 = vmatpush1.bf16.msra.mxu0 %v2864_v59  ;;  %2168 = vmatpush1.bf16.msra.mxu1 %v1935_v62  ;;  %v834_v9 = vpop.f32.mrf.mxu1  ;;  %v793_v10 = vpop.f32.mrf.mxu0  ;;  %v843_v59 = vadd.f32 %v3319_v7, %v3424_v35 }
 0x10f   : > { %2130 = vmatprep.subr.bf16.mxu0 %v2871_v63  ;;  %2169 = vmatprep.subr.bf16.mxu1 %v2874_v1  ;;  %v844_v1 = vadd.f32 %v3329_v13, %v3424_v35 }
 0x110   : > { %2189 = vmatprep.mubr.bf16.mxu1 %v2934_v0  ;;  %v835_v17 = vpop.f32.mrf.mxu1  ;;  %v794_v18 = vpop.f32.mrf.mxu0 }
 0x112   : > { %2131 = vmatpush1.bf16.msra.mxu0 %v2869_v5  ;;  %2170 = vmatpush1.bf16.msra.mxu1 %v2872_v6 }
 0x113   : > { %2171 = vmatprep.subr.bf16.mxu1 %v2877_v11  ;;  %2695 = vmatprep.subr.msk.bf16.mxu0 %vm460_vm0, %v2680_v12 }
 0x115   : > { %2692 = vmatmul.mubr.msk.bf16.vlgmr.msra.gmra.mxu0 %vm456_vm1, %v3343_v34 }
 0x116   : > { %2172 = vmatpush1.bf16.msra.mxu1 %v2875_v19  ;;  %2209 = vmatpush1.bf16.msra.mxu0 %v1941_v20 }
 0x117   : > { %2210 = vmatprep.subr.bf16.mxu0 %v2882_v21  ;;  %2697 = vmatprep.subr.msk.bf16.mxu1 %vm460_vm0, %v2682_v22 }
 0x118   : > { %2230 = vmatprep.mubr.bf16.mxu0 %v2934_v0 }
 0x119   : > { %2694 = vmatmul.mubr.msk.bf16.vlgmr.msra.gmra.mxu1 %vm456_vm1, %v3343_v34 }
 0x11a   : > { %2211 = vmatpush1.bf16.msra.mxu0 %v2880_v24  ;;  %2250 = vmatpush1.bf16.msra.mxu1 %v1947_v25 }
 0x11b   : > { %2212 = vmatprep.subr.bf16.mxu0 %v2887_v26  ;;  %2251 = vmatprep.subr.bf16.mxu1 %v2890_v27 }
 0x11c   : > { %2271 = vmatprep.mubr.bf16.mxu1 %v2934_v0  ;;  %v840_v0 = vadd.f32 %v3303_v48, %v3424_v35 }
 0x11e   : > { %2213 = vmatpush1.bf16.msra.mxu0 %v2885_v28  ;;  %2252 = vmatpush1.bf16.msra.mxu1 %v2888_v29 }
 0x11f   : > { %2253 = vmatprep.subr.bf16.mxu1 %v2893_v30 }
 0x121   : > { %2696 = vmatmul.mubr.msk.bf16.vlgmr.msra.gmra.mxu0 %vm456_vm1, %v3343_v34 }
 0x122   : > { %2254 = vmatpush1.bf16.msra.mxu1 %v2891_v33 }
 0x125   : > { %2698 = vmatmul.mubr.msk.bf16.vlgmr.msra.gmra.mxu1 %vm456_vm1, %v3343_v34  ;;  %v838_v34 = vadd.f32 %v3305_v49, %v3424_v35 }
 0x169   : > { %v1390_v37 = vpop.f32.mrf.mxu1 }
 0x16a   : > { %v1645_v40 = vadd.f32 %v1390_v37, %v839_v36 }
 0x16b   : > { %v1392_v41 = vpop.f32.mrf.mxu1 }
 0x16c   : > { %v1646_v45 = vadd.f32 %v1392_v41, %v840_v0  ;;  %v1349_v46 = vpop.f32.mrf.mxu0 }
 0x16d   : > { %v1643_v47 = vadd.f32 %v1349_v46, %v837_v44  ;;  %v1394_v50 = vpop.f32.mrf.mxu1 }
 0x16e   : > { %v1351_v51 = vpop.f32.mrf.mxu0 }
 0x16f   : > { %v1644_v52 = vadd.f32 %v1351_v51, %v838_v34  ;;  %v1395_v53 = vpop.f32.mrf.mxu1 }
 0x170   : > { %v1353_v42 = vpop.f32.mrf.mxu0 }
 0x172   : > { %v1354_v54 = vpop.f32.mrf.mxu0 }
 0x181   : > { %v1431_v48 = vpop.f32.mrf.mxu0 }
 0x182   : > { %v1647_v56 = vadd.f32 %v1431_v48, %v841_v55 }
 0x183   : > { %v1433_v57 = vpop.f32.mrf.mxu0 }
 0x184   : > { %v1648_v58 = vadd.f32 %v1433_v57, %v842_v43 }
 0x185   : > { %v1472_v49 = vpop.f32.mrf.mxu1  ;;  %v1435_v62 = vpop.f32.mrf.mxu0 }
 0x186   : > { %v1649_v63 = vadd.f32 %v1472_v49, %v843_v59 }
 0x187   : > { %v1474_v2 = vpop.f32.mrf.mxu1  ;;  %v1436_v5 = vpop.f32.mrf.mxu0 }
 0x188   : > { %v3442_v8 = vadd.f32 %v1474_v2, %v844_v1 }
 0x189   : > { %v1476_v6 = vpop.f32.mrf.mxu1 }
 0x18b   : > { %v1477_v9 = vpop.f32.mrf.mxu1 }
 0x199   : > { %v3444_v10 = vpop.f32.mrf.mxu0 }
 0x19b   : > { %v3446_v14 = vpop.f32.mrf.mxu0 }
 0x19d   : > { %v3448_v11 = vpop.f32.mrf.mxu1  ;;  %v1517_v7 = vpop.f32.mrf.mxu0 }
 0x19f   : > { %v3450_v12 = vpop.f32.mrf.mxu1  ;;  %v1518_v15 = vpop.f32.mrf.mxu0 }
 0x1a1   : > { %v1558_v16 = vpop.f32.mrf.mxu1 }
 0x1a3   : > { %v1559_v13 = vpop.f32.mrf.mxu1 }
 0x1b1   : > { %v3452_v17 = vpop.f32.mrf.mxu0 }
 0x1b3   : > { %v3454_v18 = vpop.f32.mrf.mxu0 }
 0x1b5   : > { %v1599_v19 = vpop.f32.mrf.mxu0  ;;  %v3457_v20 = vpop.f32.mrf.mxu1 }
 0x1b7   : > { %v1600_v21 = vpop.f32.mrf.mxu0  ;;  %v3459_v22 = vpop.f32.mrf.mxu1 }
 0x1b9   : > { %v1640_v23 = vpop.f32.mrf.mxu1 }
 0x1bb   : > { %v1641_v24 = vpop.f32.mrf.mxu1 }
 0x1bd   : > { %v1986_v25 = vpop.f32.mrf.mxu0 }
 0x1be   : > { %v2280_v26 = vadd.f32 %v1986_v25, %v1643_v47 }
 0x1bf   : > { %v1988_v27 = vpop.f32.mrf.mxu0 }
 0x1c0   : > { %v2296_v28 = vmul.f32 0.2, %v2280_v26  ;;  %v2281_v29 = vadd.f32 %v1988_v27, %v1644_v52 }
 0x1c1   : > { %v1990_v30 = vpop.f32.mrf.mxu0  ;;  %v2027_v33 = vpop.f32.mrf.mxu1 }
 0x1c2   : > { %v2297_v36 = vmul.f32 0.2, %v2281_v29  ;;  %v2282_v37 = vadd.f32 %v2027_v33, %v1645_v40  ;;  %v2312_v44 = vmax.f32 %v2280_v26, %v2296_v28 }
 0x1c3   : > { %v1991_v0 = vpop.f32.mrf.mxu0  ;;  %v2029_v41 = vpop.f32.mrf.mxu1 }
 0x1c4   : > { %v2313_v46 = vmax.f32 %v2281_v29, %v2297_v36  ;;  %v2298_v34 = vmul.f32 0.2, %v2282_v37  ;;  %v2283_v50 = vadd.f32 %v2029_v41, %v1646_v45 }
 0x1c5   : > { %v2031_v47 = vpop.f32.mrf.mxu1 }
 0x1c6   : > { %v2709_v51 = vpack.c.bf16 %v2313_v46, %v2312_v44  ;;  %v2299_v52 = vmul.f32 0.2, %v2283_v50  ;;  %v2314_v42 = vmax.f32 %v2282_v37, %v2298_v34 }
 0x1c7   : > { %v2032_v53 = vpop.f32.mrf.mxu1 }
 0x1c8   : > { %2392 = vst [vmem:[%s3465_s13] sm:$0xff] %v2709_v51  ;;  %v2315_v40 = vmax.f32 %v2283_v50, %v2299_v52 }
 0x1c9   : > { %v2068_v54 = vpop.f32.mrf.mxu0 }
 0x1ca   : > { %v2710_v55 = vpack.c.bf16 %v2315_v40, %v2314_v42  ;;  %v2284_v48 = vadd.f32 %v2068_v54, %v1647_v56  ;;  %v845_v56 = vadd.f32 %v3354_v32, %v3424_v35 }
 0x1cb   : > { %v2070_v43 = vpop.f32.mrf.mxu0 }
 0x1cc   : > { %2393 = vst [vmem:[%s3465_s13 + $0x8] sm:$0xff] %v2710_v55  ;;  %v2300_v45 = vmul.f32 0.2, %v2284_v48  ;;  %v2285_v57 = vadd.f32 %v2070_v43, %v1648_v58  ;;  %v1651_v21 = vadd.f32 %v3444_v10, %v845_v56  ;;  %v848_v10 = vadd.f32 %v3362_v38, %v3424_v35 }
 0x1cd   : > { %v2072_v59 = vpop.f32.mrf.mxu0  ;;  %v2109_v49 = vpop.f32.mrf.mxu1  ;;  %v849_v38 = vadd.f32 %v3382_v61, %v3424_v35 }
 0x1ce   : > { %v2301_v62 = vmul.f32 0.2, %v2285_v57  ;;  %v2286_v1 = vadd.f32 %v2109_v49, %v1649_v63  ;;  %v2316_v6 = vmax.f32 %v2284_v48, %v2300_v45  ;;  %v846_v63 = vadd.f32 %v3364_v39, %v3424_v35 }
 0x1cf   : > { %v2073_v2 = vpop.f32.mrf.mxu0  ;;  %v2111_v5 = vpop.f32.mrf.mxu1  ;;  %v1654_v37 = vadd.f32 %v3450_v12, %v848_v10  ;;  %v850_v12 = vadd.f32 %v3392_v4, %v3424_v35  ;;  %v1655_v53 = vadd.f32 %v3452_v17, %v849_v38  ;;  %v851_v48 = vadd.f32 %v3380_v60, %v3424_v35 }
 0x1d0   : > { %v2317_v9 = vmax.f32 %v2285_v57, %v2301_v62  ;;  %v2302_v7 = vmul.f32 0.2, %v2286_v1  ;;  %v2287_v15 = vadd.f32 %v2111_v5, %v3442_v8  ;;  %v1652_v26 = vadd.f32 %v3446_v14, %v846_v63 }
 0x1d1   : > { %v2113_v16 = vpop.f32.mrf.mxu1  ;;  %v847_v8 = vadd.f32 %v3352_v31, %v3424_v35  ;;  %v1656_v55 = vadd.f32 %v3454_v18, %v850_v12  ;;  %v852_v57 = vadd.f32 %v3390_v3, %v3424_v35  ;;  %v1657_v59 = vadd.f32 %v3457_v20, %v851_v48 }
 0x1d2   : > { %v2711_v13 = vpack.c.bf16 %v2317_v9, %v2316_v6  ;;  %v2303_v19 = vmul.f32 0.2, %v2287_v15  ;;  %v2318_v23 = vmax.f32 %v2286_v1, %v2302_v7 }
 0x1d3   : > { %v2114_v58 = vpop.f32.mrf.mxu1  ;;  %v1653_v29 = vadd.f32 %v3448_v11, %v847_v8  ;;  %v1658_v1 = vadd.f32 %v3459_v22, %v852_v57 }
 0x1d4   : > { %2394 = vst [vmem:[%s3465_s13 + $0x10] sm:$0xff] %v2711_v13  ;;  %v2319_v24 = vmax.f32 %v2287_v15, %v2303_v19 }
 0x1d5   : > { %v2150_v25 = vpop.f32.mrf.mxu0 }
 0x1d6   : > { %v2712_v27 = vpack.c.bf16 %v2319_v24, %v2318_v23  ;;  %v2288_v32 = vadd.f32 %v2150_v25, %v1651_v21 }
 0x1d7   : > { %v2152_v28 = vpop.f32.mrf.mxu0 }
 0x1d8   : > { %2395 = vst [vmem:[%s3465_s13 + $0x18] sm:$0xff] %v2712_v27  ;;  %v2304_v30 = vmul.f32 0.2, %v2288_v32  ;;  %v2289_v39 = vadd.f32 %v2152_v28, %v1652_v26 }
 0x1d9   : > { %v2154_v33 = vpop.f32.mrf.mxu0  ;;  %v2191_v36 = vpop.f32.mrf.mxu1 }
 0x1da   : > { %v2305_v14 = vmul.f32 0.2, %v2289_v39  ;;  %v2290_v0 = vadd.f32 %v2191_v36, %v1653_v29  ;;  %v2320_v44 = vmax.f32 %v2288_v32, %v2304_v30 }
 0x1db   : > { %v2155_v41 = vpop.f32.mrf.mxu0  ;;  %v2193_v31 = vpop.f32.mrf.mxu1 }
 0x1dc   : > { %v2321_v46 = vmax.f32 %v2289_v39, %v2305_v14  ;;  %v2306_v34 = vmul.f32 0.2, %v2290_v0  ;;  %v2291_v50 = vadd.f32 %v2193_v31, %v1654_v37 }
 0x1dd   : > { %v2195_v11 = vpop.f32.mrf.mxu1 }
 0x1de   : > { %v2713_v47 = vpack.c.bf16 %v2321_v46, %v2320_v44  ;;  %v2307_v51 = vmul.f32 0.2, %v2291_v50  ;;  %v2322_v42 = vmax.f32 %v2290_v0, %v2306_v34 }
 0x1df   : > { %v2196_v52 = vpop.f32.mrf.mxu1 }
 0x1e0   : > { %2396 = vst [vmem:[%s3465_s13 + $0x20] sm:$0xff] %v2713_v47  ;;  %v2323_v40 = vmax.f32 %v2291_v50, %v2307_v51 }
 0x1e1   : > { %v2232_v54 = vpop.f32.mrf.mxu0 }
 0x1e2   : > { %v2714_v43 = vpack.c.bf16 %v2323_v40, %v2322_v42  ;;  %v2292_v61 = vadd.f32 %v2232_v54, %v1655_v53 }
 0x1e3   : > { %v2234_v45 = vpop.f32.mrf.mxu0 }
 0x1e4   : > { %2397 = vst [vmem:[%s3465_s13 + $0x28] sm:$0xff] %v2714_v43  ;;  %v2308_v4 = vmul.f32 0.2, %v2292_v61  ;;  %v2293_v17 = vadd.f32 %v2234_v45, %v1656_v55 }
 0x1e5   : > { %v2236_v49 = vpop.f32.mrf.mxu0  ;;  %v2273_v62 = vpop.f32.mrf.mxu1 }
 0x1e6   : > { %v2309_v18 = vmul.f32 0.2, %v2293_v17  ;;  %v2294_v2 = vadd.f32 %v2273_v62, %v1657_v59  ;;  %v2324_v6 = vmax.f32 %v2292_v61, %v2308_v4 }
 0x1e7   : > { %v2237_v60 = vpop.f32.mrf.mxu0  ;;  %v2275_v5 = vpop.f32.mrf.mxu1 }
 0x1e8   : > { %v2325_v9 = vmax.f32 %v2293_v17, %v2309_v18  ;;  %v2310_v7 = vmul.f32 0.2, %v2294_v2  ;;  %v2295_v15 = vadd.f32 %v2275_v5, %v1658_v1 }
 0x1e9   : > { %v2277_v3 = vpop.f32.mrf.mxu1 }
 0x1ea   : > { %v2715_v35 = vpack.c.bf16 %v2325_v9, %v2324_v6  ;;  %v2311_v20 = vmul.f32 0.2, %v2295_v15  ;;  %v2326_v56 = vmax.f32 %v2294_v2, %v2310_v7 }
 0x1eb   : > { %v2278_v16 = vpop.f32.mrf.mxu1 }
 0x1ec   : > { %2398 = vst [vmem:[%s3465_s13 + $0x30] sm:$0xff] %v2715_v35  ;;  %v2327_v13 = vmax.f32 %v2295_v15, %v2311_v20 }
 0x1ee   : > { %v2716_v19 = vpack.c.bf16 %v2327_v13, %v2326_v56 }
 0x1f0   : > { %2399 = vst [vmem:[%s3465_s13 + $0x38] sm:$0xff] %v2716_v19 }
 0x1f1 PF: > { %s13_s16 = sadd.s32 1, %s2932_s16   ;;  %s3519_s12 = smov %s2924_s14 }
 0x1f2   : > { %p10_p8 = scmp.ge.s32.totalorder %s13_s16, 6   ;;  %s3520_s13 = smov %s2928_s15 }
 0x1f3   : > { %s3521_s14 = smov %s3524_s17  ;;  %s3522_s15 = smov %s3528_s18 }
 0x1f4   :  { %12 = sbr.rel (!%p10_p8) target bundleno = 3 (0x3), region = 64 }

// kernel: global_dis_forward.6
= control target key start
LH: loop header
LB: loop body
LE: loop exit
PB: predicated region body
PF: predicated region fallthrough
CT: control target
= control target key end

     0   :  { %s1371_s12 = smov 0   ;;  %s1373_s13 = smov 0   ;;  %s1661_s0 = inlined_call_operand.vmem [shape: bf16[2,2,80,640], index: 0, kind: input, shape index: {}]   ;;  %s1662_s1 = inlined_call_operand.vmem [shape: bf16[3,16,80], index: 1, kind: input, shape index: {}]   ;;  %s1663_s2 = inlined_call_operand.vmem [shape: f32[16,1], index: 2, kind: input, shape index: {}]   ;;  %s1664_s3 = inlined_call_operand.vmem [shape: bf16[2,16,1024], index: 3, kind: output, shape index: {}]  }
   0x1   :  { %s1375_s14 = smov 0   ;;  %s1377_s15 = smov 0  }
   0x2   :  { %s1379_s16 = smov 0   ;;  %s1381_s17 = smov 0  }
   0x3   :  { %s1383_s18 = smov 0  }
   0x4 LB: > { %s22_s19 = sadd.s32 1, %s1338_s16  ;;  %s25_s20 = sadd.s32 1, %s1342_s17  ;;  %s1346_s18 = sphi %s1383_s18, %s13_s18   ;;  %s1342_s17 = sphi %s1381_s17, %s1671_s17   ;;  %s1338_s16 = sphi %s1379_s16, %s1670_s16   ;;  %s1334_s15 = sphi %s1377_s15, %s1669_s15   ;;  %s1330_s14 = sphi %s1375_s14, %s1668_s14   ;;  %s1326_s13 = sphi %s1373_s13, %s1667_s13   ;;  %s1322_s12 = sphi %s1371_s12, %s1666_s12  }
   0x5   : > { %p23_p0 = scmp.ge.s32.totalorder %s22_s19, 2  ;;  %s1112_s21 = sadd.s32 4294967295, %s1346_s18  }
   0x6   : > { %p114_p1 = scmp.ne.s32.totalorder %s1326_s13, %s1322_s12  ;;  %p115_p2 = scmp.eq.s32.totalorder %s1112_s21, 3 }
   0x7   : > { %s1673_s19 = smov (%p23_p0, %s22_s19), 0  ;;  %s1675_s20 = smov (!%p23_p0, %s25_s20), %s1342_s17 }
   0x8   : > { %s100_s22 = ssub.s32 %s1338_s16, %s1673_s19  ;;  %p27_p3 = scmp.ge.s32.totalorder %s1675_s20, 2 }
   0x9   : > { %p1116_p4 = scmp.ge.s32.totalorder %s1346_s18, 1  ;;  %p1417_p5 = por %p115_p2, %p114_p1 }
   0xa   : > { %p157_p6 = scmp.lt.s32.totalorder %s1346_s18, 5  ;;  %s1677_s20 = smov (%p27_p3, %s1675_s20), 0 }
   0xb   : > { %s99_s24 = ssub.s32 %s1342_s17, %s1677_s20  ;;  %s104_s26 = sadd.s32 1, %s1326_s13 }
   0xc   : > { %p158_p7 = pnand %p1116_p4, %p157_p6  ;;  %s101_s25 = sor.u32 %s100_s22, %s99_s24 }
   0xd   : > { %p102_p8 = scmp.eq.s32.totalorder %s101_s25, 0  ;;  %p184_p9 = scmp.lt.s32.totalorder (!%p158_p7), %s1334_s15, 1 }
   0xe   : > { %161 = sbr.rel (%p158_p7) target bundleno = 461 (0x1cd), region = 32  ;;  %p186_p10 = scmp.lt.s32.totalorder (!%p158_p7), %s1330_s14, 1 }
   0xf   : > { %s1428_s27 = scalar_select %p102_p8, %s1326_s13, %s104_s26  }
  0x10   : > { %s1349_s10 = smov (!%p158_p7), 96   ;;  %s1350_s22 = smov (!%p158_p7), 64  }
  0x13   : > { %s185_s28 = scalar_select %p184_p9, %s1334_s15, 1  ;;  %v1348_v0 = vmov 0   ;;  %v1289_v23 = vld [vmem:[%s1662_s1] sm:$0xff]   ;;  %vm334_vm0 = vcmask 654336   ;;  %v196_v27 = vld [vmem:[%s1663_s2 + $0x8] sm:$0xff]  ;;  %vm625_vm1 = vcmask 785408  }
  0x14   : > { %s187_s29 = scalar_select %p186_p10, %s1330_s14, 1  ;;  %413 = vmatprep.mubr.bf16.mxu1 %v1348_v0  ;;  %370 = vmatprep.mubr.bf16.mxu0 %v1348_v0  ;;  %v195_v28 = vld [vmem:[%s1663_s2] sm:$0xff]  ;;  %vm821_vm2 = vcmask 523264  }
  0x15   : > { %s1192_s30 = smul.u32 100, %s185_s28  ;;  %1253 = vset.pattern.permute.xlu1 %v1348_v0  ;;  %1252 = vset.pattern.permute.xlu0 %v1348_v0  ;;  %s1182_s8 = sshll.u32 (%p1417_p5), %s1330_s14, 2 }
  0x16   : > { %s1191_s4 = smul.u32 50, %s187_s29 }
  0x18   : > { %s190_s5 = sadd.s32 %s1192_s30, %s1191_s4 }
  0x19   : > { %s1118_s6 = sshll.u32 %s190_s5, 2 }
  0x1a   : > { %s1441_s9 = scalar_lea.vmem %s1661_s0, %s1118_s6  ;;  %s181_s6 = sand.u32 1, %s1322_s12  }
  0x1b   : > { %v1444_v1 = vld [vmem:[%s1441_s9 + $0xac] ss:$20 sps:$4 sm:$0xff]   ;;  %v1447_v2 = vld [vmem:[%s1441_s9 + $0xa8] ss:$20 sps:$4 sm:$0xff]   ;;  %v1452_v3 = vld [vmem:[%s1441_s9 + $0xa4] ss:$20 sps:$4 sm:$0xff]  }
  0x1c   : > { %621 = vrot.lane.b32.xlu1 %v1444_v1, %s1349_s10  ;;  %v1455_v4 = vld [vmem:[%s1441_s9 + $0xa0] ss:$20 sps:$4 sm:$0xff]   ;;  %387 = vmatprep.subr.bf16.mxu1 %v1444_v1  ;;  %v1459_v5 = vld [vmem:[%s1441_s9 + $0xb0] ss:$20 sps:$4 sm:$0xff]   ;;  %v1479_v9 = vld [vmem:[%s1441_s9 + $0x78] ss:$20 sps:$4 sm:$0xff]  }
  0x1d   : > { %388 = vmatpush1.bf16.msra.mxu1 %v1447_v2  ;;  %617 = vrot.lane.b32.xlu0 %v1452_v3, %s1349_s10  ;;  %v1465_v6 = vld [vmem:[%s1441_s9 + $0x7c] ss:$20 sps:$4 sm:$0xff]   ;;  %v1469_v7 = vld [vmem:[%s1441_s9 + $0x84] ss:$20 sps:$4 sm:$0xff]   ;;  %v1475_v8 = vld [vmem:[%s1441_s9 + $0x80] ss:$20 sps:$4 sm:$0xff]  }
  0x1e   : > { %344 = vmatprep.subr.bf16.mxu0 %v1452_v3  ;;  %389 = vmatprep.subr.bf16.mxu1 %v1469_v7  ;;  %v1486_v10 = vld [vmem:[%s1441_s9 + $0x54] ss:$20 sps:$4 sm:$0xff]   ;;  %v1492_v11 = vld [vmem:[%s1441_s9 + $0x58] ss:$20 sps:$4 sm:$0xff]   ;;  %v1495_v12 = vld [vmem:[%s1441_s9 + $0x5c] ss:$20 sps:$4 sm:$0xff]  }
  0x1f   : > { %345 = vmatpush1.bf16.msra.mxu0 %v1455_v4  ;;  %v1498_v13 = vld [vmem:[%s1441_s9 + $0x50] ss:$20 sps:$4 sm:$0xff]   ;;  %v1504_v14 = vld [vmem:[%s1441_s9 + $0x2c] ss:$20 sps:$4 sm:$0xff]   ;;  %v1508_v15 = vld [vmem:[%s1441_s9 + $0x34] ss:$20 sps:$4 sm:$0xff]  }
  0x20   : > { %623 = vrot.lane.b32.xlu1 %v1459_v5, %s1349_s10  ;;  %346 = vmatprep.subr.bf16.mxu0 %v1465_v6  ;;  %v1266_v16 = vld [vmem:[%s1441_s9 + $0x88] ss:$20 sps:$4 sm:$0xff]   ;;  %v1277_v17 = vld [vmem:[%s1441_s9 + $0x30] ss:$20 sps:$4 sm:$0xff]   ;;  %v1287_v20 = vld [vmem:[%s1441_s9 + $0xc] ss:$20 sps:$4 sm:$0xff]  }
  0x21   : > { %619 = vrot.lane.b32.xlu0 %v1447_v2, %s1349_s10  ;;  %390 = vmatpush1.bf16.msra.mxu1 %v1475_v8  ;;  %v1281_v18 = vld [vmem:[%s1441_s9 + $0x28] ss:$20 sps:$4 sm:$0xff]   ;;  %v1284_v19 = vld [vmem:[%s1441_s9 + $0x4] ss:$20 sps:$4 sm:$0xff]   ;;  %v1288_v22 = vld [vmem:[%s1441_s9] ss:$20 sps:$4 sm:$0xff]  }
  0x22   : > { %391 = vmatprep.subr.bf16.mxu1 %v1495_v12  ;;  %v1282_v21 = vld [vmem:[%s1441_s9 + $0x8] ss:$20 sps:$4 sm:$0xff]   ;;  %v1272_v24 = vld [vmem:[%s1441_s9 + $0x60] ss:$20 sps:$4 sm:$0xff]   ;;  %v1280_v25 = vld [vmem:[%s1441_s9 + $0x38] ss:$20 sps:$4 sm:$0xff]  }
  0x23   : > { %347 = vmatpush1.bf16.msra.mxu0 %v1479_v9  ;;  %v1286_v26 = vld [vmem:[%s1441_s9 + $0x10] ss:$20 sps:$4 sm:$0xff]   ;;  %s1117_s7 = sshll.u32 %s181_s6, 5  ;;  %s1183_s9 = sshll.u32 (%p1417_p5), %s1334_s15, 4 }
  0x24   : > { %607 = vrot.lane.b32.xlu1 %v1465_v6, %s1349_s10  ;;  %348 = vmatprep.subr.bf16.mxu0 %v1486_v10  ;;  %s183_s12 = scalar_lea.vmem [#allocation2], %s1117_s7 }
  0x25   : > { %615 = vrot.lane.b32.xlu0 %v1455_v4, %s1349_s10  ;;  %392 = vmatpush1.bf16.msra.mxu1 %v1492_v11 }
  0x26   : > { %393 = vmatprep.subr.bf16.mxu1 %v1508_v15 }
  0x27   : > { %349 = vmatpush1.bf16.msra.mxu0 %v1498_v13 }
  0x28   : > { %611 = vrot.lane.b32.xlu1 %v1469_v7, %s1349_s10  ;;  %350 = vmatprep.subr.bf16.mxu0 %v1504_v14 }
  0x29   : > { %609 = vrot.lane.b32.xlu0 %v1475_v8, %s1349_s10  ;;  %394 = vmatpush1.bf16.msra.mxu1 %v1277_v17 }
  0x2a   : > { %395 = vmatprep.subr.bf16.mxu1 %v1287_v20 }
  0x2b   : > { %351 = vmatpush1.bf16.msra.mxu0 %v1281_v18 }
  0x2c   : > { %605 = vrot.lane.b32.xlu1 %v1479_v9, %s1349_s10  ;;  %352 = vmatprep.subr.bf16.mxu0 %v1284_v19 }
  0x2d   : > { %613 = vrot.lane.b32.xlu0 %v1266_v16, %s1349_s10  ;;  %396 = vmatpush1.bf16.msra.mxu1 %v1282_v21 }
  0x2f   : > { %353 = vmatpush1.bf16.msra.mxu0 %v1288_v22 }
  0x30   : > { %599 = vrot.lane.b32.xlu1 %v1492_v11, %s1349_s10  ;;  %1141 = vmatmul.mubr.msk.bf16.vlgmr.msra.gmra.mxu1 %vm334_vm0, %v1289_v23 }
  0x31   : > { %597 = vrot.lane.b32.xlu0 %v1486_v10, %s1349_s10  ;;  %744 = vmatprep.mubr.bf16.mxu1 %v1348_v0 }
  0x32   : > { %1140 = vmatmul.mubr.msk.bf16.vlgmr.msra.gmra.mxu0 %vm334_vm0, %v1289_v23 }
  0x33   : > { %701 = vmatprep.mubr.bf16.mxu0 %v1348_v0 }
  0x34   : > { %603 = vrot.lane.b32.xlu1 %v1272_v24, %s1349_s10 }
  0x35   : > { %601 = vrot.lane.b32.xlu0 %v1495_v12, %s1349_s10 }
  0x38   : > { %587 = vrot.lane.b32.xlu1 %v1504_v14, %s1349_s10 }
  0x39   : > { %595 = vrot.lane.b32.xlu0 %v1498_v13, %s1349_s10 }
  0x3c   : > { %591 = vrot.lane.b32.xlu1 %v1508_v15, %s1349_s10 }
  0x3d   : > { %589 = vrot.lane.b32.xlu0 %v1277_v17, %s1349_s10 }
  0x40   : > { %585 = vrot.lane.b32.xlu1 %v1281_v18, %s1349_s10 }
  0x41   : > { %593 = vrot.lane.b32.xlu0 %v1280_v25, %s1349_s10 }
  0x44   : > { %579 = vrot.lane.b32.xlu1 %v1282_v21, %s1349_s10 }
  0x45   : > { %577 = vrot.lane.b32.xlu0 %v1284_v19, %s1349_s10 }
  0x48   : > { %583 = vrot.lane.b32.xlu1 %v1286_v26, %s1349_s10 }
  0x49   : > { %581 = vrot.lane.b32.xlu0 %v1287_v20, %s1349_s10 }
  0x4c   : > { %813 = vrot.lane.b32.xlu1 %v1452_v3, %s1350_s22 }
  0x4d   : > { %575 = vrot.lane.b32.xlu0 %v1288_v22, %s1349_s10  ;;  %s1012_s10 = sadd.s32 (%p1417_p5), %s1183_s9, %s1182_s8 }
  0x4e   : > { %s1184_s11 = sshll.u32 (%p1417_p5), %s1012_s10, 2 }
  0x4f   : > { %s1014_s24 = scalar_lea.vmem (%p1417_p5), %s1664_s3, %s1184_s11 }
  0x50   : > { %817 = vrot.lane.b32.xlu1 %v1444_v1, %s1350_s22 }
  0x51   : > { %815 = vrot.lane.b32.xlu0 %v1447_v2, %s1350_s22 }
  0x54   : > { %811 = vrot.lane.b32.xlu1 %v1455_v4, %s1350_s22 }
  0x55   : > { %819 = vrot.lane.b32.xlu0 %v1459_v5, %s1350_s22 }
  0x58   : > { %805 = vrot.lane.b32.xlu1 %v1475_v8, %s1350_s22 }
  0x59   : > { %803 = vrot.lane.b32.xlu0 %v1465_v6, %s1350_s22 }
  0x5c   : > { %809 = vrot.lane.b32.xlu1 %v1266_v16, %s1350_s22 }
  0x5d   : > { %807 = vrot.lane.b32.xlu0 %v1469_v7, %s1350_s22 }
  0x60   : > { %793 = vrot.lane.b32.xlu1 %v1486_v10, %s1350_s22  ;;  %v1290_v10 = vld [vmem:[%s1662_s1 + $0x8] sm:$0xff]  }
  0x61   : > { %801 = vrot.lane.b32.xlu0 %v1479_v9, %s1350_s22 }
  0x64   : > { %797 = vrot.lane.b32.xlu1 %v1495_v12, %s1350_s22 }
  0x65   : > { %795 = vrot.lane.b32.xlu0 %v1492_v11, %s1350_s22 }
  0x68   : > { %791 = vrot.lane.b32.xlu1 %v1498_v13, %s1350_s22 }
  0x69   : > { %799 = vrot.lane.b32.xlu0 %v1272_v24, %s1350_s22 }
  0x6c   : > { %785 = vrot.lane.b32.xlu1 %v1277_v17, %s1350_s22 }
  0x6d   : > { %783 = vrot.lane.b32.xlu0 %v1504_v14, %s1350_s22 }
  0x70   : > { %789 = vrot.lane.b32.xlu1 %v1280_v25, %s1350_s22 }
  0x71   : > { %787 = vrot.lane.b32.xlu0 %v1508_v15, %s1350_s22 }
  0x74   : > { %773 = vrot.lane.b32.xlu1 %v1284_v19, %s1350_s22 }
  0x75   : > { %781 = vrot.lane.b32.xlu0 %v1281_v18, %s1350_s22 }
  0x78   : > { %777 = vrot.lane.b32.xlu1 %v1287_v20, %s1350_s22 }
  0x79   : > { %775 = vrot.lane.b32.xlu0 %v1282_v21, %s1350_s22 }
  0x7c   : > { %771 = vrot.lane.b32.xlu1 %v1288_v22, %s1350_s22 }
  0x7d   : > { %779 = vrot.lane.b32.xlu0 %v1286_v26, %s1350_s22 }
  0x80   : > { %204 = vperm.xlu1 %1253, %v196_v27  }
  0x81   : > { %199 = vperm.xlu0 %1252, %v195_v28  }
  0x8e   : > { %v622_v29 = vpop.permute.xlu1 %621 }
  0x8f   : > { %v618_v30 = vpop.permute.xlu0 %617 }
  0x92   : > { %v624_v31 = vpop.permute.xlu1 %623 }
  0x93   : > { %v645_v32 = vsel %vm625_vm1, %v622_v29, %v624_v31  ;;  %v620_v33 = vpop.permute.xlu0 %619 }
  0x94   : > { %718 = vmatprep.subr.bf16.mxu1 %v645_v32  ;;  %v644_v34 = vsel %vm625_vm1, %v620_v33, %v622_v29  ;;  %v643_v35 = vsel %vm625_vm1, %v618_v30, %v620_v33 }
  0x95   : > { %675 = vmatprep.subr.bf16.mxu0 %v643_v35  ;;  %719 = vmatpush1.bf16.msra.mxu1 %v644_v34 }
  0x96   : > { %v608_v36 = vpop.permute.xlu1 %607 }
  0x97   : > { %v616_v37 = vpop.permute.xlu0 %615 }
  0x98   : > { %v642_v38 = vsel %vm625_vm1, %v616_v37, %v618_v30 }
  0x99   : > { %676 = vmatpush1.bf16.msra.mxu0 %v642_v38 }
  0x9a   : > { %v612_v39 = vpop.permute.xlu1 %611 }
  0x9b   : > { %v610_v40 = vpop.permute.xlu0 %609 }
  0x9c   : > { %v639_v41 = vsel %vm625_vm1, %v608_v36, %v610_v40  ;;  %v640_v46 = vsel %vm625_vm1, %v610_v40, %v612_v39 }
  0x9d   : > { %677 = vmatprep.subr.bf16.mxu0 %v639_v41 }
  0x9e   : > { %v606_v42 = vpop.permute.xlu1 %605 }
  0x9f   : > { %v638_v43 = vsel %vm625_vm1, %v606_v42, %v608_v36  ;;  %v614_v44 = vpop.permute.xlu0 %613 }
  0xa0   : > { %678 = vmatpush1.bf16.msra.mxu0 %v638_v43  ;;  %v641_v45 = vsel %vm625_vm1, %v612_v39, %v614_v44 }
  0xa1   : > { %720 = vmatprep.subr.bf16.mxu1 %v641_v45 }
  0xa2   : > { %v600_v47 = vpop.permute.xlu1 %599  ;;  %721 = vmatpush1.bf16.msra.mxu1 %v640_v46 }
  0xa3   : > { %v598_v48 = vpop.permute.xlu0 %597 }
  0xa4   : > { %v635_v49 = vsel %vm625_vm1, %v598_v48, %v600_v47 }
  0xa5   : > { %679 = vmatprep.subr.bf16.mxu0 %v635_v49 }
  0xa6   : > { %v604_v50 = vpop.permute.xlu1 %603 }
  0xa7   : > { %v602_v51 = vpop.permute.xlu0 %601 }
  0xa8   : > { %v636_v52 = vsel %vm625_vm1, %v600_v47, %v602_v51  ;;  %v637_v53 = vsel %vm625_vm1, %v602_v51, %v604_v50 }
  0xa9   : > { %722 = vmatprep.subr.bf16.mxu1 %v637_v53  ;;  %v1291_v53 = vld [vmem:[%s1662_s1 + $0x10] sm:$0xff]  }
  0xaa   : > { %v588_v54 = vpop.permute.xlu1 %587  ;;  %723 = vmatpush1.bf16.msra.mxu1 %v636_v52 }
  0xab   : > { %v596_v55 = vpop.permute.xlu0 %595 }
  0xac   : > { %v634_v56 = vsel %vm625_vm1, %v596_v55, %v598_v48 }
  0xad   : > { %680 = vmatpush1.bf16.msra.mxu0 %v634_v56 }
  0xae   : > { %v592_v57 = vpop.permute.xlu1 %591 }
  0xaf   : > { %v590_v58 = vpop.permute.xlu0 %589 }
  0xb0   : > { %v631_v59 = vsel %vm625_vm1, %v588_v54, %v590_v58  ;;  %v632_v1 = vsel %vm625_vm1, %v590_v58, %v592_v57 }
  0xb1   : > { %681 = vmatprep.subr.bf16.mxu0 %v631_v59 }
  0xb2   : > { %v586_v60 = vpop.permute.xlu1 %585 }
  0xb3   : > { %v630_v61 = vsel %vm625_vm1, %v586_v60, %v588_v54  ;;  %v594_v62 = vpop.permute.xlu0 %593 }
  0xb4   : > { %682 = vmatpush1.bf16.msra.mxu0 %v630_v61  ;;  %v633_v63 = vsel %vm625_vm1, %v592_v57, %v594_v62 }
  0xb5   : > { %724 = vmatprep.subr.bf16.mxu1 %v633_v63 }
  0xb6   : > { %v580_v2 = vpop.permute.xlu1 %579  ;;  %725 = vmatpush1.bf16.msra.mxu1 %v632_v1 }
  0xb7   : > { %v578_v3 = vpop.permute.xlu0 %577 }
  0xb8   : > { %v627_v4 = vsel %vm625_vm1, %v578_v3, %v580_v2 }
  0xb9   : > { %683 = vmatprep.subr.bf16.mxu0 %v627_v4 }
  0xba   : > { %v584_v5 = vpop.permute.xlu1 %583 }
  0xbb   : > { %v582_v6 = vpop.permute.xlu0 %581 }
  0xbc   : > { %v628_v7 = vsel %vm625_vm1, %v580_v2, %v582_v6  ;;  %v629_v8 = vsel %vm625_vm1, %v582_v6, %v584_v5 }
  0xbd   : > { %726 = vmatprep.subr.bf16.mxu1 %v629_v8 }
  0xbe   : > { %v814_v9 = vpop.permute.xlu1 %813  ;;  %727 = vmatpush1.bf16.msra.mxu1 %v628_v7 }
  0xbf   : > { %v576_v11 = vpop.permute.xlu0 %575 }
  0xc0   : > { %v626_v12 = vsel %vm625_vm1, %v576_v11, %v578_v3 }
  0xc1   : > { %684 = vmatpush1.bf16.msra.mxu0 %v626_v12  ;;  %1171 = vmatmul.mubr.msk.bf16.vlgmr.msra.gmra.mxu1 %vm334_vm0, %v1290_v10 }
  0xc2   : > { %v818_v13 = vpop.permute.xlu1 %817  ;;  %940 = vmatprep.mubr.bf16.mxu1 %v1348_v0 }
  0xc3   : > { %v816_v14 = vpop.permute.xlu0 %815 }
  0xc4   : > { %v839_v15 = vsel %vm821_vm2, %v814_v9, %v816_v14  ;;  %1170 = vmatmul.mubr.msk.bf16.vlgmr.msra.gmra.mxu0 %vm334_vm0, %v1290_v10  ;;  %v840_v20 = vsel %vm821_vm2, %v816_v14, %v818_v13 }
  0xc5   : > { %871 = vmatprep.subr.bf16.mxu0 %v839_v15  ;;  %897 = vmatprep.mubr.bf16.mxu0 %v1348_v0 }
  0xc6   : > { %v812_v16 = vpop.permute.xlu1 %811 }
  0xc7   : > { %v838_v17 = vsel %vm821_vm2, %v812_v16, %v814_v9  ;;  %v820_v18 = vpop.permute.xlu0 %819 }
  0xc8   : > { %872 = vmatpush1.bf16.msra.mxu0 %v838_v17  ;;  %v841_v19 = vsel %vm821_vm2, %v818_v13, %v820_v18 }
  0xc9   : > { %914 = vmatprep.subr.bf16.mxu1 %v841_v19 }
  0xca   : > { %v806_v21 = vpop.permute.xlu1 %805  ;;  %915 = vmatpush1.bf16.msra.mxu1 %v840_v20 }
  0xcb   : > { %v804_v22 = vpop.permute.xlu0 %803 }
  0xcc   : > { %v835_v23 = vsel %vm821_vm2, %v804_v22, %v806_v21 }
  0xcd   : > { %873 = vmatprep.subr.bf16.mxu0 %v835_v23 }
  0xce   : > { %v810_v24 = vpop.permute.xlu1 %809 }
  0xcf   : > { %v808_v25 = vpop.permute.xlu0 %807 }
  0xd0   : > { %v836_v26 = vsel %vm821_vm2, %v806_v21, %v808_v25  ;;  %v837_v0 = vsel %vm821_vm2, %v808_v25, %v810_v24 }
  0xd1   : > { %916 = vmatprep.subr.bf16.mxu1 %v837_v0 }
  0xd2   : > { %v794_v27 = vpop.permute.xlu1 %793  ;;  %917 = vmatpush1.bf16.msra.mxu1 %v836_v26 }
  0xd3   : > { %v802_v28 = vpop.permute.xlu0 %801 }
  0xd4   : > { %v834_v29 = vsel %vm821_vm2, %v802_v28, %v804_v22 }
  0xd5   : > { %874 = vmatpush1.bf16.msra.mxu0 %v834_v29 }
  0xd6   : > { %v798_v30 = vpop.permute.xlu1 %797 }
  0xd7   : > { %v796_v31 = vpop.permute.xlu0 %795 }
  0xd8   : > { %v831_v32 = vsel %vm821_vm2, %v794_v27, %v796_v31  ;;  %v832_v37 = vsel %vm821_vm2, %v796_v31, %v798_v30 }
  0xd9   : > { %875 = vmatprep.subr.bf16.mxu0 %v831_v32 }
  0xda   : > { %v792_v33 = vpop.permute.xlu1 %791 }
  0xdb   : > { %v830_v34 = vsel %vm821_vm2, %v792_v33, %v794_v27  ;;  %v800_v35 = vpop.permute.xlu0 %799 }
  0xdc   : > { %876 = vmatpush1.bf16.msra.mxu0 %v830_v34  ;;  %v833_v36 = vsel %vm821_vm2, %v798_v30, %v800_v35 }
  0xdd   : > { %918 = vmatprep.subr.bf16.mxu1 %v833_v36 }
  0xde   : > { %v786_v38 = vpop.permute.xlu1 %785  ;;  %919 = vmatpush1.bf16.msra.mxu1 %v832_v37 }
  0xdf   : > { %v784_v39 = vpop.permute.xlu0 %783 }
  0xe0   : > { %v827_v40 = vsel %vm821_vm2, %v784_v39, %v786_v38 }
  0xe1   : > { %877 = vmatprep.subr.bf16.mxu0 %v827_v40 }
  0xe2   : > { %v790_v41 = vpop.permute.xlu1 %789 }
  0xe3   : > { %v788_v42 = vpop.permute.xlu0 %787 }
  0xe4   : > { %v828_v43 = vsel %vm821_vm2, %v786_v38, %v788_v42  ;;  %v829_v44 = vsel %vm821_vm2, %v788_v42, %v790_v41 }
  0xe5   : > { %920 = vmatprep.subr.bf16.mxu1 %v829_v44 }
  0xe6   : > { %v774_v45 = vpop.permute.xlu1 %773  ;;  %921 = vmatpush1.bf16.msra.mxu1 %v828_v43 }
  0xe7   : > { %v782_v46 = vpop.permute.xlu0 %781 }
  0xe8   : > { %v826_v47 = vsel %vm821_vm2, %v782_v46, %v784_v39 }
  0xe9   : > { %878 = vmatpush1.bf16.msra.mxu0 %v826_v47 }
  0xea   : > { %v778_v48 = vpop.permute.xlu1 %777 }
  0xeb   : > { %v776_v49 = vpop.permute.xlu0 %775 }
  0xec   : > { %v823_v50 = vsel %vm821_vm2, %v774_v45, %v776_v49  ;;  %v824_v56 = vsel %vm821_vm2, %v776_v49, %v778_v48 }
  0xed   : > { %879 = vmatprep.subr.bf16.mxu0 %v823_v50 }
  0xee   : > { %v772_v51 = vpop.permute.xlu1 %771 }
  0xef   : > { %v822_v52 = vsel %vm821_vm2, %v772_v51, %v774_v45  ;;  %v780_v54 = vpop.permute.xlu0 %779 }
  0xf0   : > { %880 = vmatpush1.bf16.msra.mxu0 %v822_v52  ;;  %v825_v55 = vsel %vm821_vm2, %v778_v48, %v780_v54  ;;  %v415_v58 = vpop.f32.mrf.mxu1 }
  0xf1   : > { %922 = vmatprep.subr.bf16.mxu1 %v825_v55 }
  0xf2   : > { %923 = vmatpush1.bf16.msra.mxu1 %v824_v56  ;;  %v372_v57 = vpop.f32.mrf.mxu0  ;;  %v417_v60 = vpop.f32.mrf.mxu1 }
  0xf3   : > { %1175 = vmatmul.mubr.msk.bf16.vlgmr.msra.gmra.mxu0 %vm334_vm0, %v1291_v53 }
  0xf4   : > { %v374_v59 = vpop.f32.mrf.mxu0  ;;  %v419_v62 = vpop.f32.mrf.mxu1 }
  0xf5   : > { %1176 = vmatmul.mubr.msk.bf16.vlgmr.msra.gmra.mxu1 %vm334_vm0, %v1291_v53 }
  0xf6   : > { %v376_v61 = vpop.f32.mrf.mxu0  ;;  %v421_v1 = vpop.f32.mrf.mxu1 }
  0xf8   : > { %v378_v63 = vpop.f32.mrf.mxu0 }
  0xfb   : > { %v205_v9 = vpop.permute.xlu1 %204 }
  0xfc   : > { %v200_v5 = vpop.permute.xlu0 %199  ;;  %v428_v14 = vadd.f32 %v376_v61, %v205_v9  ;;  %v429_v18 = vadd.f32 %v378_v63, %v205_v9  ;;  %v430_v22 = vadd.f32 %v419_v62, %v205_v9  ;;  %v431_v28 = vadd.f32 %v421_v1, %v205_v9 }
  0xfd   : > { %v424_v8 = vadd.f32 %v372_v57, %v200_v5  ;;  %v425_v10 = vadd.f32 %v374_v59, %v200_v5  ;;  %v426_v12 = vadd.f32 %v415_v58, %v200_v5  ;;  %v427_v16 = vadd.f32 %v417_v60, %v200_v5 }
 0x181   : > { %v746_v3 = vpop.f32.mrf.mxu1 }
 0x182   : > { %v757_v23 = vadd.f32 %v746_v3, %v426_v12 }
 0x183   : > { %v748_v6 = vpop.f32.mrf.mxu1 }
 0x184   : > { %v703_v2 = vpop.f32.mrf.mxu0  ;;  %v758_v30 = vadd.f32 %v748_v6, %v427_v16 }
 0x185   : > { %v750_v11 = vpop.f32.mrf.mxu1  ;;  %v755_v15 = vadd.f32 %v703_v2, %v424_v8 }
 0x186   : > { %v705_v4 = vpop.f32.mrf.mxu0  ;;  %v761_v36 = vadd.f32 %v750_v11, %v430_v22 }
 0x187   : > { %v752_v19 = vpop.f32.mrf.mxu1  ;;  %v756_v21 = vadd.f32 %v705_v4, %v425_v10 }
 0x188   : > { %v707_v7 = vpop.f32.mrf.mxu0  ;;  %v762_v45 = vadd.f32 %v752_v19, %v431_v28 }
 0x189   : > { %v759_v25 = vadd.f32 %v707_v7, %v428_v14 }
 0x18a   : > { %v709_v13 = vpop.f32.mrf.mxu0 }
 0x18b   : > { %v760_v32 = vadd.f32 %v709_v13, %v429_v18 }
 0x1b3   : > { %v899_v17 = vpop.f32.mrf.mxu0 }
 0x1b4   : > { %v951_v20 = vadd.f32 %v899_v17, %v755_v15 }
 0x1b5   : > { %v901_v24 = vpop.f32.mrf.mxu0  ;;  %v942_v0 = vpop.f32.mrf.mxu1 }
 0x1b6   : > { %v959_v26 = vmul.f32 0.2, %v951_v20  ;;  %v952_v27 = vadd.f32 %v901_v24, %v756_v21  ;;  %v953_v29 = vadd.f32 %v942_v0, %v757_v23 }
 0x1b7   : > { %v903_v31 = vpop.f32.mrf.mxu0  ;;  %v944_v34 = vpop.f32.mrf.mxu1 }
 0x1b8   : > { %v960_v33 = vmul.f32 0.2, %v952_v27  ;;  %v955_v35 = vadd.f32 %v903_v31, %v759_v25  ;;  %v961_v37 = vmul.f32 0.2, %v953_v29  ;;  %v954_v38 = vadd.f32 %v944_v34, %v758_v30 }
 0x1b9   : > { %v905_v39 = vpop.f32.mrf.mxu0  ;;  %v967_v40 = vmax.f32 %v951_v20, %v959_v26  ;;  %v946_v43 = vpop.f32.mrf.mxu1 }
 0x1ba   : > { %v968_v41 = vmax.f32 %v952_v27, %v960_v33  ;;  %v963_v42 = vmul.f32 0.2, %v955_v35  ;;  %v956_v44 = vadd.f32 %v905_v39, %v760_v32  ;;  %v962_v46 = vmul.f32 0.2, %v954_v38 }
 0x1bb   : > { %v957_v47 = vadd.f32 %v946_v43, %v761_v36  ;;  %v948_v50 = vpop.f32.mrf.mxu1  ;;  %v969_v51 = vmax.f32 %v953_v29, %v961_v37 }
 0x1bc   : > { %v1187_v48 = vpack.c.bf16 %v968_v41, %v967_v40  ;;  %v964_v49 = vmul.f32 0.2, %v956_v44  ;;  %v970_v52 = vmax.f32 %v954_v38, %v962_v46  ;;  %v958_v54 = vadd.f32 %v948_v50, %v762_v45 }
 0x1bd   : > { %v965_v53 = vmul.f32 0.2, %v957_v47  ;;  %v971_v55 = vmax.f32 %v955_v35, %v963_v42 }
 0x1be   : > { %999 = vst [vmem:[%s183_s12] sm:$0xff] %v1187_v48  ;;  %v972_v56 = vmax.f32 %v956_v44, %v964_v49  ;;  %v1188_v57 = vpack.c.bf16 %v970_v52, %v969_v51  ;;  %v966_v58 = vmul.f32 0.2, %v958_v54 }
 0x1bf   : > { %v973_v60 = vmax.f32 %v957_v47, %v965_v53 }
 0x1c0   : > { %v1189_v59 = vpack.c.bf16 %v972_v56, %v971_v55  ;;  %1000 = vst [vmem:[%s183_s12 + $0x8] sm:$0xff] %v1188_v57  ;;  %v974_v61 = vmax.f32 %v958_v54, %v966_v58  ;;  %1009 = sbr.rel (!%p1417_p5) target bundleno = 461 (0x1cd), region = 36 }
 0x1c2   : > { %1001 = vst [vmem:[%s183_s12 + $0x10] sm:$0xff] %v1189_v59  ;;  %v1190_v62 = vpack.c.bf16 %v974_v61, %v973_v60 }
 0x1c4   : > { %1002 = vst [vmem:[%s183_s12 + $0x18] sm:$0xff] %v1190_v62 }
 0x1c5   : > { %v1027_v63 = vld [vmem:[%s183_s12] sm:$0xff] }
 0x1c6   : > { %1028 = vst [vmem:[%s1014_s24] sm:$0xff] %v1027_v63 }
 0x1c7   : > { %v1029_v1 = vld [vmem:[%s183_s12 + $0x8] sm:$0xff] }
 0x1c8   : > { %1030 = vst [vmem:[%s1014_s24 + $0x8] sm:$0xff] %v1029_v1 }
 0x1c9   : > { %v1031_v2 = vld [vmem:[%s183_s12 + $0x10] sm:$0xff] }
 0x1ca   : > { %1032 = vst [vmem:[%s1014_s24 + $0x20] sm:$0xff] %v1031_v2 }
 0x1cb   : > { %v1033_v3 = vld [vmem:[%s183_s12 + $0x18] sm:$0xff] }
 0x1cc   : > { %1034 = vst [vmem:[%s1014_s24 + $0x28] sm:$0xff] %v1033_v3 }
 0x1cd PF: > { %s13_s18 = sadd.s32 1, %s1346_s18   ;;  %s1666_s12 = smov %s1326_s13 }
 0x1ce   : > { %p10_p11 = scmp.ge.s32.totalorder %s13_s18, 6   ;;  %s1667_s13 = smov %s1428_s27 }
 0x1cf   : > { %s1668_s14 = smov %s1338_s16  ;;  %s1669_s15 = smov %s1342_s17 }
 0x1d0   : > { %s1670_s16 = smov %s1673_s19  ;;  %s1671_s17 = smov %s1677_s20 }
 0x1d1   :  { %12 = sbr.rel (!%p10_p11) target bundleno = 4 (0x4), region = 87 }

// kernel: global_dis_forward.7
= control target key start
LH: loop header
LB: loop body
LE: loop exit
PB: predicated region body
PF: predicated region fallthrough
CT: control target
= control target key end

     0   :  { %s1080_s12 = smov 0   ;;  %s1082_s13 = smov 0   ;;  %s1326_s0 = inlined_call_operand.vmem [shape: bf16[2,2,160,256], index: 0, kind: input, shape index: {}]   ;;  %s1327_s1 = inlined_call_operand.vmem [shape: bf16[3,16,160], index: 1, kind: input, shape index: {}]   ;;  %s1328_s2 = inlined_call_operand.vmem [shape: f32[16,1], index: 2, kind: input, shape index: {}]   ;;  %s1329_s3 = inlined_call_operand.vmem [shape: bf16[2,16,256], index: 3, kind: output, shape index: {}]  }
   0x1   :  { %s1084_s14 = smov 0   ;;  %s1086_s15 = smov 0  }
   0x2   :  { %s1088_s16 = smov 0   ;;  %s1090_s17 = smov 0  }
   0x3   :  { %s1092_s18 = smov 0  }
   0x4 LB: > { %s22_s19 = sadd.s32 1, %s1047_s16  ;;  %s25_s20 = sadd.s32 1, %s1051_s17  ;;  %s1055_s18 = sphi %s1092_s18, %s13_s18   ;;  %s1051_s17 = sphi %s1090_s17, %s1336_s17   ;;  %s1047_s16 = sphi %s1088_s16, %s1335_s16   ;;  %s1043_s15 = sphi %s1086_s15, %s1334_s15   ;;  %s1039_s14 = sphi %s1084_s14, %s1333_s14   ;;  %s1035_s13 = sphi %s1082_s13, %s1332_s13   ;;  %s1031_s12 = sphi %s1080_s12, %s1331_s12  }
   0x5   : > { %p23_p0 = scmp.ge.s32.totalorder %s22_s19, 2  ;;  %s825_s21 = sadd.s32 4294967295, %s1055_s18  }
   0x6   : > { %p114_p1 = scmp.ne.s32.totalorder %s1035_s13, %s1031_s12  ;;  %p115_p2 = scmp.eq.s32.totalorder %s825_s21, 3 }
   0x7   : > { %s1338_s19 = smov (%p23_p0, %s22_s19), 0  ;;  %s1340_s20 = smov (!%p23_p0, %s25_s20), %s1051_s17 }
   0x8   : > { %s100_s22 = ssub.s32 %s1047_s16, %s1338_s19  ;;  %p27_p3 = scmp.ge.s32.totalorder %s1340_s20, 2 }
   0x9   : > { %p829_p4 = scmp.ge.s32.totalorder %s1055_s18, 1  ;;  %p1126_p5 = por %p115_p2, %p114_p1 }
   0xa   : > { %p157_p6 = scmp.lt.s32.totalorder %s1055_s18, 5  ;;  %s1342_s20 = smov (%p27_p3, %s1340_s20), 0 }
   0xb   : > { %s99_s24 = ssub.s32 %s1051_s17, %s1342_s20  ;;  %s104_s26 = sadd.s32 1, %s1035_s13 }
   0xc   : > { %p158_p7 = pnand %p829_p4, %p157_p6  ;;  %s101_s25 = sor.u32 %s100_s22, %s99_s24 }
   0xd   : > { %p102_p8 = scmp.eq.s32.totalorder %s101_s25, 0  ;;  %p184_p9 = scmp.lt.s32.totalorder (!%p158_p7), %s1043_s15, 1 }
   0xe   : > { %161 = sbr.rel (%p158_p7) target bundleno = 437 (0x1b5), region = 32  ;;  %p186_p10 = scmp.lt.s32.totalorder (!%p158_p7), %s1039_s14, 1 }
   0xf   : > { %s1137_s27 = scalar_select %p102_p8, %s1035_s13, %s104_s26  }
  0x10   : > { %s1058_s21 = smov (!%p158_p7), 96   ;;  %s1059_s22 = smov (!%p158_p7), 112  }
  0x13   : > { %v1057_v0 = vmov 0   ;;  %v994_v1 = vld [vmem:[%s1327_s1 + $0x4] ss:$8 sps:$4 sm:$0xff]   ;;  %s185_s30 = scalar_select %p184_p9, %s1043_s15, 1  ;;  %vm297_vm0 = vcmask 261120   ;;  %vm615_vm1 = vcmask 785408  }
  0x14   : > { %301 = vmatprep.subr.bf16.mxu0 %v1057_v0  ;;  %520 = vmatprep.subr.bf16.mxu1 %v1057_v0  ;;  %s187_s4 = scalar_select %p186_p10, %s1039_s14, 1  ;;  %v992_v26 = vld [vmem:[%s1327_s1] ss:$8 sps:$4 sm:$0xff]   ;;  %v997_v31 = vld [vmem:[%s1327_s1 + $0x14] ss:$8 sps:$4 sm:$0xff]   ;;  %vm496_vm2 = vcmask 916480  }
  0x15   : > { %951 = vset.pattern.permute.xlu1 %v1057_v0  ;;  %950 = vset.pattern.permute.xlu0 %v1057_v0  ;;  %s890_s5 = smul.u32 80, %s185_s30  ;;  %v998_v32 = vld [vmem:[%s1327_s1 + $0x24] ss:$8 sps:$4 sm:$0xff]   ;;  %s878_s25 = sshll.u32 (%p1126_p5), %s1043_s15, 2 }
  0x16   : > { %844 = vmatprep.mubr.msk.bf16.mxu0 %vm297_vm0, %v994_v1  ;;  %s889_s6 = smul.u32 40, %s187_s4  ;;  %869 = vmatprep.mubr.msk.bf16.mxu1 %vm297_vm0, %v997_v31  ;;  %v195_v35 = vld [vmem:[%s1328_s2 + $0x8] sm:$0xff]  ;;  %v194_v36 = vld [vmem:[%s1328_s2] sm:$0xff]  ;;  %v995_v31 = vld [vmem:[%s1327_s1 + $0x10] ss:$8 sps:$4 sm:$0xff]   ;;  %s704_s26 = sadd.s32 (%p1126_p5), %s1039_s14, %s878_s25 }
  0x18   : > { %s190_s7 = sadd.s32 %s890_s5, %s889_s6 }
  0x19   : > { %s831_s8 = sshll.u32 %s190_s7, 2 }
  0x1a   : > { %s1154_s11 = scalar_lea.vmem %s1326_s0, %s831_s8 }
  0x1b   : > { %v952_v2 = vld [vmem:[%s1154_s11 + $0x70] ss:$8 sps:$4 sm:$0xff]   ;;  %v954_v3 = vld [vmem:[%s1154_s11 + $0x74] ss:$8 sps:$4 sm:$0xff]   ;;  %v955_v4 = vld [vmem:[%s1154_s11 + $0x64] ss:$8 sps:$4 sm:$0xff]  }
  0x1c   : > { %603 = vrot.lane.b32.xlu1 %v952_v2, %s1058_s21  ;;  %484 = vrot.lane.b32.xlu0 %v952_v2, %s1059_s22  ;;  %v957_v5 = vld [vmem:[%s1154_s11 + $0x60] ss:$8 sps:$4 sm:$0xff]   ;;  %v958_v6 = vld [vmem:[%s1154_s11 + $0x54] ss:$8 sps:$4 sm:$0xff]  }
  0x1d   : > { %v960_v7 = vld [vmem:[%s1154_s11 + $0x50] ss:$8 sps:$4 sm:$0xff]   ;;  %v983_v9 = vld [vmem:[%s1154_s11 + $0x60] ss:$8 sps:$4 sm:$0xff]   ;;  %v961_v10 = vld [vmem:[%s1154_s11 + $0x44] ss:$8 sps:$4 sm:$0xff]  }
  0x1e   : > { %v982_v8 = vld [vmem:[%s1154_s11 + $0x70] ss:$8 sps:$4 sm:$0xff]   ;;  %v963_v11 = vld [vmem:[%s1154_s11 + $0x40] ss:$8 sps:$4 sm:$0xff]   ;;  %v964_v15 = vld [vmem:[%s1154_s11 + $0x34] ss:$8 sps:$4 sm:$0xff]  }
  0x1f   : > { %302 = vmatpush1.bf16.msra.mxu0 %v982_v8  ;;  %v984_v12 = vld [vmem:[%s1154_s11 + $0x50] ss:$8 sps:$4 sm:$0xff]   ;;  %v985_v13 = vld [vmem:[%s1154_s11 + $0x40] ss:$8 sps:$4 sm:$0xff]   ;;  %v967_v19 = vld [vmem:[%s1154_s11 + $0x24] ss:$8 sps:$4 sm:$0xff]  }
  0x20   : > { %605 = vrot.lane.b32.xlu1 %v954_v3, %s1058_s21  ;;  %486 = vrot.lane.b32.xlu0 %v954_v3, %s1059_s22  ;;  %v986_v14 = vld [vmem:[%s1154_s11 + $0x30] ss:$8 sps:$4 sm:$0xff]   ;;  %v987_v17 = vld [vmem:[%s1154_s11 + $0x20] ss:$8 sps:$4 sm:$0xff]  }
  0x21   : > { %303 = vmatprep.subr.bf16.mxu0 %v1057_v0  ;;  %v966_v16 = vld [vmem:[%s1154_s11 + $0x30] ss:$8 sps:$4 sm:$0xff]   ;;  %v969_v20 = vld [vmem:[%s1154_s11 + $0x20] ss:$8 sps:$4 sm:$0xff]   ;;  %v970_v23 = vld [vmem:[%s1154_s11 + $0x14] ss:$8 sps:$4 sm:$0xff]  }
  0x22   : > { %v988_v18 = vld [vmem:[%s1154_s11 + $0x10] ss:$8 sps:$4 sm:$0xff]   ;;  %v989_v21 = vld [vmem:[%s1154_s11] ss:$8 sps:$4 sm:$0xff]   ;;  %v973_v27 = vld [vmem:[%s1154_s11 + $0x4] ss:$8 sps:$4 sm:$0xff]  }
  0x23   : > { %304 = vmatpush1.bf16.msra.mxu0 %v983_v9  ;;  %v990_v22 = vld [vmem:[%s1154_s11 + $0x90] ss:$8 sps:$4 sm:$0xff]   ;;  %v991_v25 = vld [vmem:[%s1154_s11 + $0x80] ss:$8 sps:$4 sm:$0xff]   ;;  %v976_v29 = vld [vmem:[%s1154_s11 + $0x94] ss:$8 sps:$4 sm:$0xff]  }
  0x24   : > { %482 = vrot.lane.b32.xlu1 %v955_v4, %s1059_s22  ;;  %480 = vrot.lane.b32.xlu0 %v957_v5, %s1059_s22  ;;  %v972_v24 = vld [vmem:[%s1154_s11 + $0x10] ss:$8 sps:$4 sm:$0xff]   ;;  %v975_v28 = vld [vmem:[%s1154_s11] ss:$8 sps:$4 sm:$0xff]  }
  0x25   : > { %305 = vmatprep.subr.bf16.mxu0 %v1057_v0  ;;  %v978_v30 = vld [vmem:[%s1154_s11 + $0x90] ss:$8 sps:$4 sm:$0xff]   ;;  %v979_v33 = vld [vmem:[%s1154_s11 + $0x84] ss:$8 sps:$4 sm:$0xff]   ;;  %v981_v34 = vld [vmem:[%s1154_s11 + $0x80] ss:$8 sps:$4 sm:$0xff]  }
  0x27   : > { %306 = vmatpush1.bf16.msra.mxu0 %v984_v12 }
  0x28   : > { %601 = vrot.lane.b32.xlu1 %v955_v4, %s1058_s21  ;;  %599 = vrot.lane.b32.xlu0 %v957_v5, %s1058_s21 }
  0x29   : > { %307 = vmatprep.subr.bf16.mxu0 %v1057_v0 }
  0x2b   : > { %308 = vmatpush1.bf16.msra.mxu0 %v985_v13 }
  0x2c   : > { %478 = vrot.lane.b32.xlu1 %v958_v6, %s1059_s22  ;;  %476 = vrot.lane.b32.xlu0 %v960_v7, %s1059_s22 }
  0x2d   : > { %309 = vmatprep.subr.bf16.mxu0 %v1057_v0 }
  0x2f   : > { %310 = vmatpush1.bf16.msra.mxu0 %v986_v14 }
  0x30   : > { %597 = vrot.lane.b32.xlu1 %v958_v6, %s1058_s21  ;;  %595 = vrot.lane.b32.xlu0 %v960_v7, %s1058_s21 }
  0x31   : > { %311 = vmatprep.subr.bf16.mxu0 %v1057_v0 }
  0x33   : > { %312 = vmatpush1.bf16.msra.mxu0 %v987_v17 }
  0x34   : > { %474 = vrot.lane.b32.xlu1 %v961_v10, %s1059_s22  ;;  %472 = vrot.lane.b32.xlu0 %v963_v11, %s1059_s22 }
  0x35   : > { %313 = vmatprep.subr.bf16.mxu0 %v1057_v0 }
  0x37   : > { %314 = vmatpush1.bf16.msra.mxu0 %v988_v18 }
  0x38   : > { %593 = vrot.lane.b32.xlu1 %v961_v10, %s1058_s21  ;;  %591 = vrot.lane.b32.xlu0 %v963_v11, %s1058_s21 }
  0x39   : > { %315 = vmatprep.subr.bf16.mxu0 %v1057_v0 }
  0x3b   : > { %316 = vmatpush1.bf16.msra.mxu0 %v989_v21 }
  0x3c   : > { %470 = vrot.lane.b32.xlu1 %v964_v15, %s1059_s22  ;;  %468 = vrot.lane.b32.xlu0 %v966_v16, %s1059_s22 }
  0x3d   : > { %329 = vmatprep.subr.bf16.mxu0 %v1057_v0 }
  0x3f   : > { %330 = vmatpush2.bf16.msra.mxu0 %v990_v22 }
  0x40   : > { %589 = vrot.lane.b32.xlu1 %v964_v15, %s1058_s21  ;;  %587 = vrot.lane.b32.xlu0 %v966_v16, %s1058_s21 }
  0x41   : > { %331 = vmatprep.subr.bf16.mxu0 %v1057_v0 }
  0x43   : > { %332 = vmatpush2.bf16.msra.mxu0 %v991_v25 }
  0x44   : > { %466 = vrot.lane.b32.xlu1 %v967_v19, %s1059_s22  ;;  %464 = vrot.lane.b32.xlu0 %v969_v20, %s1059_s22 }
  0x45   : > { %639 = vmatprep.subr.bf16.mxu0 %v1057_v0 }
  0x46   : > { %334 = vmatmul.mubr.bf16.vlgmr.msra.gmra.mxu0 %v992_v26 }
  0x47   : > { %874 = vmatprep.mubr.msk.bf16.mxu0 %vm297_vm0, %v998_v32 }
  0x48   : > { %585 = vrot.lane.b32.xlu1 %v967_v19, %s1058_s21  ;;  %583 = vrot.lane.b32.xlu0 %v969_v20, %s1058_s21 }
  0x4c   : > { %462 = vrot.lane.b32.xlu1 %v970_v23, %s1059_s22  ;;  %460 = vrot.lane.b32.xlu0 %v972_v24, %s1059_s22 }
  0x50   : > { %581 = vrot.lane.b32.xlu1 %v970_v23, %s1058_s21  ;;  %579 = vrot.lane.b32.xlu0 %v972_v24, %s1058_s21 }
  0x54   : > { %458 = vrot.lane.b32.xlu1 %v973_v27, %s1059_s22  ;;  %456 = vrot.lane.b32.xlu0 %v975_v28, %s1059_s22 }
  0x58   : > { %577 = vrot.lane.b32.xlu1 %v973_v27, %s1058_s21  ;;  %575 = vrot.lane.b32.xlu0 %v975_v28, %s1058_s21 }
  0x5c   : > { %494 = vrot.lane.b32.xlu1 %v976_v29, %s1059_s22  ;;  %492 = vrot.lane.b32.xlu0 %v978_v30, %s1059_s22 }
  0x60   : > { %613 = vrot.lane.b32.xlu1 %v976_v29, %s1058_s21  ;;  %611 = vrot.lane.b32.xlu0 %v978_v30, %s1058_s21 }
  0x64   : > { %490 = vrot.lane.b32.xlu1 %v979_v33, %s1059_s22  ;;  %488 = vrot.lane.b32.xlu0 %v981_v34, %s1059_s22 }
  0x68   : > { %609 = vrot.lane.b32.xlu1 %v979_v33, %s1058_s21  ;;  %607 = vrot.lane.b32.xlu0 %v981_v34, %s1058_s21  ;;  %s181_s21 = sand.u32 1, %s1031_s12   ;;  %s879_s12 = sshll.u32 (%p1126_p5), %s704_s26, 2 }
  0x69   : > { %s830_s22 = sshll.u32 %s181_s21, 3  ;;  %s706_s30 = scalar_lea.vmem (%p1126_p5), %s1329_s3, %s879_s12 }
  0x6a   : > { %s183_s24 = scalar_lea.vmem [#allocation2], %s830_s22 }
  0x6c   : > { %203 = vperm.xlu1 %951, %v195_v35   ;;  %198 = vperm.xlu0 %950, %v194_v36   ;;  %v1000_v35 = vld [vmem:[%s1327_s1 + $0x20] ss:$8 sps:$4 sm:$0xff]  }
  0x8e   : > { %v604_v37 = vpop.permute.xlu1 %603  ;;  %v485_v38 = vpop.permute.xlu0 %484 }
  0x92   : > { %v606_v39 = vpop.permute.xlu1 %605  ;;  %v487_v40 = vpop.permute.xlu0 %486 }
  0x93   : > { %v623_v41 = vsel %vm615_vm1, %v604_v37, %v606_v39  ;;  %v504_v42 = vsel %vm496_vm2, %v485_v38, %v487_v40 }
  0x94   : > { %521 = vmatpush1.bf16.msra.mxu1 %v504_v42  ;;  %640 = vmatpush1.bf16.msra.mxu0 %v623_v41 }
  0x95   : > { %522 = vmatprep.subr.bf16.mxu1 %v1057_v0  ;;  %641 = vmatprep.subr.bf16.mxu0 %v1057_v0 }
  0x96   : > { %v483_v43 = vpop.permute.xlu1 %482  ;;  %v481_v44 = vpop.permute.xlu0 %480 }
  0x97   : > { %v503_v45 = vsel %vm496_vm2, %v481_v44, %v483_v43 }
  0x98   : > { %523 = vmatpush1.bf16.msra.mxu1 %v503_v45 }
  0x99   : > { %524 = vmatprep.subr.bf16.mxu1 %v1057_v0 }
  0x9a   : > { %v602_v46 = vpop.permute.xlu1 %601  ;;  %v600_v47 = vpop.permute.xlu0 %599 }
  0x9b   : > { %v622_v48 = vsel %vm615_vm1, %v600_v47, %v602_v46 }
  0x9c   : > { %642 = vmatpush1.bf16.msra.mxu0 %v622_v48 }
  0x9d   : > { %643 = vmatprep.subr.bf16.mxu0 %v1057_v0 }
  0x9e   : > { %v479_v49 = vpop.permute.xlu1 %478  ;;  %v477_v50 = vpop.permute.xlu0 %476 }
  0x9f   : > { %v502_v51 = vsel %vm496_vm2, %v477_v50, %v479_v49 }
  0xa0   : > { %525 = vmatpush1.bf16.msra.mxu1 %v502_v51 }
  0xa1   : > { %526 = vmatprep.subr.bf16.mxu1 %v1057_v0 }
  0xa2   : > { %v598_v52 = vpop.permute.xlu1 %597  ;;  %v596_v53 = vpop.permute.xlu0 %595 }
  0xa3   : > { %v621_v54 = vsel %vm615_vm1, %v596_v53, %v598_v52 }
  0xa4   : > { %644 = vmatpush1.bf16.msra.mxu0 %v621_v54 }
  0xa5   : > { %645 = vmatprep.subr.bf16.mxu0 %v1057_v0 }
  0xa6   : > { %v475_v55 = vpop.permute.xlu1 %474  ;;  %v473_v56 = vpop.permute.xlu0 %472 }
  0xa7   : > { %v501_v57 = vsel %vm496_vm2, %v473_v56, %v475_v55 }
  0xa8   : > { %527 = vmatpush1.bf16.msra.mxu1 %v501_v57 }
  0xa9   : > { %528 = vmatprep.subr.bf16.mxu1 %v1057_v0 }
  0xaa   : > { %v594_v58 = vpop.permute.xlu1 %593  ;;  %v592_v59 = vpop.permute.xlu0 %591 }
  0xab   : > { %v620_v60 = vsel %vm615_vm1, %v592_v59, %v594_v58 }
  0xac   : > { %646 = vmatpush1.bf16.msra.mxu0 %v620_v60 }
  0xad   : > { %647 = vmatprep.subr.bf16.mxu0 %v1057_v0 }
  0xae   : > { %v471_v61 = vpop.permute.xlu1 %470  ;;  %v469_v62 = vpop.permute.xlu0 %468 }
  0xaf   : > { %v500_v63 = vsel %vm496_vm2, %v469_v62, %v471_v61 }
  0xb0   : > { %529 = vmatpush1.bf16.msra.mxu1 %v500_v63 }
  0xb1   : > { %530 = vmatprep.subr.bf16.mxu1 %v1057_v0 }
  0xb2   : > { %v590_v1 = vpop.permute.xlu1 %589  ;;  %v588_v2 = vpop.permute.xlu0 %587 }
  0xb3   : > { %v619_v3 = vsel %vm615_vm1, %v588_v2, %v590_v1 }
  0xb4   : > { %648 = vmatpush1.bf16.msra.mxu0 %v619_v3 }
  0xb5   : > { %649 = vmatprep.subr.bf16.mxu0 %v1057_v0 }
  0xb6   : > { %v467_v4 = vpop.permute.xlu1 %466  ;;  %v465_v5 = vpop.permute.xlu0 %464 }
  0xb7   : > { %v499_v6 = vsel %vm496_vm2, %v465_v5, %v467_v4 }
  0xb8   : > { %531 = vmatpush1.bf16.msra.mxu1 %v499_v6 }
  0xb9   : > { %532 = vmatprep.subr.bf16.mxu1 %v1057_v0 }
  0xba   : > { %v586_v7 = vpop.permute.xlu1 %585  ;;  %v584_v8 = vpop.permute.xlu0 %583 }
  0xbb   : > { %v618_v9 = vsel %vm615_vm1, %v584_v8, %v586_v7 }
  0xbc   : > { %650 = vmatpush1.bf16.msra.mxu0 %v618_v9 }
  0xbd   : > { %651 = vmatprep.subr.bf16.mxu0 %v1057_v0 }
  0xbe   : > { %v463_v10 = vpop.permute.xlu1 %462  ;;  %v461_v11 = vpop.permute.xlu0 %460 }
  0xbf   : > { %v498_v12 = vsel %vm496_vm2, %v461_v11, %v463_v10 }
  0xc0   : > { %533 = vmatpush1.bf16.msra.mxu1 %v498_v12 }
  0xc1   : > { %534 = vmatprep.subr.bf16.mxu1 %v1057_v0 }
  0xc2   : > { %v582_v13 = vpop.permute.xlu1 %581  ;;  %v580_v14 = vpop.permute.xlu0 %579 }
  0xc3   : > { %v617_v15 = vsel %vm615_vm1, %v580_v14, %v582_v13 }
  0xc4   : > { %652 = vmatpush1.bf16.msra.mxu0 %v617_v15 }
  0xc5   : > { %653 = vmatprep.subr.bf16.mxu0 %v1057_v0 }
  0xc6   : > { %v459_v16 = vpop.permute.xlu1 %458  ;;  %v457_v17 = vpop.permute.xlu0 %456 }
  0xc7   : > { %v497_v18 = vsel %vm496_vm2, %v457_v17, %v459_v16 }
  0xc8   : > { %535 = vmatpush1.bf16.msra.mxu1 %v497_v18 }
  0xc9   : > { %548 = vmatprep.subr.bf16.mxu1 %v1057_v0 }
  0xca   : > { %v578_v19 = vpop.permute.xlu1 %577  ;;  %v576_v20 = vpop.permute.xlu0 %575 }
  0xcb   : > { %v616_v21 = vsel %vm615_vm1, %v576_v20, %v578_v19 }
  0xcc   : > { %654 = vmatpush1.bf16.msra.mxu0 %v616_v21 }
  0xcd   : > { %667 = vmatprep.subr.bf16.mxu0 %v1057_v0 }
  0xce   : > { %v495_v22 = vpop.permute.xlu1 %494  ;;  %v493_v23 = vpop.permute.xlu0 %492 }
  0xcf   : > { %v506_v24 = vsel %vm496_vm2, %v493_v23, %v495_v22 }
  0xd0   : > { %549 = vmatpush2.bf16.msra.mxu1 %v506_v24 }
  0xd1   : > { %550 = vmatprep.subr.bf16.mxu1 %v1057_v0 }
  0xd2   : > { %v614_v25 = vpop.permute.xlu1 %613  ;;  %v612_v26 = vpop.permute.xlu0 %611 }
  0xd3   : > { %v625_v27 = vsel %vm615_vm1, %v612_v26, %v614_v25 }
  0xd4   : > { %668 = vmatpush2.bf16.msra.mxu0 %v625_v27 }
  0xd5   : > { %669 = vmatprep.subr.bf16.mxu0 %v1057_v0 }
  0xd6   : > { %v491_v28 = vpop.permute.xlu1 %490  ;;  %v489_v29 = vpop.permute.xlu0 %488 }
  0xd7   : > { %v505_v30 = vsel %vm496_vm2, %v489_v29, %v491_v28 }
  0xd8   : > { %551 = vmatpush2.bf16.msra.mxu1 %v505_v30 }
  0xda   : > { %v610_v32 = vpop.permute.xlu1 %609  ;;  %v608_v33 = vpop.permute.xlu0 %607 }
  0xdb   : > { %v624_v34 = vsel %vm615_vm1, %v608_v33, %v610_v32  ;;  %553 = vmatmul.mubr.bf16.vlgmr.msra.gmra.mxu1 %v995_v31 }
  0xdc   : > { %670 = vmatpush2.bf16.msra.mxu0 %v624_v34 }
  0xdf   : > { %672 = vmatmul.mubr.bf16.vlgmr.msra.gmra.mxu0 %v1000_v35 }
  0xe7   : > { %v199_v39 = vpop.permute.xlu0 %198  ;;  %v204_v42 = vpop.permute.xlu1 %203 }
 0x106   : > { %v335_v0 = vpop.f32.mrf.mxu0 }
 0x107   : > { %v342_v41 = vadd.f32 %v335_v0, %v199_v39 }
 0x108   : > { %v337_v36 = vpop.f32.mrf.mxu0 }
 0x10a   : > { %v338_v37 = vpop.f32.mrf.mxu0 }
 0x10b   : > { %v343_v47 = vadd.f32 %v338_v37, %v204_v42 }
 0x10c   : > { %v340_v38 = vpop.f32.mrf.mxu0 }
 0x19b   : > { %v554_v40 = vpop.f32.mrf.mxu1 }
 0x19c   : > { %v561_v44 = vadd.f32 %v554_v40, %v342_v41 }
 0x19d   : > { %v556_v43 = vpop.f32.mrf.mxu1 }
 0x19f   : > { %v557_v45 = vpop.f32.mrf.mxu1  ;;  %v673_v46 = vpop.f32.mrf.mxu0 }
 0x1a0   : > { %v680_v48 = vadd.f32 %v673_v46, %v561_v44  ;;  %v562_v51 = vadd.f32 %v557_v45, %v343_v47 }
 0x1a1   : > { %v559_v49 = vpop.f32.mrf.mxu1  ;;  %v675_v50 = vpop.f32.mrf.mxu0 }
 0x1a2   : > { %v682_v53 = vmul.f32 0.2, %v680_v48 }
 0x1a3   : > { %v676_v52 = vpop.f32.mrf.mxu0 }
 0x1a4   : > { %v681_v54 = vadd.f32 %v676_v52, %v562_v51  ;;  %v684_v57 = vmax.f32 %v680_v48, %v682_v53 }
 0x1a5   : > { %v678_v55 = vpop.f32.mrf.mxu0 }
 0x1a6   : > { %v683_v56 = vmul.f32 0.2, %v681_v54 }
 0x1a8   : > { %v685_v58 = vmax.f32 %v681_v54, %v683_v56  ;;  %702 = sbr.rel (!%p1126_p5) target bundleno = 437 (0x1b5), region = 36 }
 0x1aa   : > { %v887_v59 = vpack.c.bf16 %v685_v58, %v684_v57 }
 0x1ac   : > { %888 = vst [vmem:[%s183_s24] sm:$0xff] %v887_v59  }
 0x1b3   : > { %v723_v60 = vld [vmem:[%s183_s24] sm:$0xf]  ;;  %v725_v61 = vld [vmem:[%s183_s24 + $0x4] sm:$0xf] }
 0x1b4   : > { %724 = vst [vmem:[%s706_s30] sm:$0xf] %v723_v60  ;;  %726 = vst [vmem:[%s706_s30 + $0x8] sm:$0xf] %v725_v61 }
 0x1b5 PF: > { %s13_s18 = sadd.s32 1, %s1055_s18   ;;  %s1331_s12 = smov %s1035_s13 }
 0x1b6   : > { %p10_p11 = scmp.ge.s32.totalorder %s13_s18, 6   ;;  %s1332_s13 = smov %s1137_s27 }
 0x1b7   : > { %s1333_s14 = smov %s1047_s16  ;;  %s1334_s15 = smov %s1051_s17 }
 0x1b8   : > { %s1335_s16 = smov %s1338_s19  ;;  %s1336_s17 = smov %s1342_s20 }
 0x1b9   :  { %12 = sbr.rel (!%p10_p11) target bundleno = 4 (0x4), region = 105 }

</bundles_post_ra>
